<compile_context>
chip_gen: v5e
topology: v5e:2x2
jax: 0.10.0
libtpu: 0.0.40
codegen_flags: <defaults>
</compile_context>

<pallas_src>
import jax
import jax.numpy as jnp
from jax.experimental import pallas as pl
from jax.experimental.pallas import tpu as pltpu

BN_EPS = 1e-5


# ----------------------------- Pallas kernels ------------------------------

def _phi_g_kernel(xs_ref, w_ref, b_ref, phit_ref, g_ref):
    """Fused [phi|g] = xs @ [Wphi|Wg] + [bphi|bg] for one pooled-row tile.

    phi is written transposed as (E, TNs) so the attention kernel can do a
    plain (TQ,E)@(E,Ns) matmul with no per-tile transpose.
    """
    xs = xs_ref[0]                                              # (TNs, C) bf16
    pg = jnp.dot(xs, w_ref[...],
                 preferred_element_type=jnp.float32) + b_ref[...]   # (TNs, 2E)
    E = g_ref.shape[2]
    phit_ref[0] = jnp.transpose(pg[:, :E]).astype(phit_ref.dtype)   # (E, TNs)
    g_ref[0] = pg[:, E:].astype(g_ref.dtype)                        # (TNs, E)


def _nonlocal_kernel(x_ref, wt_ref, bt_ref, phit_ref, g_ref, ww_ref, bw_ref,
                     o_ref):
    """Fused: theta proj -> S = theta @ phi^T -> softmax -> y = p @ g ->
    W proj (BN scale folded into weight, +shift) -> + residual.
    One query-row tile of one batch element."""
    bf16 = jnp.bfloat16
    x = x_ref[0]                                                # (TQ, C) f32

    # theta projection (bf16 operands, f32 accumulate)
    theta = jnp.dot(x.astype(bf16), wt_ref[...],
                    preferred_element_type=jnp.float32) + bt_ref[...]  # (TQ,E)

    # S = theta @ phi^T  (phi arrives pre-transposed as (E, Ns))
    s = jnp.dot(theta.astype(bf16), phit_ref[0],
                preferred_element_type=jnp.float32)                    # (TQ,Ns)

    # softmax over the sub-sampled spatial axis (f32, exact division)
    s = s - jnp.max(s, axis=-1, keepdims=True)
    e = jnp.exp(s)
    p = e / jnp.sum(e, axis=-1, keepdims=True)

    # y = p @ g
    y = jnp.dot(p.astype(bf16), g_ref[0],
                preferred_element_type=jnp.float32)                    # (TQ,E)

    # W projection with BN scale already folded into ww; +shift; +residual.
    z = jnp.dot(y.astype(bf16), ww_ref[...],
                preferred_element_type=jnp.float32) + bw_ref[...]      # (TQ,C)
    o_ref[0] = (z + x).astype(o_ref.dtype)


# ----------------------------- kernel wrappers ------------------------------

def _divisor_tile(n, target):
    """Largest multiple-of-8 divisor of n that is <= target (else n)."""
    if n <= target:
        return n
    t = (target // 8) * 8
    while t >= 8:
        if n % t == 0:
            return t
        t -= 8
    return n


def _round_up(n, m):
    return ((n + m - 1) // m) * m


def _vmem_limit(per_step_bytes):
    """Explicit scoped-VMEM limit: 2x per-step footprint, floored at the
    32 MiB default and capped below v7x's 64 MiB physical VMEM."""
    return int(min(max(2 * per_step_bytes, 32 << 20), 56 << 20))


def _nonlocal_forward_impl(params, x_ncthw):
    B, C, T, H, W = x_ncthw.shape
    E = params['w_theta'].shape[1]
    bf16 = jnp.bfloat16
    f32 = jnp.float32

    # NCTHW -> (B, T, H, W, C) -> (B, N, C): channels on the lane axis.
    xv = jnp.transpose(x_ncthw, (0, 2, 3, 4, 1))
    N = T * H * W
    x_nlc = xv.reshape(B, N, C)

    # sub_sample: MaxPool3d(kernel=(1,2,2)) as 4-way max of strided slices.
    Hs, Ws = H // 2, W // 2
    xs = jnp.maximum(
        jnp.maximum(xv[:, :, 0:2 * Hs:2, 0:2 * Ws:2, :],
                    xv[:, :, 0:2 * Hs:2, 1:2 * Ws:2, :]),
        jnp.maximum(xv[:, :, 1:2 * Hs:2, 0:2 * Ws:2, :],
                    xv[:, :, 1:2 * Hs:2, 1:2 * Ws:2, :]))
    Ns = T * Hs * Ws
    xs_bf = xs.reshape(B, Ns, C).astype(bf16)

    # Fold BN (eval mode) into the W projection weight / shift.
    scale = params['bn_gamma'] / jnp.sqrt(params['bn_var'] + BN_EPS)      # (C,)
    w_w = (params['w_W'] * scale[None, :]).astype(bf16)                   # (E,C)
    shift_w = ((params['b_W'] - params['bn_mean']) * scale
               + params['bn_beta']).reshape(1, C).astype(f32)

    # Fused [phi|g] projection weights (lane-dense 2E output).
    w_phig = jnp.concatenate([params['w_phi'], params['w_g']],
                             axis=1).astype(bf16)                         # (C,2E)
    b_phig = jnp.concatenate([params['b_phi'], params['b_g']]
                             ).reshape(1, 2 * E).astype(f32)
    w_theta = params['w_theta'].astype(bf16)
    b_theta = params['b_theta'].reshape(1, E).astype(f32)

    # ----- Kernel 1: fused phi/g projection of the pooled input -----
    TNs = _divisor_tile(Ns, 512)
    k1_step_bytes = (2 * TNs * C * 2                    # xs tile (bf16, x2 buf)
                     + C * 2 * E * 2 + 2 * E * 4        # weights (single buf)
                     + 2 * (E * TNs * 2) * 2            # phiT + g out (x2 buf)
                     + TNs * 2 * E * 4 * 2)             # f32 temporaries
    k1_cost = pl.CostEstimate(
        flops=int(2 * B * Ns * C * 2 * E),
        transcendentals=0,
        bytes_accessed=int(B * Ns * C * 2 + C * 2 * E * 2 + 2 * B * Ns * E * 2))

    phi_t, g = pl.pallas_call(
        _phi_g_kernel,
        out_shape=(jax.ShapeDtypeStruct((B, E, Ns), bf16),
                   jax.ShapeDtypeStruct((B, Ns, E), bf16)),
        grid=(B, Ns // TNs),
        in_specs=[
            pl.BlockSpec((1, TNs, C), lambda b, m: (b, m, 0)),
            pl.BlockSpec((C, 2 * E), lambda b, m: (0, 0),
                         pipeline_mode=pl.Buffered(1)),
            pl.BlockSpec((1, 2 * E), lambda b, m: (0, 0),
                         pipeline_mode=pl.Buffered(1)),
        ],
        out_specs=(pl.BlockSpec((1, E, TNs), lambda b, m: (b, 0, m)),
                   pl.BlockSpec((1, TNs, E), lambda b, m: (b, m, 0))),
        compiler_params=pltpu.CompilerParams(
            dimension_semantics=("parallel", "parallel"),
            vmem_limit_bytes=_vmem_limit(k1_step_bytes)),
        cost_estimate=k1_cost,
    )(xs_bf, w_phig, b_phig)

    # ----- Kernel 2: fused theta / attention / W projection / residual -----
    TQ = min(256, _round_up(N, 8))
    Np = _round_up(N, TQ)
    x_pad = x_nlc if Np == N else jnp.pad(x_nlc,
                                          ((0, 0), (0, Np - N), (0, 0)))

    k2_step_bytes = (2 * TQ * C * 4 * 2                 # x tile + out tile f32
                     + 2 * (E * Ns * 2) * 2             # phiT + g (x2 buf)
                     + 2 * C * E * 2 + (E + C) * 4      # weights (single buf)
                     + TQ * Ns * 4 * 2                  # S / exp temporaries
                     + TQ * (E + C) * 4)                # theta / z temporaries
    k2_cost = pl.CostEstimate(
        flops=int(2 * B * Np * (2 * C * E + 2 * E * Ns)),
        transcendentals=int(B * Np * Ns),
        bytes_accessed=int(2 * B * Np * C * 4 + 2 * B * Ns * E * 2
                           + 2 * C * E * 2))

    out = pl.pallas_call(
        _nonlocal_kernel,
        out_shape=jax.ShapeDtypeStruct((B, Np, C), f32),
        grid=(B, Np // TQ),
        in_specs=[
            pl.BlockSpec((1, TQ, C), lambda b, q: (b, q, 0)),
            pl.BlockSpec((C, E), lambda b, q: (0, 0),
                         pipeline_mode=pl.Buffered(1)),
            pl.BlockSpec((1, E), lambda b, q: (0, 0),
                         pipeline_mode=pl.Buffered(1)),
            pl.BlockSpec((1, E, Ns), lambda b, q: (b, 0, 0)),
            pl.BlockSpec((1, Ns, E), lambda b, q: (b, 0, 0)),
            pl.BlockSpec((E, C), lambda b, q: (0, 0),
                         pipeline_mode=pl.Buffered(1)),
            pl.BlockSpec((1, C), lambda b, q: (0, 0),
                         pipeline_mode=pl.Buffered(1)),
        ],
        out_specs=pl.BlockSpec((1, TQ, C), lambda b, q: (b, q, 0)),
        compiler_params=pltpu.CompilerParams(
            dimension_semantics=("parallel", "parallel"),
            vmem_limit_bytes=_vmem_limit(k2_step_bytes)),
        cost_estimate=k2_cost,
    )(x_pad, w_theta, b_theta, phi_t, g, w_w, shift_w)

    out = out[:, :N, :]
    # (B, N, C) -> NCTHW
    return jnp.transpose(out.reshape(B, T, H, W, C), (0, 4, 1, 2, 3))


nonlocal_forward = jax.jit(_nonlocal_forward_impl)


# ------------------------ parameters & JAX reference -------------------------

def init_params(key, in_channels, embed_dim=None):
    """kaiming_normal(fan_out, relu) conv weights (stored (Cin, Cout) for the
    GEMM layout), small random biases, default BatchNorm stats (eval mode)."""
    E = embed_dim if embed_dim is not None else in_channels // 2
    ks = jax.random.split(key, 8)

    def conv1x1(k, cin, cout):
        std = (2.0 / cout) ** 0.5          # fan_out of a 1x1x1 conv == cout
        return jax.random.normal(k, (cin, cout), jnp.float32) * std

    return dict(
        w_theta=conv1x1(ks[0], in_channels, E),
        b_theta=0.1 * jax.random.normal(ks[1], (E,), jnp.float32),
        w_phi=conv1x1(ks[2], in_channels, E),
        b_phi=0.1 * jax.random.normal(ks[3], (E,), jnp.float32),
        w_g=conv1x1(ks[4], in_channels, E),
        b_g=0.1 * jax.random.normal(ks[5], (E,), jnp.float32),
        w_W=conv1x1(ks[6], E, in_channels),
        b_W=0.1 * jax.random.normal(ks[7], (in_channels,), jnp.float32),
        bn_gamma=jnp.ones((in_channels,), jnp.float32),
        bn_beta=jnp.zeros((in_channels,), jnp.float32),
        bn_mean=jnp.zeros((in_channels,), jnp.float32),
        bn_var=jnp.ones((in_channels,), jnp.float32),
    )


def nonlocal_reference(params, x_ncthw):
    """Plain-JAX reference mirroring the kernel math (incl. bf16 casts and
    exact softmax division)."""
    bf16 = jnp.bfloat16
    B, C, T, H, W = x_ncthw.shape
    xv = jnp.transpose(x_ncthw, (0, 2, 3, 4, 1))
    x2 = xv.reshape(B, T * H * W, C)
    Hs, Ws = H // 2, W // 2
    xs = jnp.maximum(
        jnp.maximum(xv[:, :, 0:2 * Hs:2, 0:2 * Ws:2, :],
                    xv[:, :, 0:2 * Hs:2, 1:2 * Ws:2, :]),
        jnp.maximum(xv[:, :, 1:2 * Hs:2, 0:2 * Ws:2, :],
                    xv[:, :, 1:2 * Hs:2, 1:2 * Ws:2, :]))
    xs2 = xs.reshape(B, T * Hs * Ws, C).astype(bf16)

    scale = params['bn_gamma'] / jnp.sqrt(params['bn_var'] + BN_EPS)
    w_w = (params['w_W'] * scale[None, :]).astype(bf16)
    shift_w = (params['b_W'] - params['bn_mean']) * scale + params['bn_beta']

    theta = jnp.einsum('bnc,ce->bne', x2.astype(bf16),
                       params['w_theta'].astype(bf16),
                       preferred_element_type=jnp.float32) + params['b_theta']
    phi = (jnp.einsum('bmc,ce->bme', xs2, params['w_phi'].astype(bf16),
                      preferred_element_type=jnp.float32)
           + params['b_phi']).astype(bf16)
    g = (jnp.einsum('bmc,ce->bme', xs2, params['w_g'].astype(bf16),
                    preferred_element_type=jnp.float32)
         + params['b_g']).astype(bf16)

    s = jnp.einsum('bne,bme->bnm', theta.astype(bf16), phi,
                   preferred_element_type=jnp.float32)
    s = s - jnp.max(s, axis=-1, keepdims=True)
    e = jnp.exp(s)
    p = e / jnp.sum(e, axis=-1, keepdims=True)

    y = jnp.einsum('bnm,bme->bne', p.astype(bf16), g,
                   preferred_element_type=jnp.float32)
    z = jnp.einsum('bne,ec->bnc', y.astype(bf16), w_w,
                   preferred_element_type=jnp.float32) + shift_w
    out = z + x2
    return jnp.transpose(out.reshape(B, T, H, W, C), (0, 4, 1, 2, 3))


# ---------------------------------- main -------------------------------------

if __name__ == "__main__":
    key = jax.random.PRNGKey(0)
    pkey, xkey = jax.random.split(key)

    # Small but lane-friendly shapes: B=2, C=128 (embed_dim=64), T=4, H=W=16
    # -> N=1024 (4 query tiles of 256), Ns=256.  Moderate input amplitude so
    # the softmax is not a near-one-hot error amplifier for the bf16 GEMMs.
    B, C, T, H, W = 2, 128, 4, 16, 16
    params = init_params(pkey, in_channels=C)
    x = 0.25 * jax.random.normal(xkey, (B, C, T, H, W), jnp.float32)  # NCTHW

    out = nonlocal_forward(params, x)
    out = jax.block_until_ready(out)

    assert out.shape == (B, C, T, H, W), out.shape
    assert bool(jnp.all(jnp.isfinite(out)))

    ref = nonlocal_reference(params, x)
    max_err = float(jnp.max(jnp.abs(out - ref)))
    assert max_err < 3e-2, f"max abs error vs reference: {max_err}"

    print("KERNEL_OK")
</pallas_src>

<mosaic_0001>
module attributes {stable_mosaic.version = 11 : i64} {
  func.func @_nonlocal_kernel(%arg0: i32, %arg1: i32, %arg2: memref<1x256x128xf32, #tpu.memory_space<vmem>>, %arg3: memref<128x64xbf16, #tpu.memory_space<vmem>>, %arg4: memref<1x64xf32, #tpu.memory_space<vmem>>, %arg5: memref<1x64x256xbf16, #tpu.memory_space<vmem>>, %arg6: memref<1x256x64xbf16, #tpu.memory_space<vmem>>, %arg7: memref<64x128xbf16, #tpu.memory_space<vmem>>, %arg8: memref<1x128xf32, #tpu.memory_space<vmem>>, %arg9: memref<1x256x128xf32, #tpu.memory_space<vmem>>) attributes {dimension_semantics = [#tpu.dimension_semantics<parallel>, #tpu.dimension_semantics<parallel>], iteration_bounds = array<i64: 2, 4>, scalar_prefetch = 0 : i64, scratch_operands = 0 : i64, tpu.core_type = #tpu.core_type<tc>, window_params = [{transform_indices = @transform_0, window_bounds = array<i64: 1, 256, 128>}, {pipeline_mode = #tpu.pipeline_mode<synchronous>, transform_indices = @transform_1, window_bounds = array<i64: 128, 64>}, {pipeline_mode = #tpu.pipeline_mode<synchronous>, transform_indices = @transform_2, window_bounds = array<i64: 1, 64>}, {transform_indices = @transform_3, window_bounds = array<i64: 1, 64, 256>}, {transform_indices = @transform_4, window_bounds = array<i64: 1, 256, 64>}, {pipeline_mode = #tpu.pipeline_mode<synchronous>, transform_indices = @transform_5, window_bounds = array<i64: 64, 128>}, {pipeline_mode = #tpu.pipeline_mode<synchronous>, transform_indices = @transform_6, window_bounds = array<i64: 1, 128>}, {transform_indices = @transform_7, window_bounds = array<i64: 1, 256, 128>}]} {
    %c0 = arith.constant 0 : index
    %c0_0 = arith.constant 0 : index
    %c0_1 = arith.constant 0 : index
    %0 = vector.load %arg2[%c0, %c0_0, %c0_1] : memref<1x256x128xf32, #tpu.memory_space<vmem>>, vector<1x256x128xf32>
    %1 = vector.shape_cast %0 : vector<1x256x128xf32> to vector<256x128xf32>
    %2 = arith.truncf %1 : vector<256x128xf32> to vector<256x128xbf16>
    %c0_2 = arith.constant 0 : index
    %c0_3 = arith.constant 0 : index
    %3 = vector.load %arg3[%c0_2, %c0_3] : memref<128x64xbf16, #tpu.memory_space<vmem>>, vector<128x64xbf16>
    %cst = arith.constant dense<0.000000e+00> : vector<256x64xf32>
    %4 = tpu.matmul %2, %3, %cst {dimension_numbers = #tpu.dot_dimension_numbers<[1], [0], [0], [1], [0, 0, 1, 1], [], []>} : vector<256x128xbf16>, vector<128x64xbf16>, vector<256x64xf32> -> vector<256x64xf32>
    %c0_4 = arith.constant 0 : index
    %c0_5 = arith.constant 0 : index
    %5 = vector.load %arg4[%c0_4, %c0_5] : memref<1x64xf32, #tpu.memory_space<vmem>>, vector<1x64xf32>
    %6 = vector.broadcast %5 : vector<1x64xf32> to vector<256x64xf32>
    %7 = arith.addf %4, %6 : vector<256x64xf32>
    %8 = arith.truncf %7 : vector<256x64xf32> to vector<256x64xbf16>
    %c0_6 = arith.constant 0 : index
    %c0_7 = arith.constant 0 : index
    %c0_8 = arith.constant 0 : index
    %9 = vector.load %arg5[%c0_6, %c0_7, %c0_8] : memref<1x64x256xbf16, #tpu.memory_space<vmem>>, vector<1x64x256xbf16>
    %10 = vector.shape_cast %9 : vector<1x64x256xbf16> to vector<64x256xbf16>
    %cst_9 = arith.constant dense<0.000000e+00> : vector<256x256xf32>
    %11 = tpu.matmul %8, %10, %cst_9 {dimension_numbers = #tpu.dot_dimension_numbers<[1], [0], [0], [1], [0, 0, 1, 1], [], []>} : vector<256x64xbf16>, vector<64x256xbf16>, vector<256x256xf32> -> vector<256x256xf32>
    %cst_10 = arith.constant dense<0xFF800000> : vector<256xf32>
    %12 = vector.multi_reduction <maximumf>, %11, %cst_10 [1] : vector<256x256xf32> to vector<256xf32>
    %13 = vector.shape_cast %12 : vector<256xf32> to vector<256x1xf32>
    %14 = vector.broadcast %13 : vector<256x1xf32> to vector<256x256xf32>
    %15 = arith.subf %11, %14 : vector<256x256xf32>
    %16 = math.exp %15 : vector<256x256xf32>
    %cst_11 = arith.constant dense<0.000000e+00> : vector<256xf32>
    %17 = vector.multi_reduction <add>, %16, %cst_11 [1] : vector<256x256xf32> to vector<256xf32>
    %18 = vector.shape_cast %17 : vector<256xf32> to vector<256x1xf32>
    %19 = vector.broadcast %18 : vector<256x1xf32> to vector<256x256xf32>
    %20 = arith.divf %16, %19 : vector<256x256xf32>
    %21 = arith.truncf %20 : vector<256x256xf32> to vector<256x256xbf16>
    %c0_12 = arith.constant 0 : index
    %c0_13 = arith.constant 0 : index
    %c0_14 = arith.constant 0 : index
    %22 = vector.load %arg6[%c0_12, %c0_13, %c0_14] : memref<1x256x64xbf16, #tpu.memory_space<vmem>>, vector<1x256x64xbf16>
    %23 = vector.shape_cast %22 : vector<1x256x64xbf16> to vector<256x64xbf16>
    %cst_15 = arith.constant dense<0.000000e+00> : vector<256x64xf32>
    %24 = tpu.matmul %21, %23, %cst_15 {dimension_numbers = #tpu.dot_dimension_numbers<[1], [0], [0], [1], [0, 0, 1, 1], [], []>} : vector<256x256xbf16>, vector<256x64xbf16>, vector<256x64xf32> -> vector<256x64xf32>
    %25 = arith.truncf %24 : vector<256x64xf32> to vector<256x64xbf16>
    %c0_16 = arith.constant 0 : index
    %c0_17 = arith.constant 0 : index
    %26 = vector.load %arg7[%c0_16, %c0_17] : memref<64x128xbf16, #tpu.memory_space<vmem>>, vector<64x128xbf16>
    %cst_18 = arith.constant dense<0.000000e+00> : vector<256x128xf32>
    %27 = tpu.matmul %25, %26, %cst_18 {dimension_numbers = #tpu.dot_dimension_numbers<[1], [0], [0], [1], [0, 0, 1, 1], [], []>} : vector<256x64xbf16>, vector<64x128xbf16>, vector<256x128xf32> -> vector<256x128xf32>
    %c0_19 = arith.constant 0 : index
    %c0_20 = arith.constant 0 : index
    %28 = vector.load %arg8[%c0_19, %c0_20] : memref<1x128xf32, #tpu.memory_space<vmem>>, vector<1x128xf32>
    %29 = vector.broadcast %28 : vector<1x128xf32> to vector<256x128xf32>
    %30 = arith.addf %27, %29 : vector<256x128xf32>
    %31 = arith.addf %30, %1 : vector<256x128xf32>
    %c0_21 = arith.constant 0 : index
    %c0_22 = arith.constant 0 : index
    %c0_23 = arith.constant 0 : index
    %32 = vector.load %arg9[%c0_21, %c0_22, %c0_23] : memref<1x256x128xf32, #tpu.memory_space<vmem>>, vector<1x256x128xf32>
    %33 = vector.shape_cast %32 : vector<1x256x128xf32> to vector<256x128xf32>
    %34 = vector.shape_cast %31 : vector<256x128xf32> to vector<1x256x128xf32>
    tpu.vector_store %arg9[%c0_21, %c0_22, %c0_23], %34 {strides = array<i32>} : memref<1x256x128xf32, #tpu.memory_space<vmem>>, vector<1x256x128xf32>,
    return
  }
  func.func @transform_0(%arg0: i32, %arg1: i32) -> (i32, i32, i32) {
    %c0_i32 = arith.constant 0 : i32
    %c0_i32_0 = arith.constant 0 : i32
    return %arg0, %arg1, %c0_i32 : i32, i32, i32
  }
  func.func @transform_1(%arg0: i32, %arg1: i32) -> (i32, i32) {
    %c0_i32 = arith.constant 0 : i32
    %c0_i32_0 = arith.constant 0 : i32
    %c0_i32_1 = arith.constant 0 : i32
    return %c0_i32, %c0_i32_0 : i32, i32
  }
  func.func @transform_2(%arg0: i32, %arg1: i32) -> (i32, i32) {
    %c0_i32 = arith.constant 0 : i32
    %c0_i32_0 = arith.constant 0 : i32
    %c0_i32_1 = arith.constant 0 : i32
    return %c0_i32, %c0_i32_0 : i32, i32
  }
  func.func @transform_3(%arg0: i32, %arg1: i32) -> (i32, i32, i32) {
    %c0_i32 = arith.constant 0 : i32
    %c0_i32_0 = arith.constant 0 : i32
    %c0_i32_1 = arith.constant 0 : i32
    return %arg0, %c0_i32, %c0_i32_0 : i32, i32, i32
  }
  func.func @transform_4(%arg0: i32, %arg1: i32) -> (i32, i32, i32) {
    %c0_i32 = arith.constant 0 : i32
    %c0_i32_0 = arith.constant 0 : i32
    %c0_i32_1 = arith.constant 0 : i32
    return %arg0, %c0_i32, %c0_i32_0 : i32, i32, i32
  }
  func.func @transform_5(%arg0: i32, %arg1: i32) -> (i32, i32) {
    %c0_i32 = arith.constant 0 : i32
    %c0_i32_0 = arith.constant 0 : i32
    %c0_i32_1 = arith.constant 0 : i32
    return %c0_i32, %c0_i32_0 : i32, i32
  }
  func.func @transform_6(%arg0: i32, %arg1: i32) -> (i32, i32) {
    %c0_i32 = arith.constant 0 : i32
    %c0_i32_0 = arith.constant 0 : i32
    %c0_i32_1 = arith.constant 0 : i32
    return %c0_i32, %c0_i32_0 : i32, i32
  }
  func.func @transform_7(%arg0: i32, %arg1: i32) -> (i32, i32, i32) {
    %c0_i32 = arith.constant 0 : i32
    %c0_i32_0 = arith.constant 0 : i32
    return %arg0, %arg1, %c0_i32 : i32, i32, i32
  }
}

module attributes {stable_mosaic.version = 11 : i64} {
  func.func @_phi_g_kernel(%arg0: i32, %arg1: i32, %arg2: memref<1x256x128xbf16, #tpu.memory_space<vmem>>, %arg3: memref<128x128xbf16, #tpu.memory_space<vmem>>, %arg4: memref<1x128xf32, #tpu.memory_space<vmem>>, %arg5: memref<1x64x256xbf16, #tpu.memory_space<vmem>>, %arg6: memref<1x256x64xbf16, #tpu.memory_space<vmem>>) attributes {dimension_semantics = [#tpu.dimension_semantics<parallel>, #tpu.dimension_semantics<parallel>], iteration_bounds = array<i64: 2, 1>, scalar_prefetch = 0 : i64, scratch_operands = 0 : i64, tpu.core_type = #tpu.core_type<tc>, window_params = [{transform_indices = @transform_0, window_bounds = array<i64: 1, 256, 128>}, {pipeline_mode = #tpu.pipeline_mode<synchronous>, transform_indices = @transform_1, window_bounds = array<i64: 128, 128>}, {pipeline_mode = #tpu.pipeline_mode<synchronous>, transform_indices = @transform_2, window_bounds = array<i64: 1, 128>}, {transform_indices = @transform_3, window_bounds = array<i64: 1, 64, 256>}, {transform_indices = @transform_4, window_bounds = array<i64: 1, 256, 64>}]} {
    %c0 = arith.constant 0 : index
    %c0_0 = arith.constant 0 : index
    %c0_1 = arith.constant 0 : index
    %0 = vector.load %arg2[%c0, %c0_0, %c0_1] : memref<1x256x128xbf16, #tpu.memory_space<vmem>>, vector<1x256x128xbf16>
    %1 = vector.shape_cast %0 : vector<1x256x128xbf16> to vector<256x128xbf16>
    %c0_2 = arith.constant 0 : index
    %c0_3 = arith.constant 0 : index
    %2 = vector.load %arg3[%c0_2, %c0_3] : memref<128x128xbf16, #tpu.memory_space<vmem>>, vector<128x128xbf16>
    %cst = arith.constant dense<0.000000e+00> : vector<256x128xf32>
    %3 = tpu.matmul %1, %2, %cst {dimension_numbers = #tpu.dot_dimension_numbers<[1], [0], [0], [1], [0, 0, 1, 1], [], []>} : vector<256x128xbf16>, vector<128x128xbf16>, vector<256x128xf32> -> vector<256x128xf32>
    %c0_4 = arith.constant 0 : index
    %c0_5 = arith.constant 0 : index
    %4 = vector.load %arg4[%c0_4, %c0_5] : memref<1x128xf32, #tpu.memory_space<vmem>>, vector<1x128xf32>
    %5 = vector.broadcast %4 : vector<1x128xf32> to vector<256x128xf32>
    %6 = arith.addf %3, %5 : vector<256x128xf32>
    %7 = vector.extract_strided_slice %6 {offsets = [0, 0], sizes = [256, 64], strides = [1, 1]} : vector<256x128xf32> to vector<256x64xf32>
    %8 = tpu.transpose %7, [1, 0] : vector<256x64xf32> -> vector<64x256xf32>
    %9 = arith.truncf %8 : vector<64x256xf32> to vector<64x256xbf16>
    %c0_6 = arith.constant 0 : index
    %c0_7 = arith.constant 0 : index
    %c0_8 = arith.constant 0 : index
    %10 = vector.load %arg5[%c0_6, %c0_7, %c0_8] : memref<1x64x256xbf16, #tpu.memory_space<vmem>>, vector<1x64x256xbf16>
    %11 = vector.shape_cast %10 : vector<1x64x256xbf16> to vector<64x256xbf16>
    %12 = vector.shape_cast %9 : vector<64x256xbf16> to vector<1x64x256xbf16>
    tpu.vector_store %arg5[%c0_6, %c0_7, %c0_8], %12 {strides = array<i32>} : memref<1x64x256xbf16, #tpu.memory_space<vmem>>, vector<1x64x256xbf16>,
    %13 = vector.extract_strided_slice %6 {offsets = [0, 64], sizes = [256, 64], strides = [1, 1]} : vector<256x128xf32> to vector<256x64xf32>
    %14 = arith.truncf %13 : vector<256x64xf32> to vector<256x64xbf16>
    %c0_9 = arith.constant 0 : index
    %c0_10 = arith.constant 0 : index
    %c0_11 = arith.constant 0 : index
    %15 = vector.load %arg6[%c0_9, %c0_10, %c0_11] : memref<1x256x64xbf16, #tpu.memory_space<vmem>>, vector<1x256x64xbf16>
    %16 = vector.shape_cast %15 : vector<1x256x64xbf16> to vector<256x64xbf16>
    %17 = vector.shape_cast %14 : vector<256x64xbf16> to vector<1x256x64xbf16>
    tpu.vector_store %arg6[%c0_9, %c0_10, %c0_11], %17 {strides = array<i32>} : memref<1x256x64xbf16, #tpu.memory_space<vmem>>, vector<1x256x64xbf16>,
    return
  }
  func.func @transform_0(%arg0: i32, %arg1: i32) -> (i32, i32, i32) {
    %c0_i32 = arith.constant 0 : i32
    %c0_i32_0 = arith.constant 0 : i32
    return %arg0, %arg1, %c0_i32 : i32, i32, i32
  }
  func.func @transform_1(%arg0: i32, %arg1: i32) -> (i32, i32) {
    %c0_i32 = arith.constant 0 : i32
    %c0_i32_0 = arith.constant 0 : i32
    %c0_i32_1 = arith.constant 0 : i32
    return %c0_i32, %c0_i32_0 : i32, i32
  }
  func.func @transform_2(%arg0: i32, %arg1: i32) -> (i32, i32) {
    %c0_i32 = arith.constant 0 : i32
    %c0_i32_0 = arith.constant 0 : i32
    %c0_i32_1 = arith.constant 0 : i32
    return %c0_i32, %c0_i32_0 : i32, i32
  }
  func.func @transform_3(%arg0: i32, %arg1: i32) -> (i32, i32, i32) {
    %c0_i32 = arith.constant 0 : i32
    %c0_i32_0 = arith.constant 0 : i32
    return %arg0, %c0_i32, %arg1 : i32, i32, i32
  }
  func.func @transform_4(%arg0: i32, %arg1: i32) -> (i32, i32, i32) {
    %c0_i32 = arith.constant 0 : i32
    %c0_i32_0 = arith.constant 0 : i32
    return %arg0, %arg1, %c0_i32 : i32, i32, i32
  }
}

</mosaic_0001>

<bundles_post_ra>
// kernel: _nonlocal_forward_impl.2
= control target key start
LH: loop header
LB: loop body
LE: loop exit
PB: predicated region body
PF: predicated region fallthrough
CT: control target
= control target key end

     0   :  { %s1264_s15 = smov 0   ;;  %s1266_s16 = smov 0   ;;  %s1539_s0 = inlined_call_operand.vmem [shape: bf16[2,256,128], index: 0, kind: input, shape index: {}]   ;;  %s1540_s1 = inlined_call_operand.vmem [shape: bf16[128,128], index: 1, kind: input, shape index: {}]   ;;  %s1541_s2 = inlined_call_operand.vmem [shape: f32[1,128], index: 2, kind: input, shape index: {}]   ;;  %s1542_s3 = inlined_call_operand.vmem [shape: bf16[2,64,256], index: 3, kind: output, shape index: {0}]   ;;  %s1543_s4 = inlined_call_operand.vmem [shape: bf16[2,256,64], index: 4, kind: output, shape index: {1}]  }
   0x1   :  { %s1268_s17 = smov 0  }
   0x2 LB: > { %s27_s18 = sadd.s32 1, %s1232_s16  ;;  %p960_p0 = scmp.ge.s32.totalorder %s1236_s17, 1  ;;  %s1236_s17 = sphi %s1268_s17, %s15_s17   ;;  %s1232_s16 = sphi %s1266_s16, %s1545_s16   ;;  %s1228_s15 = sphi %s1264_s15, %s1544_s15  }
   0x3   : > { %p29_p1 = scmp.ge.s32.totalorder %s27_s18, 2  ;;  %p188_p2 = scmp.lt.s32.totalorder %s1236_s17, 3 }
   0x5   : > { %s1547_s18 = smov (%p29_p1, %s27_s18), 0  ;;  %p189_p3 = pnand %p960_p0, %p188_p2 }
   0x6   : > { %p232_p4 = scmp.lt.s32.totalorder (!%p189_p3), %s1228_s15, 1  ;;  %s1238_s19 = smov (!%p189_p3), 64  }
   0x7   : > { %192 = sbr.rel (%p189_p3) target bundleno = 410 (0x19a), region = 32 }
   0xc   : > { %v1091_v0 = vld [vmem:[%s1540_s1 + $0x38] sm:$0xff]  ;;  %v1090_v1 = vld [vmem:[%s1540_s1 + $0x30] sm:$0xff]  ;;  %v1089_v2 = vld [vmem:[%s1540_s1 + $0x28] sm:$0xff]  ;;  %s1549_s15 = smov (!%p232_p4, %s1228_s15), 1  ;;  %vm786_vm0 = vcmask 519168  }
   0xd   : > { %457 = vmatpush.bf16.msra.mxu0 %v1091_v0  ;;  %1092 = vmatpush.bf16.msra.mxu1 %v1091_v0  ;;  %v1088_v3 = vld [vmem:[%s1540_s1 + $0x20] sm:$0xff]  ;;  %v1087_v4 = vld [vmem:[%s1540_s1 + $0x18] sm:$0xff]  ;;  %v1086_v5 = vld [vmem:[%s1540_s1 + $0x10] sm:$0xff]  ;;  %s1065_s7 = sshll.u32 %s1549_s15, 7  ;;  %s1066_s23 = sshll.u32 %s1549_s15, 6 }
   0xe   : > { %1093 = vmatpush.bf16.msra.mxu2 %v1091_v0  ;;  %1094 = vmatpush.bf16.msra.mxu3 %v1091_v0  ;;  %v1085_v6 = vld [vmem:[%s1540_s1 + $0x8] sm:$0xff]  ;;  %v1084_v7 = vld [vmem:[%s1540_s1] sm:$0xff]  ;;  %s1318_s12 = scalar_lea.vmem %s1539_s0, %s1065_s7  ;;  %s1436_s22 = scalar_lea.vmem %s1543_s4, %s1065_s7 }
   0xf   : > { %v1068_v8 = vld [vmem:[%s1318_s12] sm:$0xff]  ;;  %v1069_v12 = vld [vmem:[%s1318_s12 + $0x8] sm:$0xff]  ;;  %v1070_v16 = vld [vmem:[%s1318_s12 + $0x10] sm:$0xff]  ;;  %s1492_s26 = scalar_lea.vmem %s1542_s3, %s1066_s23 }
  0x10   : > { %v1072_v9 = vld [vmem:[%s1318_s12 + $0x20] sm:$0xff]  ;;  %v1073_v13 = vld [vmem:[%s1318_s12 + $0x28] sm:$0xff]  ;;  %v1074_v17 = vld [vmem:[%s1318_s12 + $0x30] sm:$0xff] }
  0x11   : > { %458 = vmatpush.bf16.msra.mxu0 %v1090_v1  ;;  %1095 = vmatpush.bf16.msra.mxu1 %v1090_v1  ;;  %v1076_v10 = vld [vmem:[%s1318_s12 + $0x40] sm:$0xff]  ;;  %v1077_v14 = vld [vmem:[%s1318_s12 + $0x48] sm:$0xff]  ;;  %v1078_v18 = vld [vmem:[%s1318_s12 + $0x50] sm:$0xff] }
  0x12   : > { %1096 = vmatpush.bf16.msra.mxu2 %v1090_v1  ;;  %1097 = vmatpush.bf16.msra.mxu3 %v1090_v1  ;;  %v1080_v11 = vld [vmem:[%s1318_s12 + $0x60] sm:$0xff]  ;;  %v1081_v15 = vld [vmem:[%s1318_s12 + $0x68] sm:$0xff]  ;;  %v1082_v19 = vld [vmem:[%s1318_s12 + $0x70] sm:$0xff] }
  0x13   : > { %v1071_v20 = vld [vmem:[%s1318_s12 + $0x18] sm:$0xff]  ;;  %v1339_v24 = vld [vmem:[%s1541_s2] ss:$0 sm:$0xff] }
  0x14   : > { %v1075_v21 = vld [vmem:[%s1318_s12 + $0x38] sm:$0xff] }
  0x15   : > { %459 = vmatpush.bf16.msra.mxu0 %v1089_v2  ;;  %1098 = vmatpush.bf16.msra.mxu1 %v1089_v2  ;;  %v1079_v22 = vld [vmem:[%s1318_s12 + $0x58] sm:$0xff] }
  0x16   : > { %1099 = vmatpush.bf16.msra.mxu2 %v1089_v2  ;;  %1100 = vmatpush.bf16.msra.mxu3 %v1089_v2  ;;  %v1083_v23 = vld [vmem:[%s1318_s12 + $0x78] sm:$0xff] }
  0x19   : > { %460 = vmatpush.bf16.msra.mxu0 %v1088_v3  ;;  %1101 = vmatpush.bf16.msra.mxu1 %v1088_v3 }
  0x1a   : > { %1102 = vmatpush.bf16.msra.mxu2 %v1088_v3  ;;  %1103 = vmatpush.bf16.msra.mxu3 %v1088_v3 }
  0x1d   : > { %461 = vmatpush.bf16.msra.mxu0 %v1087_v4  ;;  %1104 = vmatpush.bf16.msra.mxu1 %v1087_v4 }
  0x1e   : > { %1105 = vmatpush.bf16.msra.mxu2 %v1087_v4  ;;  %1106 = vmatpush.bf16.msra.mxu3 %v1087_v4 }
  0x21   : > { %462 = vmatpush.bf16.msra.mxu0 %v1086_v5  ;;  %1107 = vmatpush.bf16.msra.mxu1 %v1086_v5 }
  0x22   : > { %1108 = vmatpush.bf16.msra.mxu2 %v1086_v5  ;;  %1109 = vmatpush.bf16.msra.mxu3 %v1086_v5 }
  0x25   : > { %463 = vmatpush.bf16.msra.mxu0 %v1085_v6  ;;  %1110 = vmatpush.bf16.msra.mxu1 %v1085_v6 }
  0x26   : > { %1111 = vmatpush.bf16.msra.mxu2 %v1085_v6  ;;  %1112 = vmatpush.bf16.msra.mxu3 %v1085_v6 }
  0x29   : > { %464 = vmatpush.bf16.msra.mxu0 %v1084_v7  ;;  %1113 = vmatpush.bf16.msra.mxu1 %v1084_v7 }
  0x2a   : > { %1114 = vmatpush.bf16.msra.mxu2 %v1084_v7  ;;  %1115 = vmatpush.bf16.msra.mxu3 %v1084_v7 }
  0x2c   : > { %465 = vmatmul.bf16.vlgmr.msra.gmra.mxu0 %v1068_v8  ;;  %485 = vmatmul.bf16.vlgmr.msra.gmra.mxu1 %v1072_v9 }
  0x2d   : > { %505 = vmatmul.bf16.vlgmr.msra.gmra.mxu2 %v1076_v10  ;;  %525 = vmatmul.bf16.vlgmr.msra.gmra.mxu3 %v1080_v11 }
  0x3c   : > { %470 = vmatmul.bf16.gmra.mxu0 %v1069_v12  ;;  %490 = vmatmul.bf16.gmra.mxu1 %v1073_v13 }
  0x3d   : > { %510 = vmatmul.bf16.gmra.mxu2 %v1077_v14  ;;  %530 = vmatmul.bf16.gmra.mxu3 %v1081_v15 }
  0x4c   : > { %475 = vmatmul.bf16.gmra.mxu0 %v1070_v16  ;;  %495 = vmatmul.bf16.gmra.mxu1 %v1074_v17 }
  0x4d   : > { %515 = vmatmul.bf16.gmra.mxu2 %v1078_v18  ;;  %535 = vmatmul.bf16.gmra.mxu3 %v1082_v19 }
  0x5c   : > { %480 = vmatmul.bf16.gmra.mxu0 %v1071_v20  ;;  %500 = vmatmul.bf16.gmra.mxu1 %v1075_v21 }
  0x5d   : > { %520 = vmatmul.bf16.gmra.mxu2 %v1079_v22  ;;  %540 = vmatmul.bf16.gmra.mxu3 %v1083_v23 }
  0xa9   : > { %v466_v25 = vpop.f32.mrf.mxu0  ;;  %v486_v26 = vpop.f32.mrf.mxu1 }
  0xaa   : > { %v467_v27 = vadd.f32 %v1339_v24, %v466_v25  ;;  %v1343_v29 = vadd.f32 %v1339_v24, %v486_v26 }
  0xac   : > { %v626_v28 = vpack.c.bf16 %v467_v27, %v467_v27  ;;  %v634_v34 = vpack.c.bf16 %v1343_v29, %v1343_v29 }
  0xae   : > { %690 = vrot.lane.b32.xlu1 %v626_v28, %s1238_s19 }
  0xb0   : > { %v506_v30 = vpop.f32.mrf.mxu2  ;;  %v526_v36 = vpop.f32.mrf.mxu3 }
  0xb1   : > { %v507_v31 = vadd.f32 %v1339_v24, %v506_v30  ;;  %v468_v32 = vpop.f32.mrf.mxu0  ;;  %v488_v33 = vpop.f32.mrf.mxu1  ;;  %v1362_v48 = vadd.f32 %v1339_v24, %v526_v36 }
  0xb2   : > { %v1350_v35 = vadd.f32 %v1339_v24, %v488_v33  ;;  %v469_v40 = vadd.f32 %v1339_v24, %v468_v32 }
  0xb3   : > { %v1141_v37 = vpack.i.bf16 %v507_v31, %v467_v27  ;;  %v642_v44 = vpack.c.bf16 %v507_v31, %v507_v31  ;;  %v650_v53 = vpack.c.bf16 %v1362_v48, %v1362_v48 }
  0xb4   : > { %v635_v38 = vpack.c.bf16 %v1350_v35, %v1350_v35  ;;  %v627_v62 = vpack.c.bf16 %v469_v40, %v469_v40 }
  0xb5   : > { %1142 = vxpose.xlu0.b32.start [1/16] (narrow) %v1141_v37, 64 }
  0xb6   : > { %708 = vrot.lane.b32.xlu2 %v635_v38, %s1238_s19  ;;  %706 = vrot.lane.b32.xlu1 %v634_v34, %s1238_s19 }
  0xb8   : > { %v508_v39 = vpop.f32.mrf.mxu2  ;;  %v528_v46 = vpop.f32.mrf.mxu3 }
  0xb9   : > { %v509_v41 = vadd.f32 %v1339_v24, %v508_v39  ;;  %v471_v42 = vpop.f32.mrf.mxu0  ;;  %v1365_v49 = vadd.f32 %v1339_v24, %v528_v46  ;;  %v491_v60 = vpop.f32.mrf.mxu1 }
  0xba   : > { %v472_v47 = vadd.f32 %v1339_v24, %v471_v42  ;;  %v1377_v0 = vadd.f32 %v1339_v24, %v491_v60 }
  0xbb   : > { %v1143_v43 = vpack.i.bf16 %v509_v41, %v469_v40  ;;  %v643_v45 = vpack.c.bf16 %v509_v41, %v509_v41  ;;  %v651_v54 = vpack.c.bf16 %v1365_v49, %v1365_v49  ;;  %v1157_v40 = vpack.i.bf16 %v1362_v48, %v1343_v29 }
  0xbc   : > { %v628_v63 = vpack.c.bf16 %v472_v47, %v472_v47  ;;  %v636_v4 = vpack.c.bf16 %v1377_v0, %v1377_v0 }
  0xbd   : > { %1144 = vxpose.xlu0.b32.cont [2/16] (narrow) %v1143_v43, 64 }
  0xbe   : > { %724 = vrot.lane.b32.xlu2 %v643_v45, %s1238_s19  ;;  %722 = vrot.lane.b32.xlu1 %v642_v44, %s1238_s19  ;;  %v1159_v44 = vpack.i.bf16 %v1365_v49, %v1350_v35 }
  0xc0   : > { %v511_v50 = vpop.f32.mrf.mxu2  ;;  %v531_v17 = vpop.f32.mrf.mxu3 }
  0xc1   : > { %v512_v51 = vadd.f32 %v1339_v24, %v511_v50  ;;  %v473_v52 = vpop.f32.mrf.mxu0  ;;  %v493_v8 = vpop.f32.mrf.mxu1  ;;  %v532_v19 = vadd.f32 %v1339_v24, %v531_v17 }
  0xc2   : > { %v474_v57 = vadd.f32 %v1339_v24, %v473_v52  ;;  %v1388_v9 = vadd.f32 %v1339_v24, %v493_v8 }
  0xc3   : > { %v1145_v55 = vpack.i.bf16 %v512_v51, %v472_v47  ;;  %v644_v14 = vpack.c.bf16 %v512_v51, %v512_v51  ;;  %v652_v22 = vpack.c.bf16 %v532_v19, %v532_v19  ;;  %v1161_v50 = vpack.i.bf16 %v532_v19, %v1377_v0 }
  0xc4   : > { %v629_v7 = vpack.c.bf16 %v474_v57, %v474_v57  ;;  %v637_v15 = vpack.c.bf16 %v1388_v9, %v1388_v9 }
  0xc5   : > { %1146 = vxpose.xlu0.b32.cont [3/16] (narrow) %v1145_v55, 64 }
  0xc6   : > { %740 = vrot.lane.b32.xlu2 %v651_v54, %s1238_s19  ;;  %738 = vrot.lane.b32.xlu1 %v650_v53, %s1238_s19 }
  0xc8   : > { %v513_v56 = vpop.f32.mrf.mxu2  ;;  %v533_v27 = vpop.f32.mrf.mxu3 }
  0xc9   : > { %v514_v58 = vadd.f32 %v1339_v24, %v513_v56  ;;  %v476_v59 = vpop.f32.mrf.mxu0  ;;  %v534_v32 = vadd.f32 %v1339_v24, %v533_v27  ;;  %v496_v33 = vpop.f32.mrf.mxu1 }
  0xca   : > { %v477_v1 = vadd.f32 %v1339_v24, %v476_v59  ;;  %v497_v38 = vadd.f32 %v1339_v24, %v496_v33 }
  0xcb   : > { %v1147_v61 = vpack.i.bf16 %v514_v58, %v474_v57  ;;  %v645_v25 = vpack.c.bf16 %v514_v58, %v514_v58  ;;  %v653_v37 = vpack.c.bf16 %v534_v32, %v534_v32  ;;  %v1163_v53 = vpack.i.bf16 %v534_v32, %v1388_v9 }
  0xcc   : > { %v630_v36 = vpack.c.bf16 %v477_v1, %v477_v1  ;;  %v638_v39 = vpack.c.bf16 %v497_v38, %v497_v38 }
  0xcd   : > { %1148 = vxpose.xlu0.b32.cont [4/16] (narrow) %v1147_v61, 64 }
  0xce   : > { %694 = vrot.lane.b32.xlu2 %v628_v63, %s1238_s19  ;;  %692 = vrot.lane.b32.xlu1 %v627_v62, %s1238_s19 }
  0xd0   : > { %v516_v2 = vpop.f32.mrf.mxu2  ;;  %v536_v47 = vpop.f32.mrf.mxu3 }
  0xd1   : > { %v517_v3 = vadd.f32 %v1339_v24, %v516_v2  ;;  %v478_v5 = vpop.f32.mrf.mxu0  ;;  %v498_v42 = vpop.f32.mrf.mxu1  ;;  %v537_v29 = vadd.f32 %v1339_v24, %v536_v47 }
  0xd2   : > { %v479_v11 = vadd.f32 %v1339_v24, %v478_v5  ;;  %v499_v43 = vadd.f32 %v1339_v24, %v498_v42 }
  0xd3   : > { %v1149_v6 = vpack.i.bf16 %v517_v3, %v477_v1  ;;  %v646_v45 = vpack.c.bf16 %v517_v3, %v517_v3  ;;  %v654_v48 = vpack.c.bf16 %v537_v29, %v537_v29  ;;  %v1165_v59 = vpack.i.bf16 %v537_v29, %v497_v38 }
  0xd4   : > { %v631_v41 = vpack.c.bf16 %v479_v11, %v479_v11  ;;  %v639_v46 = vpack.c.bf16 %v499_v43, %v499_v43 }
  0xd5   : > { %1150 = vxpose.xlu0.b32.cont [5/16] (narrow) %v1149_v6, 64 }
  0xd6   : > { %696 = vrot.lane.b32.xlu2 %v629_v7, %s1238_s19  ;;  %710 = vrot.lane.b32.xlu1 %v636_v4, %s1238_s19 }
  0xd8   : > { %v518_v10 = vpop.f32.mrf.mxu2  ;;  %v538_v35 = vpop.f32.mrf.mxu3 }
  0xd9   : > { %v519_v12 = vadd.f32 %v1339_v24, %v518_v10  ;;  %v481_v16 = vpop.f32.mrf.mxu0  ;;  %v539_v49 = vadd.f32 %v1339_v24, %v538_v35  ;;  %v501_v52 = vpop.f32.mrf.mxu1 }
  0xda   : > { %v482_v18 = vadd.f32 %v1339_v24, %v481_v16  ;;  %v502_v56 = vadd.f32 %v1339_v24, %v501_v52 }
  0xdb   : > { %v1151_v13 = vpack.i.bf16 %v519_v12, %v479_v11  ;;  %v647_v51 = vpack.c.bf16 %v519_v12, %v519_v12  ;;  %v655_v55 = vpack.c.bf16 %v539_v49, %v539_v49  ;;  %v1167_v1 = vpack.i.bf16 %v539_v49, %v499_v43 }
  0xdc   : > { %v632_v54 = vpack.c.bf16 %v482_v18, %v482_v18  ;;  %v640_v58 = vpack.c.bf16 %v502_v56, %v502_v56 }
  0xdd   : > { %1152 = vxpose.xlu0.b32.cont [6/16] (narrow) %v1151_v13, 64 }
  0xde   : > { %712 = vrot.lane.b32.xlu2 %v637_v15, %s1238_s19  ;;  %726 = vrot.lane.b32.xlu1 %v644_v14, %s1238_s19 }
  0xe0   : > { %v521_v20 = vpop.f32.mrf.mxu2  ;;  %v541_v0 = vpop.f32.mrf.mxu3 }
  0xe1   : > { %v1399_v21 = vadd.f32 %v1339_v24, %v521_v20  ;;  %v483_v26 = vpop.f32.mrf.mxu0  ;;  %v503_v61 = vpop.f32.mrf.mxu1  ;;  %v542_v4 = vadd.f32 %v1339_v24, %v541_v0 }
  0xe2   : > { %v484_v30 = vadd.f32 %v1339_v24, %v483_v26  ;;  %v504_v62 = vadd.f32 %v1339_v24, %v503_v61 }
  0xe3   : > { %v1153_v23 = vpack.i.bf16 %v1399_v21, %v482_v18  ;;  %v648_v2 = vpack.c.bf16 %v1399_v21, %v1399_v21  ;;  %v656_v7 = vpack.c.bf16 %v542_v4, %v542_v4  ;;  %v1169_v8 = vpack.i.bf16 %v542_v4, %v502_v56 }
  0xe4   : > { %v633_v60 = vpack.c.bf16 %v484_v30, %v484_v30  ;;  %v641_v3 = vpack.c.bf16 %v504_v62, %v504_v62 }
  0xe5   : > { %1154 = vxpose.xlu0.b32.cont [7/16] (narrow) %v1153_v23, 64 }
  0xe6   : > { %728 = vrot.lane.b32.xlu2 %v645_v25, %s1238_s19  ;;  %742 = vrot.lane.b32.xlu1 %v652_v22, %s1238_s19 }
  0xe8   : > { %v523_v28 = vpop.f32.mrf.mxu2  ;;  %v543_v10 = vpop.f32.mrf.mxu3 }
  0xe9   : > { %v1406_v31 = vadd.f32 %v1339_v24, %v523_v28  ;;  %v544_v11 = vadd.f32 %v1339_v24, %v543_v10 }
  0xeb   : > { %v1155_v34 = vpack.i.bf16 %v1406_v31, %v484_v30  ;;  %v649_v9 = vpack.c.bf16 %v1406_v31, %v1406_v31  ;;  %v1171_v14 = vpack.i.bf16 %v544_v11, %v504_v62  ;;  %v657_v15 = vpack.c.bf16 %v544_v11, %v544_v11 }
  0xed   : > { %1156 = vxpose.xlu0.b32.cont [8/16] (narrow) %v1155_v34, 64 }
  0xee   : > { %744 = vrot.lane.b32.xlu2 %v653_v37, %s1238_s19  ;;  %698 = vrot.lane.b32.xlu1 %v630_v36, %s1238_s19 }
  0xf5   : > { %1158 = vxpose.xlu0.b32.cont [9/16] (narrow) %v1157_v40, 64 }
  0xf6   : > { %700 = vrot.lane.b32.xlu2 %v631_v41, %s1238_s19  ;;  %714 = vrot.lane.b32.xlu1 %v638_v39, %s1238_s19 }
  0xfd   : > { %1160 = vxpose.xlu0.b32.cont [10/16] (narrow) %v1159_v44, 64 }
  0xfe   : > { %716 = vrot.lane.b32.xlu2 %v639_v46, %s1238_s19  ;;  %730 = vrot.lane.b32.xlu1 %v646_v45, %s1238_s19 }
 0x105   : > { %1162 = vxpose.xlu0.b32.cont [11/16] (narrow) %v1161_v50, 64 }
 0x106   : > { %732 = vrot.lane.b32.xlu2 %v647_v51, %s1238_s19  ;;  %746 = vrot.lane.b32.xlu1 %v654_v48, %s1238_s19 }
 0x10d   : > { %1164 = vxpose.xlu0.b32.cont [12/16] (narrow) %v1163_v53, 64 }
 0x10e   : > { %748 = vrot.lane.b32.xlu2 %v655_v55, %s1238_s19  ;;  %702 = vrot.lane.b32.xlu1 %v632_v54, %s1238_s19 }
 0x110   : > { %v709_v57 = vpop.permute.xlu2 %708 }
 0x111   : > { %796 = vst.msk [vmem:[%s1436_s22 + $0x24] sm:$0xf] %vm786_vm0, %v709_v57 }
 0x115   : > { %1166 = vxpose.xlu0.b32.cont [13/16] (narrow) %v1165_v59, 64 }
 0x116   : > { %704 = vrot.lane.b32.xlu2 %v633_v60, %s1238_s19  ;;  %718 = vrot.lane.b32.xlu1 %v640_v58, %s1238_s19 }
 0x118   : > { %v725_v63 = vpop.permute.xlu2 %724 }
 0x119   : > { %804 = vst.msk [vmem:[%s1436_s22 + $0x44] sm:$0xf] %vm786_vm0, %v725_v63 }
 0x11d   : > { %1168 = vxpose.xlu0.b32.cont [14/16] (narrow) %v1167_v1, 64 }
 0x11e   : > { %720 = vrot.lane.b32.xlu2 %v641_v3, %s1238_s19  ;;  %734 = vrot.lane.b32.xlu1 %v648_v2, %s1238_s19 }
 0x120   : > { %v741_v5 = vpop.permute.xlu2 %740  ;;  %v691_v6 = vpop.permute.xlu1 %690 }
 0x121   : > { %812 = vst.msk [vmem:[%s1436_s22 + $0x64] sm:$0xf] %vm786_vm0, %v741_v5 }
 0x122   : > { %787 = vst.msk [vmem:[%s1436_s22] sm:$0xf] %vm786_vm0, %v691_v6 }
 0x125   : > { %1170 = vxpose.xlu0.b32.cont [15/16] (narrow) %v1169_v8, 64 }
 0x126   : > { %736 = vrot.lane.b32.xlu2 %v649_v9, %s1238_s19  ;;  %750 = vrot.lane.b32.xlu1 %v656_v7, %s1238_s19 }
 0x128   : > { %v695_v12 = vpop.permute.xlu2 %694  ;;  %v707_v13 = vpop.permute.xlu1 %706 }
 0x129   : > { %789 = vst.msk [vmem:[%s1436_s22 + $0x8] sm:$0xf] %vm786_vm0, %v695_v12 }
 0x12a   : > { %795 = vst.msk [vmem:[%s1436_s22 + $0x20] sm:$0xf] %vm786_vm0, %v707_v13 }
 0x12d   : > { %1172 = vxpose.xlu0.b32.end [16/16] (narrow) %v1171_v14, 64 }
 0x12e   : > { %752 = vrot.lane.b32.xlu2 %v657_v15, %s1238_s19 }
 0x130   : > { %v697_v16 = vpop.permute.xlu2 %696  ;;  %v723_v17 = vpop.permute.xlu1 %722 }
 0x131   : > { %790 = vst.msk [vmem:[%s1436_s22 + $0xc] sm:$0xf] %vm786_vm0, %v697_v16 }
 0x132   : > { %803 = vst.msk [vmem:[%s1436_s22 + $0x40] sm:$0xf] %vm786_vm0, %v723_v17 }
 0x138   : > { %v713_v24 = vpop.permute.xlu2 %712  ;;  %v739_v18 = vpop.permute.xlu1 %738 }
 0x139   : > { %798 = vst.msk [vmem:[%s1436_s22 + $0x2c] sm:$0xf] %vm786_vm0, %v713_v24 }
 0x13a   : > { %811 = vst.msk [vmem:[%s1436_s22 + $0x60] sm:$0xf] %vm786_vm0, %v739_v18 }
 0x140   : > { %v729_v19 = vpop.permute.xlu2 %728  ;;  %v693_v20 = vpop.permute.xlu1 %692 }
 0x141   : > { %806 = vst.msk [vmem:[%s1436_s22 + $0x4c] sm:$0xf] %vm786_vm0, %v729_v19 }
 0x142   : > { %788 = vst.msk [vmem:[%s1436_s22 + $0x4] sm:$0xf] %vm786_vm0, %v693_v20 }
 0x148   : > { %v745_v21 = vpop.permute.xlu2 %744  ;;  %v711_v22 = vpop.permute.xlu1 %710 }
 0x149   : > { %814 = vst.msk [vmem:[%s1436_s22 + $0x6c] sm:$0xf] %vm786_vm0, %v745_v21 }
 0x14a   : > { %797 = vst.msk [vmem:[%s1436_s22 + $0x28] sm:$0xf] %vm786_vm0, %v711_v22 }
 0x150   : > { %v701_v23 = vpop.permute.xlu2 %700  ;;  %v727_v25 = vpop.permute.xlu1 %726 }
 0x151   : > { %792 = vst.msk [vmem:[%s1436_s22 + $0x14] sm:$0xf] %vm786_vm0, %v701_v23 }
 0x152   : > { %805 = vst.msk [vmem:[%s1436_s22 + $0x48] sm:$0xf] %vm786_vm0, %v727_v25 }
 0x158   : > { %v717_v26 = vpop.permute.xlu2 %716  ;;  %v743_v27 = vpop.permute.xlu1 %742 }
 0x159   : > { %800 = vst.msk [vmem:[%s1436_s22 + $0x34] sm:$0xf] %vm786_vm0, %v717_v26  ;;  %v1173_v28 = vpop.trf.xlu0 }
 0x15a   : > { %813 = vst.msk [vmem:[%s1436_s22 + $0x68] sm:$0xf] %vm786_vm0, %v743_v27  ;;  %v1177_v30 = vunpack.i.h.bf16 %v1173_v28  ;;  %v1174_v31 = vunpack.i.l.bf16 %v1173_v28 }
 0x15c   : > { %v610_v32 = vpack.c.bf16 %v1177_v30, %v1174_v31 }
 0x15e   : > { %618 = vst [vmem:[%s1492_s26] sm:$0xff] %v610_v32 }
 0x160   : > { %v733_v33 = vpop.permute.xlu2 %732  ;;  %v699_v34 = vpop.permute.xlu1 %698 }
 0x161   : > { %808 = vst.msk [vmem:[%s1436_s22 + $0x54] sm:$0xf] %vm786_vm0, %v733_v33  ;;  %v1178_v36 = vpop.trf.xlu0 }
 0x162   : > { %791 = vst.msk [vmem:[%s1436_s22 + $0x10] sm:$0xf] %vm786_vm0, %v699_v34  ;;  %v1182_v37 = vunpack.i.h.bf16 %v1178_v36  ;;  %v1179_v38 = vunpack.i.l.bf16 %v1178_v36 }
 0x164   : > { %v611_v39 = vpack.c.bf16 %v1182_v37, %v1179_v38 }
 0x166   : > { %619 = vst [vmem:[%s1492_s26 + $0x8] sm:$0xff] %v611_v39 }
 0x168   : > { %v749_v40 = vpop.permute.xlu2 %748  ;;  %v715_v41 = vpop.permute.xlu1 %714 }
 0x169   : > { %816 = vst.msk [vmem:[%s1436_s22 + $0x74] sm:$0xf] %vm786_vm0, %v749_v40  ;;  %v1183_v42 = vpop.trf.xlu0 }
 0x16a   : > { %799 = vst.msk [vmem:[%s1436_s22 + $0x30] sm:$0xf] %vm786_vm0, %v715_v41  ;;  %v1187_v43 = vunpack.i.h.bf16 %v1183_v42  ;;  %v1184_v44 = vunpack.i.l.bf16 %v1183_v42 }
 0x16c   : > { %v612_v45 = vpack.c.bf16 %v1187_v43, %v1184_v44 }
 0x16e   : > { %620 = vst [vmem:[%s1492_s26 + $0x10] sm:$0xff] %v612_v45 }
 0x170   : > { %v705_v46 = vpop.permute.xlu2 %704  ;;  %v731_v47 = vpop.permute.xlu1 %730 }
 0x171   : > { %794 = vst.msk [vmem:[%s1436_s22 + $0x1c] sm:$0xf] %vm786_vm0, %v705_v46  ;;  %v1188_v29 = vpop.trf.xlu0 }
 0x172   : > { %807 = vst.msk [vmem:[%s1436_s22 + $0x50] sm:$0xf] %vm786_vm0, %v731_v47  ;;  %v1192_v48 = vunpack.i.h.bf16 %v1188_v29  ;;  %v1189_v50 = vunpack.i.l.bf16 %v1188_v29 }
 0x174   : > { %v613_v51 = vpack.c.bf16 %v1192_v48, %v1189_v50 }
 0x176   : > { %621 = vst [vmem:[%s1492_s26 + $0x18] sm:$0xff] %v613_v51 }
 0x178   : > { %v721_v35 = vpop.permute.xlu2 %720  ;;  %v747_v49 = vpop.permute.xlu1 %746 }
 0x179   : > { %802 = vst.msk [vmem:[%s1436_s22 + $0x3c] sm:$0xf] %vm786_vm0, %v721_v35  ;;  %v1193_v52 = vpop.trf.xlu0 }
 0x17a   : > { %815 = vst.msk [vmem:[%s1436_s22 + $0x70] sm:$0xf] %vm786_vm0, %v747_v49  ;;  %v1197_v53 = vunpack.i.h.bf16 %v1193_v52  ;;  %v1194_v54 = vunpack.i.l.bf16 %v1193_v52 }
 0x17c   : > { %v614_v55 = vpack.c.bf16 %v1197_v53, %v1194_v54 }
 0x17e   : > { %622 = vst [vmem:[%s1492_s26 + $0x20] sm:$0xff] %v614_v55 }
 0x180   : > { %v737_v56 = vpop.permute.xlu2 %736  ;;  %v703_v57 = vpop.permute.xlu1 %702 }
 0x181   : > { %810 = vst.msk [vmem:[%s1436_s22 + $0x5c] sm:$0xf] %vm786_vm0, %v737_v56  ;;  %v1198_v58 = vpop.trf.xlu0 }
 0x182   : > { %793 = vst.msk [vmem:[%s1436_s22 + $0x18] sm:$0xf] %vm786_vm0, %v703_v57  ;;  %v1202_v59 = vunpack.i.h.bf16 %v1198_v58  ;;  %v1199_v60 = vunpack.i.l.bf16 %v1198_v58 }
 0x184   : > { %v615_v61 = vpack.c.bf16 %v1202_v59, %v1199_v60 }
 0x186   : > { %623 = vst [vmem:[%s1492_s26 + $0x28] sm:$0xff] %v615_v61 }
 0x188   : > { %v753_v62 = vpop.permute.xlu2 %752  ;;  %v719_v63 = vpop.permute.xlu1 %718 }
 0x189   : > { %818 = vst.msk [vmem:[%s1436_s22 + $0x7c] sm:$0xf] %vm786_vm0, %v753_v62  ;;  %v1203_v0 = vpop.trf.xlu0 }
 0x18a   : > { %801 = vst.msk [vmem:[%s1436_s22 + $0x38] sm:$0xf] %vm786_vm0, %v719_v63  ;;  %v1207_v1 = vunpack.i.h.bf16 %v1203_v0  ;;  %v1204_v2 = vunpack.i.l.bf16 %v1203_v0 }
 0x18c   : > { %v616_v3 = vpack.c.bf16 %v1207_v1, %v1204_v2 }
 0x18e   : > { %624 = vst [vmem:[%s1492_s26 + $0x30] sm:$0xff] %v616_v3 }
 0x190   : > { %v735_v4 = vpop.permute.xlu1 %734 }
 0x191   : > { %809 = vst.msk [vmem:[%s1436_s22 + $0x58] sm:$0xf] %vm786_vm0, %v735_v4  ;;  %v1208_v5 = vpop.trf.xlu0 }
 0x192   : > { %v1212_v6 = vunpack.i.h.bf16 %v1208_v5  ;;  %v1209_v7 = vunpack.i.l.bf16 %v1208_v5 }
 0x194   : > { %v617_v8 = vpack.c.bf16 %v1212_v6, %v1209_v7 }
 0x196   : > { %625 = vst [vmem:[%s1492_s26 + $0x38] sm:$0xff] %v617_v8 }
 0x198   : > { %v751_v9 = vpop.permute.xlu1 %750 }
 0x199   : > { %817 = vst.msk [vmem:[%s1436_s22 + $0x78] sm:$0xf] %vm786_vm0, %v751_v9 }
 0x19a PF: > { %s15_s17 = sadd.s32 1, %s1236_s17   ;;  %s1544_s15 = smov %s1232_s16 }
 0x19b   : > { %p12_p5 = scmp.ge.s32.totalorder %s15_s17, 4   ;;  %s1545_s16 = smov %s1547_s18 }
 0x19d   :  { %14 = sbr.rel (!%p12_p5) target bundleno = 2 (0x2), region = 74 }

// kernel: _nonlocal_forward_impl.3
= control target key start
LH: loop header
LB: loop body
LE: loop exit
PB: predicated region body
PF: predicated region fallthrough
CT: control target
= control target key end

     0   :  { %s4496_s0 = inlined_call_operand.vmem [shape: f32[2,1024,128], index: 0, kind: input, shape index: {}]   ;;  %s4497_s1 = inlined_call_operand.vmem [shape: bf16[128,64], index: 1, kind: input, shape index: {}]   ;;  %s4498_s2 = inlined_call_operand.vmem [shape: f32[1,64], index: 2, kind: input, shape index: {}]   ;;  %s4499_s3 = inlined_call_operand.vmem [shape: bf16[2,64,256], index: 3, kind: input, shape index: {}]   ;;  %s4500_s4 = inlined_call_operand.vmem [shape: bf16[2,256,64], index: 4, kind: input, shape index: {}]   ;;  %s4501_s5 = inlined_call_operand.vmem [shape: bf16[64,128], index: 5, kind: input, shape index: {}]   ;;  %s4502_s6 = inlined_call_operand.vmem [shape: f32[1,128], index: 6, kind: input, shape index: {}]   ;;  %s4503_s7 = inlined_call_operand.hbm [shape: f32[2,1024,128], index: 7, kind: output, shape index: {}]  }
   0x1   :  { %4516 = sst [smem:[#allocation17_spill]] %s4499_s3 }
   0x2   :  { %12 = vsyncpa [#allocation3], 0 }
   0x3   :  { %14 = vsyncpa [#allocation3 + $0x1], 0  ;;  %s3150_s24 = smov 0   ;;  %s3152_s25 = smov 0  }
   0x4   :  { %s3154_s26 = smov 0   ;;  %s3156_s27 = smov 0  }
   0x5   :  { %s3158_s28 = smov 0   ;;  %s3160_s29 = smov 0  }
   0x6   :  { %s3162_s30 = smov 0   ;;  %s3164_s8 = smov 0  }
   0x7 LB: > { %4517 = sst [smem:[#allocation5_spill]] %s3098_s29  ;;  %s2456_s9 = sadd.s32 4294967295, %s3106_s8   ;;  %s3106_s8 = sphi %s3164_s8, %s20_s8   ;;  %s3102_s30 = sphi %s3162_s30, %s4589_s30   ;;  %s3098_s29 = sphi %s3160_s29, %s4588_s29   ;;  %s3094_s28 = sphi %s3158_s28, %s4587_s28   ;;  %s3090_s27 = sphi %s3156_s27, %s4586_s27   ;;  %s3086_s26 = sphi %s3154_s26, %s4592_s26   ;;  %s3082_s25 = sphi %s3152_s25, %s4591_s25   ;;  %s3078_s24 = sphi %s3150_s24, %s4590_s24  }
   0x8   : > { %4518 = sst [smem:[#allocation6_spill]] %s3102_s30  ;;  %s2457_s10 = sadd.s32 4294967294, %s3106_s8  }
   0x9   : > { %s29_s11 = sadd.s32 1, %s3098_s29  ;;  %s32_s12 = sadd.s32 1, %s3102_s30 }
   0xa   : > { %p30_p0 = scmp.ge.s32.totalorder %s29_s11, 4  ;;  %p215_p1 = scmp.ne.s32.totalorder %s3086_s26, %s3082_s25 }
   0xb   : > { %p216_p2 = scmp.eq.s32.totalorder %s2456_s9, 7  ;;  %p221_p5 = scmp.ne.s32.totalorder %s3082_s25, %s3078_s24 }
   0xc   : > { %s4594_s11 = smov (%p30_p0, %s29_s11), 0  ;;  %s4596_s12 = smov (!%p30_p0, %s32_s12), %s3102_s30 }
   0xd   : > { %4519 = sst [smem:[#allocation7_spill]] %s4594_s11  ;;  %s201_s13 = ssub.s32 %s3098_s29, %s4594_s11 }
   0xe   : > { %p3201_p3 = por %p216_p2, %p215_p1  ;;  %p34_p4 = scmp.ge.s32.totalorder %s4596_s12, 2 }
   0xf   : > { %p222_p6 = scmp.eq.s32.totalorder %s2457_s10, 7  ;;  %p2460_p7 = scmp.ge.s32.totalorder %s3106_s8, 1 }
  0x10   : > { %s4598_s12 = smov (%p34_p4, %s4596_s12), 0  ;;  %p281_p9 = scmp.lt.s32.totalorder %s3106_s8, 9 }
  0x11   : > { %4521 = sst [smem:[#allocation8_spill]] %s4598_s12  ;;  %p3210_p8 = por %p222_p6, %p221_p5 }
  0x12   : > { %s200_s16 = ssub.s32 %s3102_s30, %s4598_s12  ;;  %s205_s17 = sadd.s32 1, %s3086_s26 }
  0x13   : > { %s202_s18 = sor.u32 %s201_s13, %s200_s16  ;;  %p282_p10 = pnand %p2460_p7, %p281_p9 }
  0x14   : > { %p203_p11 = scmp.eq.s32.totalorder %s202_s18, 0 }
  0x15   : > { %285 = sbr.rel (%p282_p10) target bundleno = 1447 (0x5a7), region = 48 }
  0x16   : > { %s3219_s19 = scalar_select %p203_p11, %s3086_s26, %s205_s17  }
  0x1a   : > { %v2676_v0 = vld [vmem:[%s4497_s1 + $0x38] sm:$0xff]  ;;  %v2675_v1 = vld [vmem:[%s4497_s1 + $0x30] sm:$0xff]  ;;  %p328_p12 = scmp.lt.s32.totalorder %s3094_s28, 1  ;;  %s3229_s9 = sshll.u32 %s3090_s27, 5  ;;  %v2674_v2 = vld [vmem:[%s4497_s1 + $0x28] sm:$0xff]  ;;  %vm618_vm0 = vcmask 523264  }
  0x1b   : > { %465 = vmatpush.bf16.msra.mxu0 %v2676_v0  ;;  %p330_p13 = scmp.lt.s32.totalorder %s3229_s9, 127  ;;  %s4523_s3 = sld [smem:[#allocation17_spill]]  ;;  %v2673_v3 = vld [vmem:[%s4497_s1 + $0x20] sm:$0xff]  ;;  %v2672_v7 = vld [vmem:[%s4497_s1 + $0x18] sm:$0xff]  ;;  %v2671_v8 = vld [vmem:[%s4497_s1 + $0x10] sm:$0xff] }
  0x1c   : > { %s3235_s16 = scalar_select %p328_p12, %s3094_s28, 1  ;;  %v2670_v9 = vld [vmem:[%s4497_s1 + $0x8] sm:$0xff]  ;;  %v2669_v10 = vld [vmem:[%s4497_s1] sm:$0xff] }
  0x1d   : > { %s331_s23 = scalar_select %p330_p13, %s3229_s9, 127  ;;  %v3303_v57 = vld [vmem:[%s4498_s2] ss:$0 sm:$0xff] }
  0x1e   : > { %s2667_s17 = sshll.u32 %s3235_s16, 6  ;;  %s2463_s18 = sshll.u32 %s3235_s16, 7 }
  0x1f   : > { %466 = vmatpush.bf16.msra.mxu0 %v2675_v1  ;;  %s3530_s10 = scalar_lea.vmem %s4500_s4, %s2463_s18 }
  0x21   : > { %s3242_s21 = scalar_lea.vmem %s4523_s3, %s2667_s17  ;;  %s333_s17 = sadd.s32 %s2463_s18, %s331_s23 }
  0x22   : > { %v2527_v4 = vld [vmem:[%s3242_s21 + $0x30] sm:$0xf]  ;;  %v2684_v5 = vld [vmem:[%s3242_s21 + $0x34] sm:$0xf0]  ;;  %s2464_s27 = sshll.u32 %s333_s17, 3  ;;  %s324_s23 = sand.u32 1, %s3082_s25  }
  0x23   : > { %467 = vmatpush.bf16.msra.mxu0 %v2674_v2  ;;  %v2528_v6 = vor.u32 %v2684_v5, %v2527_v4  ;;  %s3265_s29 = scalar_lea.vmem %s4496_s0, %s2464_s27  ;;  %v2519_v20 = vld [vmem:[%s3242_s21 + $0x20] sm:$0xf]  ;;  %v2682_v21 = vld [vmem:[%s3242_s21 + $0x24] sm:$0xf0]  ;;  %v2683_v32 = vld [vmem:[%s3242_s21 + $0x34] sm:$0xf] }
  0x24   : > { %v349_v11 = vld [vmem:[%s3265_s29] sm:$0xff]  ;;  %v350_v12 = vld [vmem:[%s3265_s29 + $0x8] sm:$0xff]  ;;  %v351_v14 = vld [vmem:[%s3265_s29 + $0x10] sm:$0xff]  ;;  %v2520_v22 = vor.u32 %v2682_v21, %v2519_v20  ;;  %s2461_s12 = sshll.u32 %s324_s23, 8 }
  0x25   : > { %2705 = vmatpush.bf16.msra.mxu1 %v2528_v6  ;;  %v381_v13 = vpack.c.bf16 %v350_v12, %v349_v11  ;;  %v352_v15 = vld [vmem:[%s3265_s29 + $0x18] sm:$0xff]  ;;  %v353_v17 = vld [vmem:[%s3265_s29 + $0x20] sm:$0xff]  ;;  %v354_v18 = vld [vmem:[%s3265_s29 + $0x28] sm:$0xff] }
  0x26   : > { %v382_v16 = vpack.c.bf16 %v352_v15, %v351_v14  ;;  %v383_v19 = vpack.c.bf16 %v354_v18, %v353_v17  ;;  %v355_v23 = vld [vmem:[%s3265_s29 + $0x30] sm:$0xff]  ;;  %v356_v24 = vld [vmem:[%s3265_s29 + $0x38] sm:$0xff]  ;;  %v357_v26 = vld [vmem:[%s3265_s29 + $0x40] sm:$0xff] }
  0x27   : > { %468 = vmatpush.bf16.msra.mxu0 %v2673_v3  ;;  %v384_v25 = vpack.c.bf16 %v356_v24, %v355_v23  ;;  %v358_v27 = vld [vmem:[%s3265_s29 + $0x48] sm:$0xff]  ;;  %v359_v29 = vld [vmem:[%s3265_s29 + $0x50] sm:$0xff]  ;;  %v360_v30 = vld [vmem:[%s3265_s29 + $0x58] sm:$0xff] }
  0x28   : > { %v385_v28 = vpack.c.bf16 %v358_v27, %v357_v26  ;;  %v386_v31 = vpack.c.bf16 %v360_v30, %v359_v29  ;;  %v2529_v33 = vld [vmem:[%s3242_s21 + $0x38] sm:$0xf0]  ;;  %v361_v35 = vld [vmem:[%s3265_s29 + $0x60] sm:$0xff]  ;;  %v362_v36 = vld [vmem:[%s3265_s29 + $0x68] sm:$0xff] }
  0x29   : > { %2706 = vmatpush.bf16.msra.mxu1 %v2520_v22  ;;  %v2532_v34 = vor.u32 %v2683_v32, %v2529_v33  ;;  %v387_v37 = vpack.c.bf16 %v362_v36, %v361_v35  ;;  %v2681_v38 = vld [vmem:[%s3242_s21 + $0x24] sm:$0xf]  ;;  %v2521_v39 = vld [vmem:[%s3242_s21 + $0x28] sm:$0xf0]  ;;  %v2511_v41 = vld [vmem:[%s3242_s21 + $0x10] sm:$0xf] }
  0x2a   : > { %v2524_v40 = vor.u32 %v2681_v38, %v2521_v39  ;;  %v2680_v42 = vld [vmem:[%s3242_s21 + $0x14] sm:$0xf0]  ;;  %v2679_v43 = vld [vmem:[%s3242_s21 + $0x14] sm:$0xf]  ;;  %v2513_v45 = vld [vmem:[%s3242_s21 + $0x18] sm:$0xf0] }
  0x2b   : > { %469 = vmatpush.bf16.msra.mxu0 %v2672_v7  ;;  %760 = vmatpush.bf16.msra.mxu2 %v2532_v34  ;;  %v2512_v44 = vor.u32 %v2680_v42, %v2511_v41  ;;  %v2516_v46 = vor.u32 %v2679_v43, %v2513_v45  ;;  %v2677_v47 = vld [vmem:[%s3242_s21 + $0x4] sm:$0xf]  ;;  %v2505_v48 = vld [vmem:[%s3242_s21 + $0x8] sm:$0xf0]  ;;  %v363_v50 = vld [vmem:[%s3265_s29 + $0x70] sm:$0xff] }
  0x2c   : > { %2709 = vmatpush.bf16.msra.mxu3 %v2532_v34  ;;  %v2508_v49 = vor.u32 %v2677_v47, %v2505_v48  ;;  %v364_v51 = vld [vmem:[%s3265_s29 + $0x78] sm:$0xff]  ;;  %v365_v53 = vld [vmem:[%s3265_s29 + $0x80] sm:$0xff]  ;;  %v366_v54 = vld [vmem:[%s3265_s29 + $0x88] sm:$0xff] }
  0x2d   : > { %2707 = vmatpush.bf16.msra.mxu1 %v2512_v44  ;;  %v388_v52 = vpack.c.bf16 %v364_v51, %v363_v50  ;;  %v389_v55 = vpack.c.bf16 %v366_v54, %v365_v53  ;;  %v367_v62 = vld [vmem:[%s3265_s29 + $0x90] sm:$0xff]  ;;  %v368_v63 = vld [vmem:[%s3265_s29 + $0x98] sm:$0xff]  ;;  %v370_v7 = vld [vmem:[%s3265_s29 + $0xa8] sm:$0xff] }
  0x2e   : > { %v390_v0 = vpack.c.bf16 %v368_v63, %v367_v62  ;;  %v2678_v11 = vld [vmem:[%s3242_s21 + $0x4] sm:$0xf0]  ;;  %v371_v17 = vld [vmem:[%s3265_s29 + $0xb0] sm:$0xff]  ;;  %v372_v18 = vld [vmem:[%s3265_s29 + $0xb8] sm:$0xff] }
  0x2f   : > { %470 = vmatpush.bf16.msra.mxu0 %v2671_v8  ;;  %761 = vmatpush.bf16.msra.mxu2 %v2524_v40  ;;  %v374_v26 = vld [vmem:[%s3265_s29 + $0xc8] sm:$0xff]  ;;  %v375_v33 = vld [vmem:[%s3265_s29 + $0xd0] sm:$0xff]  ;;  %v376_v34 = vld [vmem:[%s3265_s29 + $0xd8] sm:$0xff] }
  0x30   : > { %2710 = vmatpush.bf16.msra.mxu3 %v2524_v40  ;;  %v394_v35 = vpack.c.bf16 %v376_v34, %v375_v33  ;;  %v377_v41 = vld [vmem:[%s3265_s29 + $0xe0] sm:$0xff]  ;;  %v378_v42 = vld [vmem:[%s3265_s29 + $0xe8] sm:$0xff]  ;;  %v380_v50 = vld [vmem:[%s3265_s29 + $0xf8] sm:$0xff] }
  0x31   : > { %v395_v43 = vpack.c.bf16 %v378_v42, %v377_v41 }
  0x33   : > { %471 = vmatpush.bf16.msra.mxu0 %v2670_v9  ;;  %762 = vmatpush.bf16.msra.mxu2 %v2516_v46 }
  0x34   : > { %2711 = vmatpush.bf16.msra.mxu3 %v2516_v46 }
  0x37   : > { %472 = vmatpush.bf16.msra.mxu0 %v2669_v10  ;;  %763 = vmatpush.bf16.msra.mxu2 %v2508_v49  ;;  %v2503_v10 = vld [vmem:[%s3242_s21] sm:$0xf]  ;;  %s4184_s21 = scalar_lea.vmem [#allocation2], %s2461_s12  ;;  %s3032_s12 = scalar_lea.hbm %s4503_s7, 2048 }
  0x38   : > { %2712 = vmatpush.bf16.msra.mxu3 %v2508_v49  ;;  %v2504_v12 = vor.u32 %v2678_v11, %v2503_v10  ;;  %v379_v49 = vld [vmem:[%s3265_s29 + $0xf0] sm:$0xff]  ;;  %s2347_s27 = sshll.u32 %s4184_s21, 4  ;;  %s2348_s27 = int_to_ptr.vmem [resolvable:$true] %s2347_s27 }
  0x39   : > { %v396_v51 = vpack.c.bf16 %v380_v50, %v379_v49 }
  0x3a   : > { %473 = vmatmul.bf16.vlgmr.msra.gmra.mxu0 %v381_v13  ;;  %2708 = vmatpush.bf16.msra.mxu1 %v2504_v12 }
  0x3b   : > { %671 = vmatpush.bf16.msrb.mxu0 %v2528_v6  ;;  %v369_v6 = vld [vmem:[%s3265_s29 + $0xa0] sm:$0xff] }
  0x3c   : > { %v391_v8 = vpack.c.bf16 %v370_v7, %v369_v6 }
  0x3f   : > { %672 = vmatpush.bf16.msrb.mxu0 %v2520_v22 }
  0x43   : > { %673 = vmatpush.bf16.msrb.mxu0 %v2512_v44 }
  0x47   : > { %674 = vmatpush.bf16.msrb.mxu0 %v2504_v12 }
  0x4a   : > { %478 = vmatmul.bf16.gmra.mxu0 %v382_v16 }
  0x5a   : > { %483 = vmatmul.bf16.gmra.mxu0 %v383_v19  ;;  %v392_v19 = vpack.c.bf16 %v372_v18, %v371_v17 }
  0x6a   : > { %488 = vmatmul.bf16.gmra.mxu0 %v384_v25  ;;  %v373_v25 = vld [vmem:[%s3265_s29 + $0xc0] sm:$0xff] }
  0x6b   : > { %v393_v27 = vpack.c.bf16 %v374_v26, %v373_v25 }
  0x7a   : > { %493 = vmatmul.bf16.gmra.mxu0 %v385_v28 }
  0x8a   : > { %498 = vmatmul.bf16.gmra.mxu0 %v386_v31 }
  0x9a   : > { %503 = vmatmul.bf16.gmra.mxu0 %v387_v37 }
  0xaa   : > { %508 = vmatmul.bf16.gmra.mxu0 %v388_v52 }
  0xb7   : > { %v474_v56 = vpop.f32.mrf.mxu0 }
  0xb8   : > { %v475_v59 = vadd.f32 %v3303_v57, %v474_v56 }
  0xba   : > { %513 = vmatmul.bf16.gmra.mxu0 %v389_v55 }
  0xbf   : > { %v476_v58 = vpop.f32.mrf.mxu0 }
  0xc0   : > { %v477_v60 = vadd.f32 %v3303_v57, %v476_v58 }
  0xc2   : > { %v3307_v61 = vpack.c.bf16 %v477_v60, %v475_v59 }
  0xc4   : > { %2549 = vmatmul.msk.bf16.vlgmr.msra.gmra.mxu2 %vm618_vm0, %v3307_v61 }
  0xc7   : > { %v479_v1 = vpop.f32.mrf.mxu0 }
  0xc8   : > { %v480_v3 = vadd.f32 %v3303_v57, %v479_v1 }
  0xca   : > { %518 = vmatmul.bf16.gmra.mxu0 %v390_v0 }
  0xcf   : > { %v481_v2 = vpop.f32.mrf.mxu0 }
  0xd0   : > { %v482_v4 = vadd.f32 %v3303_v57, %v481_v2 }
  0xd2   : > { %v3315_v5 = vpack.c.bf16 %v482_v4, %v480_v3 }
  0xd4   : > { %2550 = vmatmul.msk.bf16.gmra.mxu2 %vm618_vm0, %v3315_v5 }
  0xd7   : > { %v484_v9 = vpop.f32.mrf.mxu0 }
  0xd8   : > { %v485_v14 = vadd.f32 %v3303_v57, %v484_v9 }
  0xda   : > { %523 = vmatmul.bf16.gmra.mxu0 %v391_v8 }
  0xdf   : > { %v486_v13 = vpop.f32.mrf.mxu0 }
  0xe0   : > { %v487_v15 = vadd.f32 %v3303_v57, %v486_v13 }
  0xe2   : > { %v3325_v16 = vpack.c.bf16 %v487_v15, %v485_v14 }
  0xe4   : > { %2551 = vmatmul.msk.bf16.gmra.mxu2 %vm618_vm0, %v3325_v16 }
  0xe7   : > { %v489_v20 = vpop.f32.mrf.mxu0 }
  0xe8   : > { %v490_v22 = vadd.f32 %v3303_v57, %v489_v20 }
  0xea   : > { %528 = vmatmul.bf16.gmra.mxu0 %v392_v19 }
  0xef   : > { %v491_v21 = vpop.f32.mrf.mxu0 }
  0xf0   : > { %v492_v23 = vadd.f32 %v3303_v57, %v491_v21 }
  0xf2   : > { %v3333_v24 = vpack.c.bf16 %v492_v23, %v490_v22 }
  0xf4   : > { %2552 = vmatmul.msk.bf16.gmra.mxu2 %vm618_vm0, %v3333_v24 }
  0xf7   : > { %v494_v28 = vpop.f32.mrf.mxu0 }
  0xf8   : > { %v495_v30 = vadd.f32 %v3303_v57, %v494_v28 }
  0xfa   : > { %533 = vmatmul.bf16.gmra.mxu0 %v393_v27 }
  0xff   : > { %v496_v29 = vpop.f32.mrf.mxu0 }
 0x100   : > { %v497_v31 = vadd.f32 %v3303_v57, %v496_v29 }
 0x102   : > { %v3341_v32 = vpack.c.bf16 %v497_v31, %v495_v30 }
 0x104   : > { %2553 = vmatmul.msk.bf16.gmra.mxu2 %vm618_vm0, %v3341_v32 }
 0x107   : > { %v499_v36 = vpop.f32.mrf.mxu0 }
 0x108   : > { %v500_v38 = vadd.f32 %v3303_v57, %v499_v36 }
 0x10a   : > { %538 = vmatmul.bf16.gmra.mxu0 %v394_v35 }
 0x10f   : > { %v501_v37 = vpop.f32.mrf.mxu0 }
 0x110   : > { %v502_v39 = vadd.f32 %v3303_v57, %v501_v37 }
 0x112   : > { %v3349_v40 = vpack.c.bf16 %v502_v39, %v500_v38 }
 0x114   : > { %2554 = vmatmul.msk.bf16.gmra.mxu2 %vm618_vm0, %v3349_v40 }
 0x117   : > { %v504_v44 = vpop.f32.mrf.mxu0 }
 0x118   : > { %v505_v46 = vadd.f32 %v3303_v57, %v504_v44 }
 0x11a   : > { %543 = vmatmul.bf16.gmra.mxu0 %v395_v43 }
 0x11f   : > { %v506_v45 = vpop.f32.mrf.mxu0 }
 0x120   : > { %v507_v47 = vadd.f32 %v3303_v57, %v506_v45 }
 0x122   : > { %v560_v48 = vpack.c.bf16 %v507_v47, %v505_v46 }
 0x124   : > { %2555 = vmatmul.msk.bf16.gmra.mxu2 %vm618_vm0, %v560_v48 }
 0x127   : > { %v509_v52 = vpop.f32.mrf.mxu0 }
 0x128   : > { %v510_v54 = vadd.f32 %v3303_v57, %v509_v52 }
 0x12a   : > { %548 = vmatmul.bf16.gmra.mxu0 %v396_v51 }
 0x12f   : > { %v511_v53 = vpop.f32.mrf.mxu0 }
 0x130   : > { %v512_v55 = vadd.f32 %v3303_v57, %v511_v53 }
 0x132   : > { %v561_v56 = vpack.c.bf16 %v512_v55, %v510_v54 }
 0x134   : > { %2540 = vmatmul.msk.bf16.vlgmr.msra.gmra.mxu1 %vm618_vm0, %v561_v56  ;;  %2556 = vmatmul.msk.bf16.gmra.mxu2 %vm618_vm0, %v561_v56 }
 0x137   : > { %v514_v58 = vpop.f32.mrf.mxu0 }
 0x138   : > { %v515_v60 = vadd.f32 %v3303_v57, %v514_v58 }
 0x13a   : > { %2533 = vmatmul.msk.bf16.vlgmr.msrb.gmra.mxu0 %vm618_vm0, %v3307_v61 }
 0x13f   : > { %v516_v59 = vpop.f32.mrf.mxu0 }
 0x140   : > { %v517_v62 = vadd.f32 %v3303_v57, %v516_v59 }
 0x142   : > { %v562_v63 = vpack.c.bf16 %v517_v62, %v515_v60 }
 0x144   : > { %2541 = vmatmul.msk.bf16.gmra.mxu1 %vm618_vm0, %v562_v63  ;;  %2557 = vmatmul.msk.bf16.gmra.mxu2 %vm618_vm0, %v562_v63 }
 0x147   : > { %v519_v0 = vpop.f32.mrf.mxu0  ;;  %v765_v29 = vpop.f32.mrf.mxu2 }
 0x148   : > { %v520_v2 = vadd.f32 %v3303_v57, %v519_v0 }
 0x14a   : > { %2534 = vmatmul.msk.bf16.gmra.mxu0 %vm618_vm0, %v3315_v5 }
 0x14f   : > { %v521_v1 = vpop.f32.mrf.mxu0  ;;  %v767_v34 = vpop.f32.mrf.mxu2 }
 0x150   : > { %v522_v3 = vadd.f32 %v3303_v57, %v521_v1 }
 0x152   : > { %v563_v61 = vpack.c.bf16 %v522_v3, %v520_v2 }
 0x154   : > { %2542 = vmatmul.msk.bf16.gmra.mxu1 %vm618_vm0, %v563_v61  ;;  %2558 = vmatmul.msk.bf16.vlgmr.msra.gmra.mxu3 %vm618_vm0, %v563_v61 }
 0x157   : > { %v524_v4 = vpop.f32.mrf.mxu0  ;;  %v770_v38 = vpop.f32.mrf.mxu2 }
 0x158   : > { %v525_v7 = vadd.f32 %v3303_v57, %v524_v4 }
 0x15a   : > { %2535 = vmatmul.msk.bf16.gmra.mxu0 %vm618_vm0, %v3325_v16 }
 0x15f   : > { %v526_v6 = vpop.f32.mrf.mxu0  ;;  %v3409_v41 = vpop.f32.mrf.mxu2 }
 0x160   : > { %v527_v8 = vadd.f32 %v3303_v57, %v526_v6 }
 0x162   : > { %v564_v5 = vpack.c.bf16 %v527_v8, %v525_v7 }
 0x164   : > { %2543 = vmatmul.msk.bf16.gmra.mxu1 %vm618_vm0, %v564_v5  ;;  %2559 = vmatmul.msk.bf16.gmra.mxu3 %vm618_vm0, %v564_v5 }
 0x167   : > { %v529_v9 = vpop.f32.mrf.mxu0  ;;  %v3411_v44 = vpop.f32.mrf.mxu2 }
 0x168   : > { %v530_v11 = vadd.f32 %v3303_v57, %v529_v9 }
 0x16a   : > { %2536 = vmatmul.msk.bf16.gmra.mxu0 %vm618_vm0, %v3333_v24 }
 0x16f   : > { %v531_v10 = vpop.f32.mrf.mxu0 }
 0x170   : > { %v532_v12 = vadd.f32 %v3303_v57, %v531_v10 }
 0x172   : > { %v565_v13 = vpack.c.bf16 %v532_v12, %v530_v11 }
 0x174   : > { %2544 = vmatmul.msk.bf16.gmra.mxu1 %vm618_vm0, %v565_v13  ;;  %2560 = vmatmul.msk.bf16.gmra.mxu3 %vm618_vm0, %v565_v13 }
 0x177   : > { %v534_v14 = vpop.f32.mrf.mxu0 }
 0x178   : > { %v535_v16 = vadd.f32 %v3303_v57, %v534_v14 }
 0x17a   : > { %2537 = vmatmul.msk.bf16.gmra.mxu0 %vm618_vm0, %v3341_v32 }
 0x17f   : > { %v536_v15 = vpop.f32.mrf.mxu0 }
 0x180   : > { %v537_v17 = vadd.f32 %v3303_v57, %v536_v15 }
 0x182   : > { %v566_v18 = vpack.c.bf16 %v537_v17, %v535_v16 }
 0x184   : > { %2545 = vmatmul.msk.bf16.gmra.mxu1 %vm618_vm0, %v566_v18  ;;  %2561 = vmatmul.msk.bf16.gmra.mxu3 %vm618_vm0, %v566_v18 }
 0x187   : > { %v539_v19 = vpop.f32.mrf.mxu0 }
 0x188   : > { %v540_v21 = vadd.f32 %v3303_v57, %v539_v19 }
 0x18a   : > { %2538 = vmatmul.msk.bf16.gmra.mxu0 %vm618_vm0, %v3349_v40 }
 0x18f   : > { %v541_v20 = vpop.f32.mrf.mxu0 }
 0x190   : > { %v542_v22 = vadd.f32 %v3303_v57, %v541_v20 }
 0x192   : > { %v567_v23 = vpack.c.bf16 %v542_v22, %v540_v21 }
 0x194   : > { %2546 = vmatmul.msk.bf16.gmra.mxu1 %vm618_vm0, %v567_v23  ;;  %2562 = vmatmul.msk.bf16.gmra.mxu3 %vm618_vm0, %v567_v23 }
 0x197   : > { %v544_v24 = vpop.f32.mrf.mxu0 }
 0x198   : > { %v545_v26 = vadd.f32 %v3303_v57, %v544_v24 }
 0x19a   : > { %2539 = vmatmul.msk.bf16.gmra.mxu0 %vm618_vm0, %v560_v48  ;;  %v3418_v48 = vpop.f32.mrf.mxu2 }
 0x19f   : > { %v546_v25 = vpop.f32.mrf.mxu0 }
 0x1a0   : > { %v547_v27 = vadd.f32 %v3303_v57, %v546_v25 }
 0x1a2   : > { %v568_v28 = vpack.c.bf16 %v547_v27, %v545_v26  ;;  %v3424_v51 = vpop.f32.mrf.mxu2 }
 0x1a4   : > { %2547 = vmatmul.msk.bf16.gmra.mxu1 %vm618_vm0, %v568_v28  ;;  %2563 = vmatmul.msk.bf16.gmra.mxu3 %vm618_vm0, %v568_v28 }
 0x1a7   : > { %v549_v30 = vpop.f32.mrf.mxu0 }
 0x1a8   : > { %v550_v32 = vadd.f32 %v3303_v57, %v549_v30 }
 0x1aa   : > { %v3430_v54 = vpop.f32.mrf.mxu2 }
 0x1af   : > { %v551_v31 = vpop.f32.mrf.mxu0 }
 0x1b0   : > { %v552_v33 = vadd.f32 %v3303_v57, %v551_v31 }
 0x1b2   : > { %v569_v35 = vpack.c.bf16 %v552_v33, %v550_v32  ;;  %v3436_v58 = vpop.f32.mrf.mxu2 }
 0x1b4   : > { %2548 = vmatmul.msk.bf16.gmra.mxu1 %vm618_vm0, %v569_v35  ;;  %2564 = vmatmul.msk.bf16.gmra.mxu3 %vm618_vm0, %v569_v35 }
 0x1b7   : > { %v676_v36 = vpop.f32.mrf.mxu0 }
 0x1b8   : > { %v845_v37 = vmax.f32 %v676_v36, %v765_v29 }
 0x1ba   : > { %846 = vmax.xlane.f32.xlu0 %v845_v37  ;;  %v3442_v1 = vpop.f32.mrf.mxu2 }
 0x1bf   : > { %v678_v39 = vpop.f32.mrf.mxu0 }
 0x1c0   : > { %v848_v40 = vmax.f32 %v678_v39, %v767_v34 }
 0x1c2   : > { %849 = vmax.xlane.f32.xlu0 %v848_v40  ;;  %v3450_v11 = vpop.f32.mrf.mxu2 }
 0x1c7   : > { %v681_v42 = vpop.f32.mrf.mxu0 }
 0x1c8   : > { %v851_v43 = vmax.f32 %v681_v42, %v770_v38 }
 0x1ca   : > { %852 = vmax.xlane.f32.xlu1 %v851_v43  ;;  %v3464_v23 = vpop.f32.mrf.mxu2 }
 0x1cf   : > { %v683_v57 = vpop.f32.mrf.mxu0 }
 0x1d0   : > { %v854_v45 = vmax.f32 %v683_v57, %v3409_v41 }
 0x1d2   : > { %855 = vmax.xlane.f32.xlu1 %v854_v45 }
 0x1d7   : > { %v3414_v46 = vpop.f32.mrf.mxu0 }
 0x1d8   : > { %v857_v47 = vmax.f32 %v3414_v46, %v3411_v44 }
 0x1da   : > { %858 = vmax.xlane.f32.xlu2 %v857_v47 }
 0x1df   : > { %v3420_v49 = vpop.f32.mrf.mxu0 }
 0x1e0   : > { %v860_v50 = vmax.f32 %v3420_v49, %v3418_v48 }
 0x1e2   : > { %861 = vmax.xlane.f32.xlu2 %v860_v50 }
 0x1e7   : > { %v3426_v52 = vpop.f32.mrf.mxu0 }
 0x1e8   : > { %v863_v53 = vmax.f32 %v3426_v52, %v3424_v51 }
 0x1ea   : > { %864 = vmax.xlane.f32.xlu0 %v863_v53 }
 0x1ef   : > { %v3432_v55 = vpop.f32.mrf.mxu0 }
 0x1f0   : > { %v866_v56 = vmax.f32 %v3432_v55, %v3430_v54 }
 0x1f2   : > { %867 = vmax.xlane.f32.xlu1 %v866_v56 }
 0x1f7   : > { %v3438_v59 = vpop.f32.mrf.mxu0 }
 0x1f8   : > { %v869_v60 = vmax.f32 %v3438_v59, %v3436_v58 }
 0x1fa   : > { %870 = vmax.xlane.f32.xlu1 %v869_v60 }
 0x1ff   : > { %v3444_v7 = vpop.f32.mrf.mxu0 }
 0x200   : > { %v872_v22 = vmax.f32 %v3444_v7, %v3442_v1 }
 0x207   : > { %v3458_v20 = vpop.f32.mrf.mxu0 }
 0x208   : > { %v875_v32 = vmax.f32 %v3458_v20, %v3450_v11 }
 0x20f   : > { %v3475_v33 = vpop.f32.mrf.mxu0 }
 0x210   : > { %v878_v43 = vmax.f32 %v3475_v33, %v3464_v23 }
 0x22d   : > { %v847_v62 = vpop.xlane.xlu0 %846 }
 0x22e   : > { %v941_v63 = vsub.f32 %v676_v36, %v847_v62  ;;  %v942_v0 = vsub.f32 %v765_v29, %v847_v62 }
 0x230   : > { %v1005_v2 = vmul.f32 1.442695, %v941_v63  ;;  %v1007_v3 = vmul.f32 1.442695, %v942_v0 }
 0x232   : > { %2788 = vpow2.f32 %v1005_v2 }
 0x233   : > { %2790 = vpow2.f32 %v1007_v3 }
 0x235   : > { %v850_v61 = vpop.xlane.xlu0 %849 }
 0x236   : > { %v943_v4 = vsub.f32 %v678_v39, %v850_v61  ;;  %v944_v6 = vsub.f32 %v767_v34, %v850_v61  ;;  %v3477_v34 = vpop.f32.mrf.mxu2 }
 0x238   : > { %v3446_v8 = vpop.eup %2788  ;;  %v1009_v5 = vmul.f32 1.442695, %v943_v4  ;;  %v1011_v9 = vmul.f32 1.442695, %v944_v6 }
 0x239   : > { %v3448_v10 = vpop.eup %2790 }
 0x23a   : > { %2792 = vpow2.f32 %v1009_v5  ;;  %v1133_v12 = vadd.f32 %v3448_v10, %v3446_v8  ;;  %v3511_v5 = vpop.f32.mrf.mxu1 }
 0x23b   : > { %2794 = vpow2.f32 %v1011_v9 }
 0x23c   : > { %1134 = vadd.xlane.f32.xlu2 %v1133_v12 }
 0x23d   : > { %v853_v13 = vpop.xlane.xlu1 %852 }
 0x23e   : > { %v945_v14 = vsub.f32 %v681_v42, %v853_v13  ;;  %v946_v15 = vsub.f32 %v770_v38, %v853_v13  ;;  %v3493_v47 = vpop.f32.mrf.mxu2 }
 0x240   : > { %v3454_v16 = vpop.eup %2792  ;;  %v1013_v17 = vmul.f32 1.442695, %v945_v14  ;;  %v1015_v18 = vmul.f32 1.442695, %v946_v15 }
 0x241   : > { %v3456_v19 = vpop.eup %2794 }
 0x242   : > { %2796 = vpow2.f32 %v1013_v17  ;;  %v1136_v21 = vadd.f32 %v3456_v19, %v3454_v16 }
 0x243   : > { %2798 = vpow2.f32 %v1015_v18 }
 0x244   : > { %1137 = vadd.xlane.f32.xlu0 %v1136_v21  ;;  %873 = vmax.xlane.f32.xlu2 %v872_v22  ;;  %v3536_v22 = vpop.f32.mrf.mxu1 }
 0x245   : > { %v856_v24 = vpop.xlane.xlu1 %855 }
 0x246   : > { %v947_v25 = vsub.f32 %v683_v57, %v856_v24  ;;  %v948_v26 = vsub.f32 %v3409_v41, %v856_v24  ;;  %v3489_v57 = vpop.f32.mrf.mxu0  ;;  %v3513_v9 = vpop.f32.mrf.mxu2 }
 0x247   : > { %v881_v63 = vmax.f32 %v3489_v57, %v3477_v34 }
 0x248   : > { %v3467_v27 = vpop.eup %2796  ;;  %v1017_v28 = vmul.f32 1.442695, %v947_v25  ;;  %v1019_v29 = vmul.f32 1.442695, %v948_v26  ;;  %v2692_v25 = vld [vmem:[%s3530_s10 + $0x38] sm:$0xff] }
 0x249   : > { %v3469_v30 = vpop.eup %2798  ;;  %v2700_v26 = vld [vmem:[%s3530_s10 + $0x78] sm:$0xff]  ;;  %1901 = vmatpush.bf16.msrb.mxu3 %v2692_v25  ;;  %v2693_v25 = vld [vmem:[%s3530_s10 + $0x40] sm:$0xff] }
 0x24a   : > { %2800 = vpow2.f32 %v1017_v28  ;;  %v1139_v31 = vadd.f32 %v3469_v30, %v3467_v27  ;;  %1990 = vmatpush.bf16.msrb.mxu1 %v2700_v26 }
 0x24b   : > { %2802 = vpow2.f32 %v1019_v29 }
 0x24c   : > { %1140 = vadd.xlane.f32.xlu0 %v1139_v31  ;;  %876 = vmax.xlane.f32.xlu2 %v875_v32 }
 0x24d   : > { %v859_v35 = vpop.xlane.xlu2 %858 }
 0x24e   : > { %v949_v36 = vsub.f32 %v3414_v46, %v859_v35  ;;  %v950_v37 = vsub.f32 %v3411_v44, %v859_v35  ;;  %v3505_v2 = vpop.f32.mrf.mxu0  ;;  %v3538_v24 = vpop.f32.mrf.mxu2 }
 0x24f   : > { %v884_v12 = vmax.f32 %v3505_v2, %v3493_v47 }
 0x250   : > { %v3481_v38 = vpop.eup %2800  ;;  %v1021_v39 = vmul.f32 1.442695, %v949_v36  ;;  %v1023_v40 = vmul.f32 1.442695, %v950_v37 }
 0x251   : > { %v3483_v41 = vpop.eup %2802 }
 0x252   : > { %2804 = vpow2.f32 %v1021_v39  ;;  %v1142_v42 = vadd.f32 %v3483_v41, %v3481_v38  ;;  %v890_v39 = vmax.f32 %v3536_v22, %v3538_v24 }
 0x253   : > { %2806 = vpow2.f32 %v1023_v40 }
 0x254   : > { %1143 = vadd.xlane.f32.xlu1 %v1142_v42  ;;  %879 = vmax.xlane.f32.xlu0 %v878_v43 }
 0x255   : > { %v862_v45 = vpop.xlane.xlu2 %861 }
 0x256   : > { %v951_v44 = vsub.f32 %v3420_v49, %v862_v45  ;;  %v952_v46 = vsub.f32 %v3418_v48, %v862_v45 }
 0x258   : > { %v3495_v50 = vpop.eup %2804  ;;  %v1025_v53 = vmul.f32 1.442695, %v951_v44  ;;  %v1027_v56 = vmul.f32 1.442695, %v952_v46 }
 0x259   : > { %v3497_v60 = vpop.eup %2806 }
 0x25a   : > { %2808 = vpow2.f32 %v1025_v53  ;;  %v1145_v62 = vadd.f32 %v3497_v60, %v3495_v50 }
 0x25b   : > { %2810 = vpow2.f32 %v1027_v56 }
 0x25c   : > { %1146 = vadd.xlane.f32.xlu1 %v1145_v62  ;;  %882 = vmax.xlane.f32.xlu0 %v881_v63  ;;  %v3570_v62 = vpop.f32.mrf.mxu3 }
 0x25d   : > { %v865_v49 = vpop.xlane.xlu0 %864 }
 0x25e   : > { %v953_v48 = vsub.f32 %v3426_v52, %v865_v49  ;;  %v954_v0 = vsub.f32 %v3424_v51, %v865_v49 }
 0x260   : > { %v3507_v3 = vpop.eup %2808  ;;  %v1029_v61 = vmul.f32 1.442695, %v953_v48  ;;  %v1031_v4 = vmul.f32 1.442695, %v954_v0  ;;  %v2691_v48 = vld [vmem:[%s3530_s10 + $0x30] sm:$0xff] }
 0x261   : > { %v3509_v6 = vpop.eup %2810  ;;  %v2699_v0 = vld [vmem:[%s3530_s10 + $0x70] sm:$0xff]  ;;  %1902 = vmatpush.bf16.msrb.mxu3 %v2691_v48 }
 0x262   : > { %2812 = vpow2.f32 %v1029_v61  ;;  %v1148_v51 = vadd.f32 %v3509_v6, %v3507_v3  ;;  %1991 = vmatpush.bf16.msrb.mxu1 %v2699_v0  ;;  %v2690_v61 = vld [vmem:[%s3530_s10 + $0x28] sm:$0xff] }
 0x263   : > { %2814 = vpow2.f32 %v1031_v4  ;;  %v2698_v4 = vld [vmem:[%s3530_s10 + $0x68] sm:$0xff] }
 0x264   : > { %1149 = vadd.xlane.f32.xlu2 %v1148_v51  ;;  %885 = vmax.xlane.f32.xlu1 %v884_v12  ;;  %v2689_v12 = vld [vmem:[%s3530_s10 + $0x20] sm:$0xff]  ;;  %v3592_v48 = vpop.f32.mrf.mxu3 }
 0x265   : > { %v868_v52 = vpop.xlane.xlu1 %867  ;;  %1903 = vmatpush.bf16.msrb.mxu3 %v2690_v61  ;;  %v2697_v51 = vld [vmem:[%s3530_s10 + $0x60] sm:$0xff] }
 0x266   : > { %v955_v13 = vsub.f32 %v3432_v55, %v868_v52  ;;  %v956_v14 = vsub.f32 %v3430_v54, %v868_v52  ;;  %v887_v54 = vmax.f32 %v3511_v5, %v3513_v9  ;;  %1992 = vmatpush.bf16.msrb.mxu1 %v2698_v4  ;;  %v2688_v52 = vld [vmem:[%s3530_s10 + $0x18] sm:$0xff] }
 0x268   : > { %v3521_v15 = vpop.eup %2812  ;;  %v1033_v17 = vmul.f32 1.442695, %v955_v13  ;;  %v1035_v18 = vmul.f32 1.442695, %v956_v14  ;;  %v2696_v13 = vld [vmem:[%s3530_s10 + $0x58] sm:$0xff]  ;;  %v2687_v14 = vld [vmem:[%s3530_s10 + $0x10] sm:$0xff] }
 0x269   : > { %v3523_v21 = vpop.eup %2814  ;;  %1904 = vmatpush.bf16.msrb.mxu3 %v2689_v12 }
 0x26a   : > { %2816 = vpow2.f32 %v1033_v17  ;;  %v1151_v55 = vadd.f32 %v3523_v21, %v3521_v15  ;;  %1993 = vmatpush.bf16.msrb.mxu1 %v2697_v51  ;;  %v2695_v17 = vld [vmem:[%s3530_s10 + $0x50] sm:$0xff] }
 0x26b   : > { %2818 = vpow2.f32 %v1035_v18  ;;  %v2686_v18 = vld [vmem:[%s3530_s10 + $0x8] sm:$0xff] }
 0x26c   : > { %1152 = vadd.xlane.f32.xlu2 %v1151_v55  ;;  %888 = vmax.xlane.f32.xlu1 %v887_v54  ;;  %v2694_v55 = vld [vmem:[%s3530_s10 + $0x48] sm:$0xff]  ;;  %v2685_v54 = vld [vmem:[%s3530_s10] sm:$0xff]  ;;  %s2663_s10 = sshll.u32 %s3094_s28, 7 }
 0x26d   : > { %v871_v28 = vpop.xlane.xlu1 %870  ;;  %1905 = vmatpush.bf16.msrb.mxu3 %v2688_v52  ;;  %s2344_s16 = sadd.s32 %s2663_s10, %s3229_s9  ;;  %s2333_s9 = scalar_lea.sflag [#allocation3], %s324_s23 }
 0x26e   : > { %v957_v29 = vsub.f32 %v3438_v59, %v871_v28  ;;  %v958_v31 = vsub.f32 %v3436_v58, %v871_v28  ;;  %v3552_v59 = vpop.f32.mrf.mxu1  ;;  %v3554_v58 = vpop.f32.mrf.mxu2  ;;  %1994 = vmatpush.bf16.msrb.mxu1 %v2696_v13  ;;  %s2664_s13 = sshll.u32 %s2344_s16, 3 }
 0x26f   : > { %v893_v45 = vmax.f32 %v3552_v59, %v3554_v58  ;;  %s2346_s20 = scalar_lea.hbm %s4503_s7, %s2664_s13 }
 0x270   : > { %v3544_v32 = vpop.eup %2816  ;;  %v1037_v35 = vmul.f32 1.442695, %v957_v29  ;;  %v1039_v36 = vmul.f32 1.442695, %v958_v31  ;;  %s2349_s28 = sshll.u32 %s2346_s20, 4  ;;  %s2350_s28 = int_to_ptr.hbm [resolvable:$true] %s2349_s28 }
 0x271   : > { %v3546_v37 = vpop.eup %2818  ;;  %1906 = vmatpush.bf16.msrb.mxu3 %v2687_v14  ;;  %s3026_s22 = sshra.s32 %s2350_s28, 4  ;;  %s3027_s22 = int_to_ptr.hbm [resolvable:$true] %s3026_s22 }
 0x272   : > { %2820 = vpow2.f32 %v1037_v35  ;;  %v1154_v40 = vadd.f32 %v3546_v37, %v3544_v32  ;;  %1995 = vmatpush.bf16.msrb.mxu1 %v2695_v17  ;;  %s3028_s3 = scalar_lea.hbm %s3027_s22, 256  ;;  %p3033_p4 = scmp.lt.s32.totalorder %s3027_s22, %s4503_s7 }
 0x273   : > { %2822 = vpow2.f32 %v1039_v36  ;;  %p3029_p0 = scmp.ne.s32.totalorder %s3027_s22, %s3028_s3  ;;  %p3034_p5 = scmp.lt.s32.totalorder %s3032_s12, %s3028_s3 }
 0x274   : > { %891 = vmax.xlane.f32.xlu2 %v890_v39  ;;  %1155 = vadd.xlane.f32.xlu0 %v1154_v40 }
 0x275   : > { %1907 = vmatpush.bf16.msrb.mxu3 %v2686_v18  ;;  %p3030_p1 = pnand %p3029_p0, %p3201_p3  ;;  %p3035_p6 = por %p3034_p5, %p3033_p4 }
 0x276   : > { %v3564_v46 = vpop.f32.mrf.mxu1  ;;  %v3566_v53 = vpop.f32.mrf.mxu2  ;;  %1996 = vmatpush.bf16.msrb.mxu1 %v2694_v55 }
 0x277   : > { %v896_v56 = vmax.f32 %v3564_v46, %v3566_v53  ;;  %p3031_p2 = pneg %p3030_p1 }
 0x278   : > { %v3556_v42 = vpop.eup %2820 }
 0x279   : > { %v3558_v43 = vpop.eup %2822  ;;  %1908 = vmatpush.bf16.msrb.mxu3 %v2685_v54  ;;  %p3036_p7 = pnand %p3035_p6, %p3031_p2 }
 0x27a   : > { %v1157_v44 = vadd.f32 %v3558_v43, %v3556_v42  ;;  %1997 = vmatpush.bf16.msrb.mxu1 %v2693_v25 }
 0x27c   : > { %894 = vmax.xlane.f32.xlu2 %v893_v45  ;;  %1158 = vadd.xlane.f32.xlu0 %v1157_v44 }
 0x27e   : > { %v3572_v63 = vpop.f32.mrf.mxu1 }
 0x27f   : > { %v899_v49 = vmax.f32 %v3572_v63, %v3570_v62 }
 0x284   : > { %897 = vmax.xlane.f32.xlu0 %v896_v56 }
 0x286   : > { %v3596_v51 = vpop.f32.mrf.mxu1 }
 0x28c   : > { %900 = vmax.xlane.f32.xlu0 %v899_v49 }
 0x2af   : > { %v1135_v26 = vpop.xlane.xlu2 %1134 }
 0x2b0   : > { %2824 = vrcp.f32 %v1135_v26  ;;  %v1238_v52 = vand.u32 2147483647, %v1135_v26  ;;  %vm1234_vm2 = vweird.f32 %v1135_v26 }
 0x2b2   : > { %vm1239_vm5 = vcmp.eq.f32.partialorder %v1238_v52, 8.507059e+37 }
 0x2b6   : > { %v2825_v28 = vpop.eup %2824 }
 0x2b7   : > { %v1230_v29 = vmul.f32 %v2825_v28, %v1135_v26  ;;  %v1138_v31 = vpop.xlane.xlu0 %1137  ;;  %v874_v35 = vpop.xlane.xlu2 %873  ;;  %vm1235_vm1 = vweird.f32 %v2825_v28 }
 0x2b8   : > { %2826 = vrcp.f32 %v1138_v31  ;;  %v959_v39 = vsub.f32 %v3444_v7, %v874_v35  ;;  %v960_v40 = vsub.f32 %v3442_v1, %v874_v35  ;;  %v1240_v7 = vand.u32 2147483648, %v1135_v26  ;;  %vm3601_vm3 = vmor %vm1234_vm2, %vm1235_vm1 }
 0x2b9   : > { %v1231_v36 = vsub.f32 1.0, %v1230_v29  ;;  %v1256_v18 = vand.u32 2147483648, %v1138_v31  ;;  %v1254_v26 = vand.u32 2147483647, %v1138_v31  ;;  %vm1250_vm6 = vweird.f32 %v1138_v31 }
 0x2ba   : > { %v1041_v44 = vmul.f32 1.442695, %v959_v39  ;;  %v1043_v56 = vmul.f32 1.442695, %v960_v40 }
 0x2bb   : > { %v1232_v45 = vmul.f32 %v2825_v28, %v1231_v36  ;;  %vm1255_vm8 = vcmp.eq.f32.partialorder %v1254_v26, 8.507059e+37 }
 0x2bc   : > { %2828 = vpow2.f32 %v1041_v44 }
 0x2bd   : > { %2830 = vpow2.f32 %v1043_v56  ;;  %v1233_v0 = vadd.f32 %v2825_v28, %v1232_v45 }
 0x2be   : > { %v2827_v49 = vpop.eup %2826 }
 0x2bf   : > { %v1246_v61 = vmul.f32 %v2827_v49, %v1138_v31  ;;  %v3594_v4 = vpop.xlane.xlu0 %1140  ;;  %v877_v12 = vpop.xlane.xlu2 %876  ;;  %vm1251_vm4 = vweird.f32 %v2827_v49  ;;  %v1237_v35 = vsel %vm3601_vm3, %v2825_v28, %v1233_v0  ;;  %v1257_v28 = vor.u32 1.1754944e-38, %v1256_v18 }
 0x2c0   : > { %2832 = vrcp.f32 %v3594_v4  ;;  %v961_v1 = vsub.f32 %v3458_v20, %v877_v12  ;;  %v962_v14 = vsub.f32 %v3450_v11, %v877_v12  ;;  %v1241_v20 = vor.u32 1.1754944e-38, %v1240_v7  ;;  %vm3615_vm7 = vmor %vm1250_vm6, %vm1251_vm4  ;;  %v3625_v12 = vpop.f32.mrf.mxu3  ;;  %v3633_v18 = vpop.f32.mrf.mxu1 }
 0x2c1   : > { %v1247_v13 = vsub.f32 1.0, %v1246_v61  ;;  %v1272_v45 = vand.u32 2147483648, %v3594_v4  ;;  %vm1266_vm10 = vweird.f32 %v3594_v4 }
 0x2c2   : > { %v1045_v55 = vmul.f32 1.442695, %v961_v1  ;;  %v3605_v54 = vpop.eup %2828  ;;  %v1047_v29 = vmul.f32 1.442695, %v962_v14  ;;  %v1242_v44 = vsel %vm1239_vm5, %v1241_v20, %v1237_v35 }
 0x2c3   : > { %v1248_v25 = vmul.f32 %v2827_v49, %v1247_v13  ;;  %v3609_v36 = vpop.eup %2830  ;;  %v1243_v13 = vmul.f32 %v3446_v8, %v1242_v44 }
 0x2c4   : > { %2834 = vpow2.f32 %v1045_v55  ;;  %v1160_v39 = vadd.f32 %v3609_v36, %v3605_v54 }
 0x2c5   : > { %v1249_v11 = vadd.f32 %v2827_v49, %v1248_v25  ;;  %2836 = vpow2.f32 %v1047_v29  ;;  %v1244_v25 = vmul.f32 %v3448_v10, %v1242_v44 }
 0x2c6   : > { %v3613_v40 = vpop.eup %2832  ;;  %1161 = vadd.xlane.f32.xlu1 %v1160_v39 }
 0x2c7   : > { %v1262_v56 = vmul.f32 %v3613_v40, %v3594_v4  ;;  %v3621_v0 = vpop.xlane.xlu1 %1143  ;;  %v880_v61 = vpop.xlane.xlu0 %879  ;;  %v1253_v31 = vsel %vm3615_vm7, %v2827_v49, %v1249_v11  ;;  %vm1267_vm9 = vweird.f32 %v3613_v40 }
 0x2c8   : > { %2838 = vrcp.f32 %v3621_v0  ;;  %v963_v52 = vsub.f32 %v3475_v33, %v880_v61  ;;  %v964_v1 = vsub.f32 %v3464_v23, %v880_v61  ;;  %v1258_v14 = vsel %vm1255_vm8, %v1257_v28, %v1253_v31  ;;  %vm3661_vm11 = vmor %vm1266_vm10, %vm1267_vm9 }
 0x2c9   : > { %v1263_v7 = vsub.f32 1.0, %v1262_v56  ;;  %v1259_v49 = vmul.f32 %v3454_v16, %v1258_v14  ;;  %v1260_v29 = vmul.f32 %v3456_v19, %v1258_v14  ;;  %v1270_v61 = vand.u32 2147483647, %v3594_v4 }
 0x2ca   : > { %v3631_v17 = vpop.eup %2834  ;;  %v1049_v55 = vmul.f32 1.442695, %v963_v52  ;;  %v1051_v20 = vmul.f32 1.442695, %v964_v1  ;;  %v3656_v52 = vpop.f32.mrf.mxu3  ;;  %vm1282_vm13 = vweird.f32 %v3621_v0 }
 0x2cb   : > { %v3638_v35 = vpop.eup %2836  ;;  %v1264_v33 = vmul.f32 %v3613_v40, %v1263_v7  ;;  %v1741_v23 = vpack.c.bf16 %v1259_v49, %v1243_v13  ;;  %v1742_v8 = vpack.c.bf16 %v1260_v29, %v1244_v25  ;;  %v1288_v7 = vand.u32 2147483648, %v3621_v0  ;;  %v3670_v49 = vpop.f32.mrf.mxu1 }
 0x2cc   : > { %2840 = vpow2.f32 %v1049_v55  ;;  %v1163_v26 = vadd.f32 %v3638_v35, %v3631_v17  ;;  %v902_v13 = vmax.f32 %v3596_v51, %v3592_v48  ;;  %v1273_v29 = vor.u32 1.1754944e-38, %v1272_v45 }
 0x2cd   : > { %2842 = vpow2.f32 %v1051_v20  ;;  %1909 = vmatmul.bf16.vlgmr.msrb.gmra.mxu3 %v1741_v23  ;;  %1998 = vmatmul.bf16.vlgmr.msrb.gmra.mxu1 %v1742_v8  ;;  %v1265_v39 = vadd.f32 %v3613_v40, %v1264_v33  ;;  %v1286_v33 = vand.u32 2147483647, %v3621_v0  ;;  %vm1271_vm14 = vcmp.eq.f32.partialorder %v1270_v61, 8.507059e+37 }
 0x2ce   : > { %v2839_v11 = vpop.eup %2838  ;;  %1164 = vadd.xlane.f32.xlu1 %v1163_v26 }
 0x2cf   : > { %v1278_v16 = vmul.f32 %v2839_v11, %v3621_v0  ;;  %v3644_v10 = vpop.xlane.xlu1 %1146  ;;  %v883_v19 = vpop.xlane.xlu0 %882  ;;  %v1269_v4 = vsel %vm3661_vm11, %v3613_v40, %v1265_v39  ;;  %vm1283_vm12 = vweird.f32 %v2839_v11  ;;  %v1289_v39 = vor.u32 1.1754944e-38, %v1288_v7 }
 0x2d0   : > { %2844 = vrcp.f32 %v3644_v10  ;;  %v965_v44 = vsub.f32 %v3489_v57, %v883_v19  ;;  %v966_v56 = vsub.f32 %v3477_v34, %v883_v19  ;;  %v1274_v8 = vsel %vm1271_vm14, %v1273_v29, %v1269_v4  ;;  %vm1284_vm15 = vmor %vm1282_vm13, %vm1283_vm12 }
 0x2d1   : > { %v1279_v28 = vsub.f32 1.0, %v1278_v16  ;;  %vm1287_vm1 = vcmp.eq.f32.partialorder %v1286_v33, 8.507059e+37  ;;  %v1276_v14 = vmul.f32 %v3469_v30, %v1274_v8  ;;  %vm1298_vm3 = vweird.f32 %v3644_v10 }
 0x2d2   : > { %v3654_v31 = vpop.eup %2840  ;;  %v1053_v1 = vmul.f32 1.442695, %v965_v44  ;;  %v1055_v34 = vmul.f32 1.442695, %v966_v56 }
 0x2d3   : > { %v3665_v57 = vpop.eup %2842  ;;  %v1280_v55 = vmul.f32 %v2839_v11, %v1279_v28  ;;  %v1275_v28 = vmul.f32 %v3467_v27, %v1274_v8  ;;  %v1304_v8 = vand.u32 2147483648, %v3644_v10 }
 0x2d4   : > { %2846 = vpow2.f32 %v1053_v1  ;;  %v1166_v25 = vadd.f32 %v3665_v57, %v3654_v31 }
 0x2d5   : > { %2848 = vpow2.f32 %v1055_v34  ;;  %v1281_v20 = vadd.f32 %v2839_v11, %v1280_v55  ;;  %v3694_v34 = vpop.f32.mrf.mxu3 }
 0x2d6   : > { %v3676_v23 = vpop.eup %2844  ;;  %1167 = vadd.xlane.f32.xlu2 %v1166_v25  ;;  %903 = vmax.xlane.f32.xlu1 %v902_v13  ;;  %v3700_v25 = vpop.f32.mrf.mxu1 }
 0x2d7   : > { %v1294_v40 = vmul.f32 %v3676_v23, %v3644_v10  ;;  %v3680_v26 = vpop.xlane.xlu2 %1149  ;;  %v886_v16 = vpop.xlane.xlu1 %885  ;;  %v1285_v19 = vsel %vm1284_vm15, %v2839_v11, %v1281_v20  ;;  %vm1299_vm2 = vweird.f32 %v3676_v23 }
 0x2d8   : > { %2850 = vrcp.f32 %v3680_v26  ;;  %v967_v0 = vsub.f32 %v3505_v2, %v886_v16  ;;  %v968_v44 = vsub.f32 %v3493_v47, %v886_v16  ;;  %v1290_v56 = vsel %vm1287_vm1, %v1289_v39, %v1285_v19  ;;  %vm3718_vm4 = vmor %vm1298_vm3, %vm1299_vm2 }
 0x2d9   : > { %v1295_v45 = vsub.f32 1.0, %v1294_v40  ;;  %v1291_v13 = vmul.f32 %v3481_v38, %v1290_v56  ;;  %v1292_v11 = vmul.f32 %v3483_v41, %v1290_v56  ;;  %v905_v38 = vmax.f32 %v3633_v18, %v3625_v12 }
 0x2da   : > { %v3686_v61 = vpop.eup %2846  ;;  %v1057_v1 = vmul.f32 1.442695, %v967_v0  ;;  %v1059_v55 = vmul.f32 1.442695, %v968_v44  ;;  %v1302_v39 = vand.u32 2147483647, %v3644_v10  ;;  %vm1314_vm6 = vweird.f32 %v3680_v26 }
 0x2db   : > { %v3691_v7 = vpop.eup %2848  ;;  %v1296_v2 = vmul.f32 %v3676_v23, %v1295_v45  ;;  %v1743_v47 = vpack.c.bf16 %v1291_v13, %v1275_v28  ;;  %v1744_v27 = vpack.c.bf16 %v1292_v11, %v1276_v14  ;;  %v1320_v45 = vand.u32 2147483648, %v3680_v26 }
 0x2dc   : > { %2852 = vpow2.f32 %v1057_v1  ;;  %v1169_v4 = vadd.f32 %v3691_v7, %v3686_v61  ;;  %v908_v28 = vmax.f32 %v3670_v49, %v3656_v52  ;;  %v1305_v14 = vor.u32 1.1754944e-38, %v1304_v8 }
 0x2dd   : > { %2854 = vpow2.f32 %v1059_v55  ;;  %1914 = vmatmul.bf16.gmra.mxu3 %v1743_v47  ;;  %2003 = vmatmul.bf16.gmra.mxu1 %v1744_v27  ;;  %v1297_v20 = vadd.f32 %v3676_v23, %v1296_v2  ;;  %v1318_v11 = vand.u32 2147483647, %v3680_v26  ;;  %vm1303_vm7 = vcmp.eq.f32.partialorder %v1302_v39, 8.507059e+37  ;;  %v3733_v47 = vpop.f32.mrf.mxu3 }
 0x2de   : > { %v2851_v30 = vpop.eup %2850  ;;  %1170 = vadd.xlane.f32.xlu2 %v1169_v4  ;;  %906 = vmax.xlane.f32.xlu1 %v905_v38  ;;  %v3742_v8 = vpop.f32.mrf.mxu1 }
 0x2df   : > { %v1310_v41 = vmul.f32 %v2851_v30, %v3680_v26  ;;  %v3703_v29 = vpop.xlane.xlu2 %1152  ;;  %v889_v33 = vpop.xlane.xlu1 %888  ;;  %vm1315_vm5 = vweird.f32 %v2851_v30  ;;  %vm1319_vm9 = vcmp.eq.f32.partialorder %v1318_v11, 8.507059e+37 }
 0x2e0   : > { %2856 = vrcp.f32 %v3703_v29  ;;  %v969_v40 = vsub.f32 %v3511_v5, %v889_v33  ;;  %v970_v19 = vsub.f32 %v3513_v9, %v889_v33  ;;  %v1301_v9 = vsel %vm3718_vm4, %v3676_v23, %v1297_v20  ;;  %vm1316_vm8 = vmor %vm1314_vm6, %vm1315_vm5 }
 0x2e1   : > { %v1311_v16 = vsub.f32 1.0, %v1310_v41  ;;  %v1306_v27 = vsel %vm1303_vm7, %v1305_v14, %v1301_v9  ;;  %v1321_v33 = vor.u32 1.1754944e-38, %v1320_v45  ;;  %v1336_v11 = vand.u32 2147483648, %v3703_v29 }
 0x2e2   : > { %v3713_v0 = vpop.eup %2852  ;;  %v1061_v44 = vmul.f32 1.442695, %v969_v40  ;;  %v1063_v13 = vmul.f32 1.442695, %v970_v19  ;;  %v1308_v39 = vmul.f32 %v3497_v60, %v1306_v27  ;;  %v911_v60 = vmax.f32 %v3700_v25, %v3694_v34 }
 0x2e3   : > { %v3722_v5 = vpop.eup %2854  ;;  %v1312_v1 = vmul.f32 %v2851_v30, %v1311_v16  ;;  %v1307_v16 = vmul.f32 %v3495_v50, %v1306_v27  ;;  %vm1330_vm11 = vweird.f32 %v3703_v29 }
 0x2e4   : > { %2858 = vpow2.f32 %v1061_v44  ;;  %v1172_v10 = vadd.f32 %v3722_v5, %v3713_v0 }
 0x2e5   : > { %2860 = vpow2.f32 %v1063_v13  ;;  %v1313_v2 = vadd.f32 %v2851_v30, %v1312_v1 }
 0x2e6   : > { %v3731_v55 = vpop.eup %2856  ;;  %1173 = vadd.xlane.f32.xlu0 %v1172_v10  ;;  %909 = vmax.xlane.f32.xlu2 %v908_v28 }
 0x2e7   : > { %v1326_v23 = vmul.f32 %v3731_v55, %v3703_v29  ;;  %v892_v4 = vpop.xlane.xlu2 %891  ;;  %v3737_v38 = vpop.xlane.xlu0 %1155  ;;  %v1317_v41 = vsel %vm1316_vm8, %v2851_v30, %v1313_v2  ;;  %vm1331_vm10 = vweird.f32 %v3731_v55 }
 0x2e8   : > { %v971_v26 = vsub.f32 %v3536_v22, %v892_v4  ;;  %v972_v20 = vsub.f32 %v3538_v24, %v892_v4  ;;  %2862 = vrcp.f32 %v3737_v38  ;;  %v1322_v19 = vsel %vm1319_vm9, %v1321_v33, %v1317_v41  ;;  %vm3772_vm12 = vmor %vm1330_vm11, %vm1331_vm10 }
 0x2e9   : > { %v1327_v40 = vsub.f32 1.0, %v1326_v23  ;;  %v1323_v45 = vmul.f32 %v3507_v3, %v1322_v19  ;;  %v1324_v22 = vmul.f32 %v3509_v6, %v1322_v19  ;;  %v3765_v23 = vpop.f32.mrf.mxu3  ;;  %v1334_v41 = vand.u32 2147483647, %v3703_v29 }
 0x2ea   : > { %v3746_v44 = vpop.eup %2858  ;;  %v1065_v28 = vmul.f32 1.442695, %v971_v26  ;;  %v1067_v30 = vmul.f32 1.442695, %v972_v20  ;;  %v1352_v26 = vand.u32 2147483648, %v3737_v38  ;;  %vm1346_vm14 = vweird.f32 %v3737_v38 }
 0x2eb   : > { %v3750_v24 = vpop.eup %2860  ;;  %v1328_v56 = vmul.f32 %v3731_v55, %v1327_v40  ;;  %v1745_v1 = vpack.c.bf16 %v1323_v45, %v1307_v16  ;;  %v1746_v13 = vpack.c.bf16 %v1324_v22, %v1308_v39  ;;  %v1350_v29 = vand.u32 2147483647, %v3737_v38 }
 0x2ec   : > { %2864 = vpow2.f32 %v1065_v28  ;;  %v1175_v50 = vadd.f32 %v3750_v24, %v3746_v44  ;;  %v1337_v45 = vor.u32 1.1754944e-38, %v1336_v11  ;;  %vm1335_vm15 = vcmp.eq.f32.partialorder %v1334_v41, 8.507059e+37 }
 0x2ed   : > { %2866 = vpow2.f32 %v1067_v30  ;;  %1919 = vmatmul.bf16.gmra.mxu3 %v1745_v1  ;;  %2008 = vmatmul.bf16.gmra.mxu1 %v1746_v13  ;;  %v1329_v14 = vadd.f32 %v3731_v55, %v1328_v56  ;;  %v914_v30 = vmax.f32 %v3742_v8, %v3733_v47  ;;  %vm1351_vm2 = vcmp.eq.f32.partialorder %v1350_v29, 8.507059e+37 }
 0x2ee   : > { %v2863_v9 = vpop.eup %2862  ;;  %912 = vmax.xlane.f32.xlu2 %v911_v60  ;;  %1176 = vadd.xlane.f32.xlu0 %v1175_v50 }
 0x2ef   : > { %v1342_v3 = vmul.f32 %v2863_v9, %v3737_v38  ;;  %v895_v6 = vpop.xlane.xlu2 %894  ;;  %v3758_v10 = vpop.xlane.xlu0 %1158  ;;  %v1333_v39 = vsel %vm3772_vm12, %v3731_v55, %v1329_v14  ;;  %vm1347_vm13 = vweird.f32 %v2863_v9  ;;  %v1353_v55 = vor.u32 1.1754944e-38, %v1352_v26 }
 0x2f0   : > { %v973_v2 = vsub.f32 %v3552_v59, %v895_v6  ;;  %v974_v27 = vsub.f32 %v3554_v58, %v895_v6  ;;  %v3778_v58 = vpop.f32.mrf.mxu1  ;;  %v1338_v56 = vsel %vm1335_vm15, %v1337_v45, %v1333_v39  ;;  %vm1348_vm1 = vmor %vm1346_vm14, %vm1347_vm13  ;;  %vm1362_vm4 = vweird.f32 %v3758_v10 }
 0x2f1   : > { %v1343_v4 = vsub.f32 1.0, %v1342_v3  ;;  %v1339_v6 = vmul.f32 %v3521_v15, %v1338_v56  ;;  %v1340_v38 = vmul.f32 %v3523_v21, %v1338_v56  ;;  %v917_v21 = vmax.f32 %v3778_v58, %v3765_v23 }
 0x2f2   : > { %v3769_v33 = vpop.eup %2864  ;;  %v1069_v20 = vmul.f32 1.442695, %v973_v2  ;;  %v1071_v40 = vmul.f32 1.442695, %v974_v27 }
 0x2f3   : > { %v3776_v59 = vpop.eup %2866  ;;  %v1344_v19 = vmul.f32 %v2863_v9, %v1343_v4 }
 0x2f4   : > { %2868 = vpow2.f32 %v1069_v20  ;;  %v1178_v28 = vadd.f32 %v3776_v59, %v3769_v33 }
 0x2f5   : > { %2870 = vpow2.f32 %v1071_v40  ;;  %v1345_v22 = vadd.f32 %v2863_v9, %v1344_v19 }
 0x2f6   : > { %1179 = vadd.xlane.f32.xlu1 %v1178_v28  ;;  %915 = vmax.xlane.f32.xlu0 %v914_v30 }
 0x2f7   : > { %v898_v1 = vpop.xlane.xlu0 %897  ;;  %v1349_v13 = vsel %vm1348_vm1, %v2863_v9, %v1345_v22  ;;  %v3799_v9 = vpop.f32.mrf.mxu3 }
 0x2f8   : > { %v975_v50 = vsub.f32 %v3564_v46, %v898_v1  ;;  %v976_v60 = vsub.f32 %v3566_v53, %v898_v1  ;;  %v1354_v3 = vsel %vm1351_vm2, %v1353_v55, %v1349_v13  ;;  %v3803_v53 = vpop.f32.mrf.mxu1 }
 0x2f9   : > { %v1355_v14 = vmul.f32 %v3544_v32, %v1354_v3  ;;  %v1356_v11 = vmul.f32 %v3546_v37, %v1354_v3  ;;  %v920_v30 = vmax.f32 %v3803_v53, %v3799_v9 }
 0x2fa   : > { %v3795_v2 = vpop.eup %2868  ;;  %v1073_v27 = vmul.f32 1.442695, %v975_v50  ;;  %v1075_v4 = vmul.f32 1.442695, %v976_v60 }
 0x2fb   : > { %4534 = vst [vmem:[#allocation9_spill] sm:$0xff] %v3795_v2  ;;  %v3797_v41 = vpop.eup %2870  ;;  %v1747_v46 = vpack.c.bf16 %v1355_v14, %v1339_v6  ;;  %v1748_v26 = vpack.c.bf16 %v1356_v11, %v1340_v38  ;;  %v2704_v38 = vld [vmem:[%s4501_s5 + $0x18] sm:$0xff] }
 0x2fc   : > { %4535 = vst [vmem:[#allocation10_spill] sm:$0xff] %v3797_v41  ;;  %2872 = vpow2.f32 %v1073_v27  ;;  %v1181_v15 = vadd.f32 %v3797_v41, %v3795_v2  ;;  %2183 = vmatpush.bf16.msrb.mxu2 %v2704_v38  ;;  %v2703_v27 = vld [vmem:[%s4501_s5 + $0x10] sm:$0xff]  ;;  %v1366_v38 = vand.u32 2147483647, %v3758_v10 }
 0x2fd   : > { %2874 = vpow2.f32 %v1075_v4  ;;  %1924 = vmatmul.bf16.gmra.mxu3 %v1747_v46  ;;  %2013 = vmatmul.bf16.gmra.mxu1 %v1748_v26  ;;  %v2702_v26 = vld [vmem:[%s4501_s5 + $0x8] sm:$0xff] }
 0x2fe   : > { %1182 = vadd.xlane.f32.xlu1 %v1181_v15  ;;  %918 = vmax.xlane.f32.xlu0 %v917_v21  ;;  %vm1367_vm8 = vcmp.eq.f32.partialorder %v1366_v38, 8.507059e+37 }
 0x2ff   : > { %v901_v32 = vpop.xlane.xlu0 %900  ;;  %v3815_v28 = vpop.f32.mrf.mxu3 }
 0x300   : > { %v977_v37 = vsub.f32 %v3572_v63, %v901_v32  ;;  %v978_v20 = vsub.f32 %v3570_v62, %v901_v32  ;;  %v3819_v63 = vpop.f32.mrf.mxu1  ;;  %2184 = vmatpush.bf16.msrb.mxu2 %v2703_v27  ;;  %v2701_v32 = vld [vmem:[%s4501_s5] sm:$0xff] }
 0x301   : > { %v923_v56 = vmax.f32 %v3819_v63, %v3815_v28 }
 0x302   : > { %v3809_v40 = vpop.eup %2872  ;;  %v1077_v16 = vmul.f32 1.442695, %v977_v37  ;;  %v1079_v19 = vmul.f32 1.442695, %v978_v20 }
 0x303   : > { %4536 = vst [vmem:[#allocation11_spill] sm:$0xff] %v3809_v40  ;;  %v3811_v39 = vpop.eup %2874 }
 0x304   : > { %4537 = vst [vmem:[#allocation12_spill] sm:$0xff] %v3811_v39  ;;  %2876 = vpow2.f32 %v1077_v16  ;;  %v1184_v29 = vadd.f32 %v3811_v39, %v3809_v40  ;;  %2185 = vmatpush.bf16.msrb.mxu2 %v2702_v26 }
 0x305   : > { %2878 = vpow2.f32 %v1079_v19 }
 0x306   : > { %1185 = vadd.xlane.f32.xlu2 %v1184_v29  ;;  %921 = vmax.xlane.f32.xlu1 %v920_v30  ;;  %2880 = vrcp.f32 %v3758_v10 }
 0x307   : > { %v3829_v55 = vpop.f32.mrf.mxu3 }
 0x308   : > { %v3831_v1 = vpop.f32.mrf.mxu1  ;;  %2186 = vmatpush.bf16.msrb.mxu2 %v2701_v32 }
 0x309   : > { %v926_v13 = vmax.f32 %v3831_v1, %v3829_v55 }
 0x30a   : > { %v3821_v62 = vpop.eup %2876 }
 0x30b   : > { %4538 = vst [vmem:[#allocation13_spill] sm:$0xff] %v3821_v62  ;;  %v3823_v45 = vpop.eup %2878 }
 0x30c   : > { %4539 = vst [vmem:[#allocation14_spill] sm:$0xff] %v3823_v45  ;;  %v1187_v22 = vadd.f32 %v3823_v45, %v3821_v62  ;;  %v2881_v14 = vpop.eup %2880 }
 0x30d   : > { %v1358_v4 = vmul.f32 %v2881_v14, %v3758_v10  ;;  %vm1363_vm3 = vweird.f32 %v2881_v14 }
 0x30e   : > { %1188 = vadd.xlane.f32.xlu2 %v1187_v22  ;;  %924 = vmax.xlane.f32.xlu1 %v923_v56  ;;  %vm3871_vm5 = vmor %vm1362_vm4, %vm1363_vm3 }
 0x30f   : > { %v3835_v50 = vpop.f32.mrf.mxu3  ;;  %v1359_v21 = vsub.f32 1.0, %v1358_v4 }
 0x310   : > { %4540 = vst [vmem:[#allocation15_spill] sm:$0xff] %v3835_v50  ;;  %v3837_v60 = vpop.f32.mrf.mxu1 }
 0x311   : > { %4541 = vst [vmem:[#allocation16_spill] sm:$0xff] %v3837_v60  ;;  %v929_v3 = vmax.f32 %v3837_v60, %v3835_v50  ;;  %v1360_v20 = vmul.f32 %v2881_v14, %v1359_v21 }
 0x313   : > { %v1361_v56 = vadd.f32 %v2881_v14, %v1360_v20 }
 0x315   : > { %v1365_v26 = vsel %vm3871_vm5, %v2881_v14, %v1361_v56 }
 0x316   : > { %927 = vmax.xlane.f32.xlu2 %v926_v13  ;;  %v1368_v13 = vand.u32 2147483648, %v3758_v10 }
 0x317   : > { %v3847_v11 = vpop.f32.mrf.mxu3 }
 0x318   : > { %v3841_v6 = vpop.f32.mrf.mxu1  ;;  %v1369_v45 = vor.u32 1.1754944e-38, %v1368_v13 }
 0x31a   : > { %v1370_v27 = vsel %vm1367_vm8, %v1369_v45, %v1365_v26 }
 0x31b   : > { %v1371_v2 = vmul.f32 %v3556_v42, %v1370_v27  ;;  %v1372_v39 = vmul.f32 %v3558_v43, %v1370_v27 }
 0x31e   : > { %930 = vmax.xlane.f32.xlu2 %v929_v3 }
 0x31f   : > { %v3861_v37 = vpop.f32.mrf.mxu3 }
 0x320   : > { %v3853_v46 = vpop.f32.mrf.mxu1 }
 0x327   : > { %v3879_v20 = vpop.f32.mrf.mxu3 }
 0x328   : > { %v3865_v30 = vpop.f32.mrf.mxu1 }
 0x339   : > { %v1162_v15 = vpop.xlane.xlu1 %1161 }
 0x33a   : > { %2882 = vrcp.f32 %v1162_v15  ;;  %v1384_v4 = vand.u32 2147483648, %v1162_v15  ;;  %vm1378_vm7 = vweird.f32 %v1162_v15 }
 0x33c   : > { %v1385_v13 = vor.u32 1.1754944e-38, %v1384_v4 }
 0x340   : > { %v2883_v16 = vpop.eup %2882 }
 0x341   : > { %v1374_v19 = vmul.f32 %v2883_v16, %v1162_v15  ;;  %v3863_v29 = vpop.xlane.xlu1 %1164  ;;  %vm1379_vm6 = vweird.f32 %v2883_v16 }
 0x342   : > { %2884 = vrcp.f32 %v3863_v29  ;;  %vm1380_vm9 = vmor %vm1378_vm7, %vm1379_vm6  ;;  %vm1394_vm12 = vweird.f32 %v3863_v29 }
 0x343   : > { %v1375_v22 = vsub.f32 1.0, %v1374_v19 }
 0x345   : > { %v1376_v3 = vmul.f32 %v2883_v16, %v1375_v22  ;;  %v1382_v22 = vand.u32 2147483647, %v1162_v15 }
 0x347   : > { %v1377_v21 = vadd.f32 %v2883_v16, %v1376_v3  ;;  %vm1383_vm10 = vcmp.eq.f32.partialorder %v1382_v22, 8.507059e+37 }
 0x348   : > { %v3877_v32 = vpop.eup %2884 }
 0x349   : > { %v3881_v19 = vpop.xlane.xlu2 %1167  ;;  %v1390_v10 = vmul.f32 %v3877_v32, %v3863_v29  ;;  %v904_v62 = vpop.xlane.xlu1 %903  ;;  %v1381_v60 = vsel %vm1380_vm9, %v2883_v16, %v1377_v21  ;;  %vm1395_vm11 = vweird.f32 %v3877_v32 }
 0x34a   : > { %2886 = vrcp.f32 %v3881_v19  ;;  %v979_v14 = vsub.f32 %v3596_v51, %v904_v62  ;;  %v980_v56 = vsub.f32 %v3592_v48, %v904_v62  ;;  %v1999_v3 = vpop.f32.mrf.mxu1  ;;  %v1386_v40 = vsel %vm1383_vm10, %v1385_v13, %v1381_v60  ;;  %vm3912_vm14 = vmor %vm1394_vm12, %vm1395_vm11 }
 0x34b   : > { %v1391_v50 = vsub.f32 1.0, %v1390_v10  ;;  %v1387_v48 = vmul.f32 %v3605_v54, %v1386_v40  ;;  %v1388_v51 = vmul.f32 %v3609_v36, %v1386_v40  ;;  %v1398_v36 = vand.u32 2147483647, %v3863_v29 }
 0x34c   : > { %v1081_v41 = vmul.f32 1.442695, %v979_v14  ;;  %v1083_v15 = vmul.f32 1.442695, %v980_v56  ;;  %v1416_v22 = vand.u32 2147483648, %v3881_v19  ;;  %vm1410_vm15 = vweird.f32 %v3881_v19 }
 0x34d   : > { %v1392_v38 = vmul.f32 %v3877_v32, %v1391_v50  ;;  %v1749_v16 = vpack.c.bf16 %v1387_v48, %v1371_v2  ;;  %v1750_v4 = vpack.c.bf16 %v1388_v51, %v1372_v39  ;;  %v1414_v27 = vand.u32 2147483647, %v3881_v19 }
 0x34e   : > { %2888 = vpow2.f32 %v1081_v41  ;;  %v1400_v41 = vand.u32 2147483648, %v3863_v29  ;;  %vm3923_vm1 = vcmp.eq.f32.partialorder %v1398_v36, 8.507059e+37 }
 0x34f   : > { %2890 = vpow2.f32 %v1083_v15  ;;  %v1393_v43 = vadd.f32 %v3877_v32, %v1392_v38  ;;  %1929 = vmatmul.bf16.gmra.mxu3 %v1749_v16  ;;  %2018 = vmatmul.bf16.gmra.mxu1 %v1750_v4  ;;  %vm1415_vm3 = vcmp.eq.f32.partialorder %v1414_v27, 8.507059e+37 }
 0x350   : > { %v2887_v62 = vpop.eup %2886  ;;  %v1910_v26 = vpop.f32.mrf.mxu3  ;;  %v1401_v38 = vor.u32 1.1754944e-38, %v1400_v41 }
 0x351   : > { %v1406_v45 = vmul.f32 %v2887_v62, %v3881_v19  ;;  %v3895_v21 = vpop.xlane.xlu2 %1170  ;;  %v907_v42 = vpop.xlane.xlu1 %906  ;;  %vm1411_vm13 = vweird.f32 %v2887_v62  ;;  %v1397_v13 = vsel %vm3912_vm14, %v3877_v32, %v1393_v43  ;;  %v1417_v19 = vor.u32 1.1754944e-38, %v1416_v22 }
 0x352   : > { %2892 = vrcp.f32 %v3895_v21  ;;  %v2001_v54 = vpop.f32.mrf.mxu1  ;;  %v981_v2 = vsub.f32 %v3633_v18, %v907_v42  ;;  %v982_v40 = vsub.f32 %v3625_v12, %v907_v42  ;;  %vm3927_vm2 = vmor %vm1410_vm15, %vm1411_vm13  ;;  %v1402_v36 = vsel %vm3923_vm1, %v1401_v38, %v1397_v13 }
 0x353   : > { %v1407_v50 = vsub.f32 1.0, %v1406_v45  ;;  %v2000_v45 = vadd.f32 %v1999_v3, %v1910_v26  ;;  %v1403_v14 = vmul.f32 %v3631_v17, %v1402_v36  ;;  %vm1426_vm5 = vweird.f32 %v3895_v21 }
 0x354   : > { %v3904_v39 = vpop.eup %2888  ;;  %v1085_v18 = vmul.f32 1.442695, %v981_v2  ;;  %v1087_v12 = vmul.f32 1.442695, %v982_v40 }
 0x355   : > { %v1408_v60 = vmul.f32 %v2887_v62, %v1407_v50  ;;  %v3908_v10 = vpop.eup %2890 }
 0x356   : > { %v1190_v29 = vadd.f32 %v3908_v10, %v3904_v39  ;;  %2894 = vpow2.f32 %v1085_v18 }
 0x357   : > { %v1409_v56 = vadd.f32 %v2887_v62, %v1408_v60  ;;  %2896 = vpow2.f32 %v1087_v12 }
 0x358   : > { %v3931_v51 = vpop.eup %2892  ;;  %1191 = vadd.xlane.f32.xlu0 %v1190_v29  ;;  %v1912_v16 = vpop.f32.mrf.mxu3 }
 0x359   : > { %v3933_v4 = vpop.xlane.xlu0 %1173  ;;  %v1413_v32 = vsel %vm3927_vm2, %v2887_v62, %v1409_v56  ;;  %v1422_v42 = vmul.f32 %v3931_v51, %v3895_v21  ;;  %v2002_v43 = vadd.f32 %v2001_v54, %v1912_v16  ;;  %v910_v50 = vpop.xlane.xlu2 %909  ;;  %vm1427_vm4 = vweird.f32 %v3931_v51 }
 0x35a   : > { %2898 = vrcp.f32 %v3933_v4  ;;  %v983_v3 = vsub.f32 %v3670_v49, %v910_v50  ;;  %v984_v26 = vsub.f32 %v3656_v52, %v910_v50  ;;  %v2004_v41 = vpop.f32.mrf.mxu1  ;;  %v1418_v60 = vsel %vm1415_vm3, %v1417_v19, %v1413_v32  ;;  %vm3974_vm7 = vmor %vm1426_vm5, %vm1427_vm4 }
 0x35b   : > { %v1423_v2 = vsub.f32 1.0, %v1422_v42  ;;  %v2079_v40 = vpack.c.bf16 %v2002_v43, %v2000_v45  ;;  %v1419_v54 = vmul.f32 %v3654_v31, %v1418_v60  ;;  %v1404_v49 = vmul.f32 %v3638_v35, %v1402_v36 }
 0x35c   : > { %v1089_v62 = vmul.f32 1.442695, %v983_v3  ;;  %v1091_v22 = vmul.f32 1.442695, %v984_v26  ;;  %v3946_v18 = vpop.eup %2894  ;;  %v1420_v52 = vmul.f32 %v3665_v57, %v1418_v60  ;;  %v1430_v32 = vand.u32 2147483647, %v3895_v21 }
 0x35d   : > { %v1424_v12 = vmul.f32 %v3931_v51, %v1423_v2  ;;  %2645 = vmatmul.msk.bf16.vlgmr.msrb.gmra.mxu2 %vm618_vm0, %v2079_v40  ;;  %v3952_v56 = vpop.eup %2896  ;;  %v1751_v27 = vpack.c.bf16 %v1419_v54, %v1403_v14  ;;  %v1432_v42 = vand.u32 2147483648, %v3895_v21  ;;  %v1448_v43 = vand.u32 2147483648, %v3933_v4 }
 0x35e   : > { %2900 = vpow2.f32 %v1089_v62  ;;  %v1752_v13 = vpack.c.bf16 %v1420_v52, %v1404_v49  ;;  %v1193_v17 = vadd.f32 %v3952_v56, %v3946_v18  ;;  %vm1442_vm8 = vweird.f32 %v3933_v4 }
 0x35f   : > { %2902 = vpow2.f32 %v1091_v22  ;;  %v1425_v38 = vadd.f32 %v3931_v51, %v1424_v12  ;;  %1934 = vmatmul.bf16.gmra.mxu3 %v1751_v27  ;;  %v1446_v21 = vand.u32 2147483647, %v3933_v4  ;;  %v1433_v62 = vor.u32 1.1754944e-38, %v1432_v42 }
 0x360   : > { %v2899_v29 = vpop.eup %2898  ;;  %v1915_v15 = vpop.f32.mrf.mxu3  ;;  %1194 = vadd.xlane.f32.xlu0 %v1193_v17  ;;  %2023 = vmatmul.bf16.gmra.mxu1 %v1752_v13  ;;  %v932_v14 = vmax.f32 %v3841_v6, %v3847_v11  ;;  %vm1431_vm10 = vcmp.eq.f32.partialorder %v1430_v32, 8.507059e+37 }
 0x361   : > { %v1438_v31 = vmul.f32 %v2899_v29, %v3933_v4  ;;  %v913_v35 = vpop.xlane.xlu2 %912  ;;  %v3959_v57 = vpop.xlane.xlu0 %1176  ;;  %vm1443_vm6 = vweird.f32 %v2899_v29  ;;  %v1429_v60 = vsel %vm3974_vm7, %v3931_v51, %v1425_v38  ;;  %v1449_v4 = vor.u32 1.1754944e-38, %v1448_v43 }
 0x362   : > { %v985_v19 = vsub.f32 %v3700_v25, %v913_v35  ;;  %v986_v45 = vsub.f32 %v3694_v34, %v913_v35  ;;  %2904 = vrcp.f32 %v3959_v57  ;;  %v2006_v16 = vpop.f32.mrf.mxu1  ;;  %vm3985_vm9 = vmor %vm1442_vm8, %vm1443_vm6  ;;  %v2005_v12 = vadd.f32 %v2004_v41, %v1915_v15 }
 0x363   : > { %v1439_v48 = vsub.f32 1.0, %v1438_v31  ;;  %v1434_v31 = vsel %vm1431_vm10, %v1433_v62, %v1429_v60  ;;  %vm1447_vm11 = vcmp.eq.f32.partialorder %v1446_v21, 8.507059e+37  ;;  %vm1458_vm13 = vweird.f32 %v3959_v57 }
 0x364   : > { %v3968_v50 = vpop.eup %2900  ;;  %v1093_v3 = vmul.f32 1.442695, %v985_v19  ;;  %v1095_v26 = vmul.f32 1.442695, %v986_v45  ;;  %v1435_v42 = vmul.f32 %v3686_v61, %v1434_v31 }
 0x365   : > { %v1440_v36 = vmul.f32 %v2899_v29, %v1439_v48  ;;  %v3970_v25 = vpop.eup %2902 }
 0x366   : > { %2906 = vpow2.f32 %v1093_v3  ;;  %v1196_v40 = vadd.f32 %v3970_v25, %v3968_v50 }
 0x367   : > { %v1441_v2 = vadd.f32 %v2899_v29, %v1440_v36  ;;  %2908 = vpow2.f32 %v1095_v26 }
 0x368   : > { %v3991_v54 = vpop.eup %2904  ;;  %1197 = vadd.xlane.f32.xlu1 %v1196_v40  ;;  %v1917_v49 = vpop.f32.mrf.mxu3  ;;  %933 = vmax.xlane.f32.xlu0 %v932_v14  ;;  %v1462_v14 = vand.u32 2147483647, %v3959_v57 }
 0x369   : > { %v3993_v52 = vpop.xlane.xlu1 %1179  ;;  %v1445_v51 = vsel %vm3985_vm9, %v2899_v29, %v1441_v2  ;;  %v1454_v27 = vmul.f32 %v3991_v54, %v3959_v57  ;;  %v2007_v13 = vadd.f32 %v2006_v16, %v1917_v49  ;;  %v916_v17 = vpop.xlane.xlu0 %915  ;;  %vm1459_vm12 = vweird.f32 %v3991_v54 }
 0x36a   : > { %2910 = vrcp.f32 %v3993_v52  ;;  %v987_v38 = vsub.f32 %v3742_v8, %v916_v17  ;;  %v988_v41 = vsub.f32 %v3733_v47, %v916_v17  ;;  %v2009_v15 = vpop.f32.mrf.mxu1  ;;  %v1450_v19 = vsel %vm1447_vm11, %v1449_v4, %v1445_v51  ;;  %vm4034_vm15 = vmor %vm1458_vm13, %vm1459_vm12 }
 0x36b   : > { %v1455_v35 = vsub.f32 1.0, %v1454_v27  ;;  %v2080_v48 = vpack.c.bf16 %v2007_v13, %v2005_v12  ;;  %v1451_v16 = vmul.f32 %v3713_v0, %v1450_v19  ;;  %v1436_v47 = vmul.f32 %v3691_v7, %v1434_v31 }
 0x36c   : > { %v4002_v45 = vpop.eup %2906  ;;  %v1097_v29 = vmul.f32 1.442695, %v987_v38  ;;  %v1099_v32 = vmul.f32 1.442695, %v988_v41  ;;  %v1452_v8 = vmul.f32 %v3722_v5, %v1450_v19  ;;  %v935_v0 = vmax.f32 %v3853_v46, %v3861_v37 }
 0x36d   : > { %v4006_v43 = vpop.eup %2908  ;;  %v1456_v36 = vmul.f32 %v3991_v54, %v1455_v35  ;;  %2646 = vmatmul.msk.bf16.gmra.mxu2 %vm618_vm0, %v2080_v48  ;;  %v1753_v26 = vpack.c.bf16 %v1451_v16, %v1435_v42  ;;  %v1464_v4 = vand.u32 2147483648, %v3959_v57  ;;  %v1480_v12 = vand.u32 2147483648, %v3993_v52 }
 0x36e   : > { %2912 = vpow2.f32 %v1097_v29  ;;  %v1199_v3 = vadd.f32 %v4006_v43, %v4002_v45  ;;  %v1754_v61 = vpack.c.bf16 %v1452_v8, %v1436_v47  ;;  %vm1474_vm1 = vweird.f32 %v3993_v52 }
 0x36f   : > { %2914 = vpow2.f32 %v1099_v32  ;;  %v1457_v40 = vadd.f32 %v3991_v54, %v1456_v36  ;;  %1939 = vmatmul.bf16.gmra.mxu3 %v1753_v26  ;;  %v1478_v57 = vand.u32 2147483647, %v3993_v52  ;;  %v938_v31 = vmax.f32 %v3865_v30, %v3879_v20 }
 0x370   : > { %v2911_v34 = vpop.eup %2910  ;;  %1200 = vadd.xlane.f32.xlu1 %v1199_v3  ;;  %v1920_v2 = vpop.f32.mrf.mxu3  ;;  %936 = vmax.xlane.f32.xlu0 %v935_v0  ;;  %v1465_v48 = vor.u32 1.1754944e-38, %v1464_v4  ;;  %vm1463_vm3 = vcmp.eq.f32.partialorder %v1462_v14, 8.507059e+37 }
 0x371   : > { %v1470_v21 = vmul.f32 %v2911_v34, %v3993_v52  ;;  %v919_v7 = vpop.xlane.xlu0 %918  ;;  %v4019_v5 = vpop.xlane.xlu1 %1182  ;;  %2028 = vmatmul.bf16.gmra.mxu1 %v1754_v61  ;;  %vm1475_vm14 = vweird.f32 %v2911_v34  ;;  %v1461_v35 = vsel %vm4034_vm15, %v3991_v54, %v1457_v40  ;;  %v1481_v52 = vor.u32 1.1754944e-38, %v1480_v12 }
 0x372   : > { %v989_v62 = vsub.f32 %v3778_v58, %v919_v7  ;;  %v990_v22 = vsub.f32 %v3765_v23, %v919_v7  ;;  %2916 = vrcp.f32 %v4019_v5  ;;  %v2011_v49 = vpop.f32.mrf.mxu1  ;;  %vm4047_vm2 = vmor %vm1474_vm1, %vm1475_vm14  ;;  %v2010_v32 = vadd.f32 %v2009_v15, %v1920_v2 }
 0x373   : > { %v1471_v60 = vsub.f32 1.0, %v1470_v21  ;;  %v1466_v3 = vsel %vm1463_vm3, %v1465_v48, %v1461_v35  ;;  %vm1479_vm4 = vcmp.eq.f32.partialorder %v1478_v57, 8.507059e+37  ;;  %vm1490_vm6 = vweird.f32 %v4019_v5 }
 0x374   : > { %v4028_v51 = vpop.eup %2912  ;;  %v1101_v13 = vmul.f32 1.442695, %v989_v62  ;;  %v1103_v17 = vmul.f32 1.442695, %v990_v22 }
 0x375   : > { %v1472_v27 = vmul.f32 %v2911_v34, %v1471_v60  ;;  %v4030_v58 = vpop.eup %2914 }
 0x376   : > { %2918 = vpow2.f32 %v1101_v13  ;;  %v1202_v41 = vadd.f32 %v4030_v58, %v4028_v51 }
 0x377   : > { %v1473_v38 = vadd.f32 %v2911_v34, %v1472_v27  ;;  %2920 = vpow2.f32 %v1103_v17 }
 0x378   : > { %v4051_v29 = vpop.eup %2916  ;;  %939 = vmax.xlane.f32.xlu1 %v938_v31  ;;  %1203 = vadd.xlane.f32.xlu2 %v1202_v41  ;;  %v1922_v42 = vpop.f32.mrf.mxu3 }
 0x379   : > { %v4053_v16 = vpop.xlane.xlu2 %1185  ;;  %v1477_v36 = vsel %vm4047_vm2, %v2911_v34, %v1473_v38  ;;  %v1486_v54 = vmul.f32 %v4051_v29, %v4019_v5  ;;  %v2012_v47 = vadd.f32 %v2011_v49, %v1922_v42  ;;  %v922_v8 = vpop.xlane.xlu1 %921  ;;  %v1467_v34 = vmul.f32 %v3746_v44, %v1466_v3 }
 0x37a   : > { %2922 = vrcp.f32 %v4053_v16  ;;  %v991_v26 = vsub.f32 %v3803_v53, %v922_v8  ;;  %v992_v0 = vsub.f32 %v3799_v9, %v922_v8  ;;  %v1482_v21 = vsel %vm1479_vm4, %v1481_v52, %v1477_v36  ;;  %v2014_v14 = vpop.f32.mrf.mxu1 }
 0x37b   : > { %v1487_v15 = vsub.f32 1.0, %v1486_v54  ;;  %v2081_v61 = vpack.c.bf16 %v2012_v47, %v2010_v32  ;;  %v1483_v7 = vmul.f32 %v3769_v33, %v1482_v21  ;;  %v1468_v53 = vmul.f32 %v3750_v24, %v1466_v3 }
 0x37c   : > { %v4062_v2 = vpop.eup %2918  ;;  %v1105_v40 = vmul.f32 1.442695, %v991_v26  ;;  %v1107_v22 = vmul.f32 1.442695, %v992_v0  ;;  %v1484_v9 = vmul.f32 %v3776_v59, %v1482_v21  ;;  %vm1491_vm5 = vweird.f32 %v4051_v29 }
 0x37d   : > { %v4066_v60 = vpop.eup %2920  ;;  %v1488_v62 = vmul.f32 %v4051_v29, %v1487_v15  ;;  %2647 = vmatmul.msk.bf16.gmra.mxu2 %vm618_vm0, %v2081_v61  ;;  %v1755_v12 = vpack.c.bf16 %v1483_v7, %v1467_v34  ;;  %v1496_v24 = vand.u32 2147483648, %v4019_v5  ;;  %v1494_v38 = vand.u32 2147483647, %v4019_v5  ;;  %vm4088_vm7 = vmor %vm1490_vm6, %vm1491_vm5  ;;  %v4560_v34 = vld [vmem:[#allocation11_spill] sm:$0xff] }
 0x37e   : > { %2924 = vpow2.f32 %v1105_v40  ;;  %v1205_v4 = vadd.f32 %v4066_v60, %v4062_v2  ;;  %v1756_v33 = vpack.c.bf16 %v1484_v9, %v1468_v53  ;;  %v1510_v41 = vand.u32 2147483647, %v4053_v16 }
 0x37f   : > { %2926 = vpow2.f32 %v1107_v22  ;;  %v1489_v17 = vadd.f32 %v4051_v29, %v1488_v62  ;;  %1944 = vmatmul.bf16.gmra.mxu3 %v1755_v12  ;;  %v1512_v35 = vand.u32 2147483648, %v4053_v16  ;;  %vm1506_vm9 = vweird.f32 %v4053_v16  ;;  %v4561_v62 = vld [vmem:[#allocation12_spill] sm:$0xff] }
 0x380   : > { %v2923_v44 = vpop.eup %2922  ;;  %1206 = vadd.xlane.f32.xlu2 %v1205_v4  ;;  %v1925_v27 = vpop.f32.mrf.mxu3  ;;  %vm1495_vm10 = vcmp.eq.f32.partialorder %v1494_v38, 8.507059e+37  ;;  %vm1511_vm12 = vcmp.eq.f32.partialorder %v1510_v41, 8.507059e+37 }
 0x381   : > { %v1502_v49 = vmul.f32 %v2923_v44, %v4053_v16  ;;  %v4075_v13 = vpop.xlane.xlu2 %1188  ;;  %v925_v59 = vpop.xlane.xlu1 %924  ;;  %2033 = vmatmul.bf16.gmra.mxu1 %v1756_v33  ;;  %vm1507_vm8 = vweird.f32 %v2923_v44  ;;  %v1493_v5 = vsel %vm4088_vm7, %v4051_v29, %v1489_v17  ;;  %v1513_v47 = vor.u32 1.1754944e-38, %v1512_v35 }
 0x382   : > { %v993_v57 = vsub.f32 %v3819_v63, %v925_v59  ;;  %v994_v31 = vsub.f32 %v3815_v28, %v925_v59  ;;  %v1497_v28 = vor.u32 1.1754944e-38, %v1496_v24  ;;  %vm1508_vm11 = vmor %vm1506_vm9, %vm1507_vm8  ;;  %v2016_v8 = vpop.f32.mrf.mxu1  ;;  %v2015_v3 = vadd.f32 %v2014_v14, %v1925_v27  ;;  %v4562_v14 = vld [vmem:[#allocation9_spill] sm:$0xff]  ;;  %v4564_v59 = vld [vmem:[#allocation16_spill] sm:$0xff] }
 0x383   : > { %v1503_v23 = vsub.f32 1.0, %v1502_v49  ;;  %v4563_v49 = vld [vmem:[#allocation10_spill] sm:$0xff]  ;;  %vm1522_vm14 = vweird.f32 %v4075_v13 }
 0x384   : > { %v4086_v48 = vpop.eup %2924  ;;  %v1109_v32 = vmul.f32 1.442695, %v993_v57  ;;  %v1111_v63 = vmul.f32 1.442695, %v994_v31  ;;  %v1498_v61 = vsel %vm1495_vm10, %v1497_v28, %v1493_v5  ;;  %v4565_v57 = vld [vmem:[#allocation15_spill] sm:$0xff] }
 0x385   : > { %v1504_v52 = vmul.f32 %v2923_v44, %v1503_v23  ;;  %v4092_v42 = vpop.eup %2926  ;;  %v1499_v33 = vmul.f32 %v4562_v14, %v1498_v61  ;;  %v1500_v27 = vmul.f32 %v4563_v49, %v1498_v61 }
 0x386   : > { %2928 = vpow2.f32 %v1109_v32  ;;  %v1208_v54 = vadd.f32 %v4092_v42, %v4086_v48 }
 0x387   : > { %v1505_v36 = vadd.f32 %v2923_v44, %v1504_v52  ;;  %2930 = vpow2.f32 %v1111_v63 }
 0x388   : > { %1209 = vadd.xlane.f32.xlu0 %v1208_v54  ;;  %v1927_v26 = vpop.f32.mrf.mxu3 }
 0x389   : > { %v928_v15 = vpop.xlane.xlu2 %927  ;;  %v1509_v0 = vsel %vm1508_vm11, %v2923_v44, %v1505_v36  ;;  %v2017_v29 = vadd.f32 %v2016_v8, %v1927_v26 }
 0x38a   : > { %v995_v21 = vsub.f32 %v3831_v1, %v928_v15  ;;  %v996_v16 = vsub.f32 %v3829_v55, %v928_v15  ;;  %v1514_v40 = vsel %vm1511_vm12, %v1513_v47, %v1509_v0 }
 0x38b   : > { %v1515_v7 = vmul.f32 %v4560_v34, %v1514_v40  ;;  %v1516_v22 = vmul.f32 %v4561_v62, %v1514_v40  ;;  %v2082_v53 = vpack.c.bf16 %v2017_v29, %v2015_v3  ;;  %v1526_v40 = vand.u32 2147483647, %v4075_v13  ;;  %v2980_v62 = vld [vmem:[%s3265_s29] sm:$0xff] }
 0x38c   : > { %v1113_v9 = vmul.f32 1.442695, %v995_v21  ;;  %v1115_v4 = vmul.f32 1.442695, %v996_v16  ;;  %v4104_v12 = vpop.eup %2928  ;;  %v1528_v16 = vand.u32 2147483648, %v4075_v13 }
 0x38d   : > { %v4108_v44 = vpop.eup %2930  ;;  %2648 = vmatmul.msk.bf16.gmra.mxu2 %vm618_vm0, %v2082_v53  ;;  %v1757_v55 = vpack.c.bf16 %v1515_v7, %v1499_v33  ;;  %v1758_v1 = vpack.c.bf16 %v1516_v22, %v1500_v27  ;;  %vm1527_vm4 = vcmp.eq.f32.partialorder %v1526_v40, 8.507059e+37 }
 0x38e   : > { %2932 = vpow2.f32 %v1113_v9  ;;  %v1211_v17 = vadd.f32 %v4108_v44, %v4104_v12  ;;  %v1529_v14 = vor.u32 1.1754944e-38, %v1528_v16 }
 0x38f   : > { %2934 = vpow2.f32 %v1115_v4  ;;  %1949 = vmatmul.bf16.gmra.mxu3 %v1757_v55 }
 0x390   : > { %1212 = vadd.xlane.f32.xlu1 %v1211_v17 }
 0x391   : > { %v931_v24 = vpop.xlane.xlu2 %930  ;;  %2038 = vmatmul.bf16.gmra.mxu1 %v1758_v1 }
 0x392   : > { %v997_v23 = vsub.f32 %v4564_v59, %v931_v24  ;;  %v998_v31 = vsub.f32 %v4565_v57, %v931_v24 }
 0x394   : > { %v4115_v38 = vpop.eup %2932  ;;  %v1117_v41 = vmul.f32 1.442695, %v997_v23  ;;  %v1119_v35 = vmul.f32 1.442695, %v998_v31  ;;  %v4160_v31 = vld [vmem:[%s4502_s6] ss:$0 sm:$0xff] }
 0x395   : > { %v4117_v19 = vpop.eup %2934 }
 0x396   : > { %2936 = vpow2.f32 %v1117_v41  ;;  %v1214_v52 = vadd.f32 %v4117_v19, %v4115_v38 }
 0x397   : > { %2938 = vpow2.f32 %v1119_v35 }
 0x398   : > { %1215 = vadd.xlane.f32.xlu2 %v1214_v52  ;;  %2940 = vrcp.f32 %v4075_v13 }
 0x39c   : > { %v4121_v32 = vpop.eup %2936 }
 0x39d   : > { %v4123_v63 = vpop.eup %2938 }
 0x39e   : > { %v1217_v28 = vadd.f32 %v4123_v63, %v4121_v32  ;;  %v2941_v5 = vpop.eup %2940 }
 0x39f   : > { %v1518_v36 = vmul.f32 %v2941_v5, %v4075_v13  ;;  %vm1523_vm13 = vweird.f32 %v2941_v5 }
 0x3a0   : > { %1218 = vadd.xlane.f32.xlu0 %v1217_v28  ;;  %vm4135_vm1 = vmor %vm1522_vm14, %vm1523_vm13 }
 0x3a1   : > { %v1519_v47 = vsub.f32 1.0, %v1518_v36 }
 0x3a3   : > { %v1520_v3 = vmul.f32 %v2941_v5, %v1519_v47  ;;  %v4570_v47 = vld [vmem:[#allocation13_spill] sm:$0xff] }
 0x3a5   : > { %v1521_v0 = vadd.f32 %v2941_v5, %v1520_v3 }
 0x3a7   : > { %v1525_v4 = vsel %vm4135_vm1, %v2941_v5, %v1521_v0 }
 0x3a8   : > { %v1530_v24 = vsel %vm1527_vm4, %v1529_v14, %v1525_v4 }
 0x3a9   : > { %v1531_v3 = vmul.f32 %v4570_v47, %v1530_v24 }
 0x3cb   : > { %v1192_v54 = vpop.xlane.xlu0 %1191 }
 0x3cc   : > { %2942 = vrcp.f32 %v1192_v54  ;;  %v2019_v8 = vpop.f32.mrf.mxu1  ;;  %v1544_v22 = vand.u32 2147483648, %v1192_v54  ;;  %vm1538_vm2 = vweird.f32 %v1192_v54  ;;  %v1542_v9 = vand.u32 2147483647, %v1192_v54 }
 0x3ce   : > { %v1545_v55 = vor.u32 1.1754944e-38, %v1544_v22  ;;  %vm1543_vm5 = vcmp.eq.f32.partialorder %v1542_v9, 8.507059e+37 }
 0x3d2   : > { %v2943_v26 = vpop.eup %2942  ;;  %v1930_v21 = vpop.f32.mrf.mxu3 }
 0x3d3   : > { %v1534_v15 = vmul.f32 %v2943_v26, %v1192_v54  ;;  %v4129_v61 = vpop.xlane.xlu0 %1194  ;;  %vm1539_vm15 = vweird.f32 %v2943_v26  ;;  %v2020_v41 = vadd.f32 %v2019_v8, %v1930_v21 }
 0x3d4   : > { %2944 = vrcp.f32 %v4129_v61  ;;  %v2021_v7 = vpop.f32.mrf.mxu1  ;;  %vm4141_vm3 = vmor %vm1538_vm2, %vm1539_vm15  ;;  %vm1554_vm7 = vweird.f32 %v4129_v61 }
 0x3d5   : > { %v1535_v29 = vsub.f32 1.0, %v1534_v15 }
 0x3d7   : > { %v1536_v34 = vmul.f32 %v2943_v26, %v1535_v29 }
 0x3d9   : > { %v1537_v53 = vadd.f32 %v2943_v26, %v1536_v34 }
 0x3da   : > { %v4145_v13 = vpop.eup %2944  ;;  %v1932_v59 = vpop.f32.mrf.mxu3 }
 0x3db   : > { %v4147_v49 = vpop.xlane.xlu1 %1197  ;;  %v1541_v27 = vsel %vm4141_vm3, %v2943_v26, %v1537_v53  ;;  %v1550_v1 = vmul.f32 %v4145_v13, %v4129_v61  ;;  %v934_v17 = vpop.xlane.xlu0 %933  ;;  %v2022_v52 = vadd.f32 %v2021_v7, %v1932_v59  ;;  %v4571_v26 = vld [vmem:[#allocation14_spill] sm:$0xff]  ;;  %vm1555_vm6 = vweird.f32 %v4145_v13 }
 0x3dc   : > { %2946 = vrcp.f32 %v4147_v49  ;;  %v999_v23 = vsub.f32 %v3841_v6, %v934_v17  ;;  %v1000_v57 = vsub.f32 %v3847_v11, %v934_v17  ;;  %v1546_v28 = vsel %vm1543_vm5, %v1545_v55, %v1541_v27  ;;  %vm4196_vm8 = vmor %vm1554_vm7, %vm1555_vm6 }
 0x3dd   : > { %v1551_v35 = vsub.f32 1.0, %v1550_v1  ;;  %v4162_v54 = vpop.f32.mrf.mxu1  ;;  %v1532_v6 = vmul.f32 %v4571_v26, %v1530_v24  ;;  %v2083_v15 = vpack.c.bf16 %v2022_v52, %v2020_v41  ;;  %v1547_v0 = vmul.f32 %v3904_v39, %v1546_v28  ;;  %v2981_v26 = vld [vmem:[%s3265_s29 + $0x8] sm:$0xff] }
 0x3de   : > { %v1121_v5 = vmul.f32 1.442695, %v999_v23  ;;  %v1123_v36 = vmul.f32 1.442695, %v1000_v57  ;;  %v1548_v8 = vmul.f32 %v3908_v10, %v1546_v28  ;;  %v1560_v10 = vand.u32 2147483648, %v4129_v61 }
 0x3df   : > { %v1552_v11 = vmul.f32 %v4145_v13, %v1551_v35  ;;  %2649 = vmatmul.msk.bf16.gmra.mxu2 %vm618_vm0, %v2083_v15  ;;  %v1759_v40 = vpack.c.bf16 %v1547_v0, %v1531_v3  ;;  %v1558_v55 = vand.u32 2147483647, %v4129_v61  ;;  %v1576_v1 = vand.u32 2147483648, %v4147_v49 }
 0x3e0   : > { %v2188_v29 = vpop.f32.mrf.mxu2  ;;  %2948 = vpow2.f32 %v1121_v5  ;;  %v1760_v34 = vpack.c.bf16 %v1548_v8, %v1532_v6  ;;  %v1561_v61 = vor.u32 1.1754944e-38, %v1560_v10  ;;  %vm1570_vm10 = vweird.f32 %v4147_v49 }
 0x3e1   : > { %v2189_v21 = vadd.f32 %v4160_v31, %v2188_v29  ;;  %2950 = vpow2.f32 %v1123_v36  ;;  %v1553_v39 = vadd.f32 %v4145_v13, %v1552_v11  ;;  %1954 = vmatmul.bf16.gmra.mxu3 %v1759_v40  ;;  %v1574_v41 = vand.u32 2147483647, %v4147_v49 }
 0x3e2   : > { %v4172_v16 = vpop.eup %2946  ;;  %2043 = vmatmul.bf16.gmra.mxu1 %v1760_v34  ;;  %v1935_v14 = vpop.f32.mrf.mxu3  ;;  %vm1559_vm11 = vcmp.eq.f32.partialorder %v1558_v55, 8.507059e+37  ;;  %v1577_v3 = vor.u32 1.1754944e-38, %v1576_v1 }
 0x3e3   : > { %v1566_v7 = vmul.f32 %v4172_v16, %v4147_v49  ;;  %v2268_v22 = vadd.f32 %v2980_v62, %v2189_v21  ;;  %v4178_v53 = vpop.xlane.xlu1 %1200  ;;  %v937_v9 = vpop.xlane.xlu0 %936  ;;  %vm1571_vm9 = vweird.f32 %v4172_v16  ;;  %v1557_v52 = vsel %vm4196_vm8, %v4145_v13, %v1553_v39 }
 0x3e4   : > { %2952 = vrcp.f32 %v4178_v53  ;;  %v1001_v33 = vsub.f32 %v3853_v46, %v937_v9  ;;  %v1002_v27 = vsub.f32 %v3861_v37, %v937_v9  ;;  %vm4217_vm12 = vmor %vm1570_vm10, %vm1571_vm9  ;;  %v1562_v0 = vsel %vm1559_vm11, %v1561_v61, %v1557_v52 }
 0x3e5   : > { %v1567_v4 = vsub.f32 1.0, %v1566_v7  ;;  %2300 = vst [vmem:[%s4184_s21] sm:$0xff] %v2268_v22  ;;  %v2026_v23 = vpop.f32.mrf.mxu1  ;;  %vm1575_vm13 = vcmp.eq.f32.partialorder %v1574_v41, 8.507059e+37  ;;  %v2025_v62 = vadd.f32 %v4162_v54, %v1935_v14  ;;  %v1563_v39 = vmul.f32 %v3946_v18, %v1562_v0 }
 0x3e6   : > { %v4192_v17 = vpop.eup %2948  ;;  %v1125_v46 = vmul.f32 1.442695, %v1001_v33  ;;  %v1127_v37 = vmul.f32 1.442695, %v1002_v27  ;;  %v1564_v27 = vmul.f32 %v3952_v56, %v1562_v0  ;;  %vm1586_vm15 = vweird.f32 %v4178_v53 }
 0x3e7   : > { %v1568_v59 = vmul.f32 %v4172_v16, %v1567_v4  ;;  %v4202_v57 = vpop.eup %2950  ;;  %v1590_v52 = vand.u32 2147483647, %v4178_v53 }
 0x3e8   : > { %v2190_v35 = vpop.f32.mrf.mxu2  ;;  %2954 = vpow2.f32 %v1125_v46  ;;  %v1220_v5 = vadd.f32 %v4202_v57, %v4192_v17 }
 0x3e9   : > { %v1569_v28 = vadd.f32 %v4172_v16, %v1568_v59  ;;  %v2191_v36 = vadd.f32 %v4160_v31, %v2190_v35  ;;  %2956 = vpow2.f32 %v1127_v37  ;;  %vm1591_vm4 = vcmp.eq.f32.partialorder %v1590_v52, 8.507059e+37 }
 0x3ea   : > { %v4213_v47 = vpop.eup %2952  ;;  %1221 = vadd.xlane.f32.xlu1 %v1220_v5  ;;  %v1937_v21 = vpop.f32.mrf.mxu3 }
 0x3eb   : > { %v1582_v13 = vmul.f32 %v4213_v47, %v4178_v53  ;;  %v2269_v6 = vadd.f32 %v2981_v26, %v2191_v36  ;;  %v4224_v11 = vpop.xlane.xlu2 %1203  ;;  %v940_v15 = vpop.xlane.xlu1 %939  ;;  %v1573_v8 = vsel %vm4217_vm12, %v4172_v16, %v1569_v28  ;;  %v2027_v22 = vadd.f32 %v2026_v23, %v1937_v21  ;;  %v2982_v23 = vld [vmem:[%s3265_s29 + $0x10] sm:$0xff] }
 0x3ec   : > { %2958 = vrcp.f32 %v4224_v11  ;;  %v1003_v40 = vsub.f32 %v3865_v30, %v940_v15  ;;  %v1004_v34 = vsub.f32 %v3879_v20, %v940_v15  ;;  %v1578_v7 = vsel %vm1575_vm13, %v1577_v3, %v1573_v8 }
 0x3ed   : > { %v1583_v29 = vsub.f32 1.0, %v1582_v13  ;;  %2301 = vst [vmem:[%s4184_s21 + $0x8] sm:$0xff] %v2269_v6  ;;  %v1579_v10 = vmul.f32 %v3968_v50, %v1578_v7  ;;  %v1580_v30 = vmul.f32 %v3970_v25, %v1578_v7  ;;  %v2084_v54 = vpack.c.bf16 %v2027_v22, %v2025_v62  ;;  %v2983_v7 = vld [vmem:[%s3265_s29 + $0x18] sm:$0xff] }
 0x3ee   : > { %v4236_v9 = vpop.eup %2954  ;;  %v1129_v16 = vmul.f32 1.442695, %v1003_v40  ;;  %v1131_v4 = vmul.f32 1.442695, %v1004_v34  ;;  %v4238_v33 = vpop.f32.mrf.mxu1  ;;  %v1592_v25 = vand.u32 2147483648, %v4178_v53  ;;  %vm1587_vm14 = vweird.f32 %v4213_v47 }
 0x3ef   : > { %v4242_v55 = vpop.eup %2956  ;;  %v1584_v20 = vmul.f32 %v4213_v47, %v1583_v29  ;;  %v1761_v14 = vpack.c.bf16 %v1579_v10, %v1563_v39  ;;  %v1762_v50 = vpack.c.bf16 %v1580_v30, %v1564_v27  ;;  %2650 = vmatmul.msk.bf16.gmra.mxu2 %vm618_vm0, %v2084_v54  ;;  %v1608_v28 = vand.u32 2147483648, %v4224_v11  ;;  %vm4263_vm1 = vmor %vm1586_vm15, %vm1587_vm14 }
 0x3f0   : > { %v2193_v1 = vpop.f32.mrf.mxu2  ;;  %2960 = vpow2.f32 %v1129_v16  ;;  %v1223_v18 = vadd.f32 %v4242_v55, %v4236_v9  ;;  %v1593_v26 = vor.u32 1.1754944e-38, %v1592_v25  ;;  %v1606_v6 = vand.u32 2147483647, %v4224_v11 }
 0x3f1   : > { %2962 = vpow2.f32 %v1131_v4  ;;  %v2194_v56 = vadd.f32 %v4160_v31, %v2193_v1  ;;  %v1585_v37 = vadd.f32 %v4213_v47, %v1584_v20  ;;  %1959 = vmatmul.bf16.gmra.mxu3 %v1761_v14  ;;  %vm1602_vm3 = vweird.f32 %v4224_v11 }
 0x3f2   : > { %v2959_v24 = vpop.eup %2958  ;;  %1224 = vadd.xlane.f32.xlu2 %v1223_v18  ;;  %2048 = vmatmul.bf16.gmra.mxu1 %v1762_v50  ;;  %v1940_v35 = vpop.f32.mrf.mxu3  ;;  %v1609_v40 = vor.u32 1.1754944e-38, %v1608_v28  ;;  %vm1607_vm6 = vcmp.eq.f32.partialorder %v1606_v6, 8.507059e+37 }
 0x3f3   : > { %v1598_v59 = vmul.f32 %v2959_v24, %v4224_v11  ;;  %v4251_v46 = vpop.xlane.xlu2 %1206  ;;  %v2270_v61 = vadd.f32 %v2982_v23, %v2194_v56  ;;  %vm1603_vm2 = vweird.f32 %v2959_v24  ;;  %v1589_v53 = vsel %vm4263_vm1, %v4213_v47, %v1585_v37  ;;  %v2984_v37 = vld [vmem:[%s3265_s29 + $0x20] sm:$0xff] }
 0x3f4   : > { %2964 = vrcp.f32 %v4251_v46  ;;  %vm1604_vm5 = vmor %vm1602_vm3, %vm1603_vm2  ;;  %v1594_v22 = vsel %vm1591_vm4, %v1593_v26, %v1589_v53  ;;  %v2030_v4 = vadd.f32 %v4238_v33, %v1940_v35  ;;  %vm1618_vm8 = vweird.f32 %v4251_v46 }
 0x3f5   : > { %v1599_v41 = vsub.f32 1.0, %v1598_v59  ;;  %2302 = vst [vmem:[%s4184_s21 + $0x10] sm:$0xff] %v2270_v61  ;;  %v1595_v30 = vmul.f32 %v4002_v45, %v1594_v22  ;;  %v1596_v14 = vmul.f32 %v4006_v43, %v1594_v22  ;;  %v1622_v35 = vand.u32 2147483647, %v4251_v46 }
 0x3f6   : > { %v4261_v5 = vpop.eup %2960  ;;  %v2031_v3 = vpop.f32.mrf.mxu1 }
 0x3f7   : > { %v1600_v49 = vmul.f32 %v2959_v24, %v1599_v41  ;;  %v4267_v13 = vpop.eup %2962  ;;  %vm1623_vm11 = vcmp.eq.f32.partialorder %v1622_v35, 8.507059e+37 }
 0x3f8   : > { %v2195_v15 = vpop.f32.mrf.mxu2  ;;  %v1226_v8 = vadd.f32 %v4267_v13, %v4261_v5 }
 0x3f9   : > { %v1601_v0 = vadd.f32 %v2959_v24, %v1600_v49  ;;  %v2196_v29 = vadd.f32 %v4160_v31, %v2195_v15 }
 0x3fa   : > { %v4277_v21 = vpop.eup %2964  ;;  %1227 = vadd.xlane.f32.xlu0 %v1226_v8  ;;  %v1942_v10 = vpop.f32.mrf.mxu3 }
 0x3fb   : > { %v1614_v34 = vmul.f32 %v4277_v21, %v4251_v46  ;;  %v2271_v47 = vadd.f32 %v2983_v7, %v2196_v29  ;;  %v1210_v62 = vpop.xlane.xlu0 %1209  ;;  %v1605_v11 = vsel %vm1604_vm5, %v2959_v24, %v1601_v0  ;;  %v2032_v27 = vadd.f32 %v2031_v3, %v1942_v10 }
 0x3fc   : > { %2966 = vrcp.f32 %v1210_v62  ;;  %v1610_v16 = vsel %vm1607_vm6, %v1609_v40, %v1605_v11  ;;  %vm1619_vm7 = vweird.f32 %v4277_v21  ;;  %v1640_v52 = vand.u32 2147483648, %v1210_v62 }
 0x3fd   : > { %v1615_v39 = vsub.f32 1.0, %v1614_v34  ;;  %2303 = vst [vmem:[%s4184_s21 + $0x18] sm:$0xff] %v2271_v47  ;;  %v1611_v20 = vmul.f32 %v4028_v51, %v1610_v16  ;;  %v1612_v1 = vmul.f32 %v4030_v58, %v1610_v16  ;;  %v2085_v50 = vpack.c.bf16 %v2032_v27, %v2030_v4  ;;  %vm4301_vm9 = vmor %vm1618_vm8, %vm1619_vm7  ;;  %v2985_v34 = vld [vmem:[%s3265_s29 + $0x28] sm:$0xff] }
 0x3fe   : > { %v2034_v54 = vpop.f32.mrf.mxu1  ;;  %v1624_v58 = vand.u32 2147483648, %v4251_v46  ;;  %v1638_v49 = vand.u32 2147483647, %v1210_v62  ;;  %vm1634_vm12 = vweird.f32 %v1210_v62  ;;  %v1641_v8 = vor.u32 1.1754944e-38, %v1640_v52 }
 0x3ff   : > { %v1616_v18 = vmul.f32 %v4277_v21, %v1615_v39  ;;  %v1763_v24 = vpack.c.bf16 %v1611_v20, %v1595_v30  ;;  %v1764_v25 = vpack.c.bf16 %v1612_v1, %v1596_v14  ;;  %2651 = vmatmul.msk.bf16.gmra.mxu2 %vm618_vm0, %v2085_v50 }
 0x400   : > { %v2198_v56 = vpop.f32.mrf.mxu2  ;;  %v1625_v6 = vor.u32 1.1754944e-38, %v1624_v58  ;;  %vm1639_vm14 = vcmp.eq.f32.partialorder %v1638_v49, 8.507059e+37 }
 0x401   : > { %v2199_v33 = vadd.f32 %v4160_v31, %v2198_v56  ;;  %v1617_v43 = vadd.f32 %v4277_v21, %v1616_v18  ;;  %1964 = vmatmul.bf16.gmra.mxu3 %v1763_v24 }
 0x402   : > { %v2967_v59 = vpop.eup %2966  ;;  %2053 = vmatmul.bf16.gmra.mxu1 %v1764_v25  ;;  %v1945_v41 = vpop.f32.mrf.mxu3  ;;  %v2986_v25 = vld [vmem:[%s3265_s29 + $0x30] sm:$0xff] }
 0x403   : > { %v1630_v45 = vmul.f32 %v2967_v59, %v1210_v62  ;;  %v2272_v51 = vadd.f32 %v2984_v37, %v2199_v33  ;;  %v4292_v23 = vpop.xlane.xlu1 %1212  ;;  %vm1635_vm10 = vweird.f32 %v2967_v59  ;;  %v1621_v26 = vsel %vm4301_vm9, %v4277_v21, %v1617_v43 }
 0x404   : > { %2968 = vrcp.f32 %v4292_v23  ;;  %vm1636_vm13 = vmor %vm1634_vm12, %vm1635_vm10  ;;  %v1626_v21 = vsel %vm1623_vm11, %v1625_v6, %v1621_v26  ;;  %v2035_v10 = vadd.f32 %v2034_v54, %v1945_v41  ;;  %vm1650_vm1 = vweird.f32 %v4292_v23 }
 0x405   : > { %v1631_v61 = vsub.f32 1.0, %v1630_v45  ;;  %2304 = vst [vmem:[%s4184_s21 + $0x20] sm:$0xff] %v2272_v51  ;;  %v1627_v62 = vmul.f32 %v4062_v2, %v1626_v21  ;;  %v1628_v27 = vmul.f32 %v4066_v60, %v1626_v21  ;;  %v1656_v33 = vand.u32 2147483648, %v4292_v23 }
 0x406   : > { %v2036_v53 = vpop.f32.mrf.mxu1  ;;  %v1654_v37 = vand.u32 2147483647, %v4292_v23 }
 0x407   : > { %v1632_v36 = vmul.f32 %v2967_v59, %v1631_v61  ;;  %v1657_v35 = vor.u32 1.1754944e-38, %v1656_v33 }
 0x408   : > { %v2200_v3 = vpop.f32.mrf.mxu2  ;;  %vm1655_vm6 = vcmp.eq.f32.partialorder %v1654_v37, 8.507059e+37 }
 0x409   : > { %v1633_v15 = vadd.f32 %v2967_v59, %v1632_v36  ;;  %v2201_v46 = vadd.f32 %v4160_v31, %v2200_v3 }
 0x40a   : > { %v4309_v0 = vpop.eup %2968  ;;  %v1947_v11 = vpop.f32.mrf.mxu3 }
 0x40b   : > { %v1216_v29 = vpop.xlane.xlu2 %1215  ;;  %v1646_v40 = vmul.f32 %v4309_v0, %v4292_v23  ;;  %v2273_v7 = vadd.f32 %v2985_v34, %v2201_v46  ;;  %v1637_v47 = vsel %vm1636_vm13, %v2967_v59, %v1633_v15  ;;  %v2037_v16 = vadd.f32 %v2036_v53, %v1947_v11  ;;  %v2987_v23 = vld [vmem:[%s3265_s29 + $0x38] sm:$0xff] }
 0x40c   : > { %2970 = vrcp.f32 %v1216_v29  ;;  %v1642_v39 = vsel %vm1639_vm14, %v1641_v8, %v1637_v47  ;;  %vm1651_vm15 = vweird.f32 %v4309_v0  ;;  %v1672_v59 = vand.u32 2147483648, %v1216_v29 }
 0x40d   : > { %v1647_v22 = vsub.f32 1.0, %v1646_v40  ;;  %2305 = vst [vmem:[%s4184_s21 + $0x28] sm:$0xff] %v2273_v7  ;;  %v1643_v4 = vmul.f32 %v4086_v48, %v1642_v39  ;;  %v1644_v30 = vmul.f32 %v4092_v42, %v1642_v39  ;;  %v2086_v14 = vpack.c.bf16 %v2037_v16, %v2035_v10  ;;  %vm1652_vm3 = vmor %vm1650_vm1, %vm1651_vm15 }
 0x40e   : > { %v2039_v2 = vpop.f32.mrf.mxu1  ;;  %v1670_v43 = vand.u32 2147483647, %v1216_v29  ;;  %vm1666_vm4 = vweird.f32 %v1216_v29  ;;  %v1673_v52 = vor.u32 1.1754944e-38, %v1672_v59 }
 0x40f   : > { %v1648_v20 = vmul.f32 %v4309_v0, %v1647_v22  ;;  %v1765_v1 = vpack.c.bf16 %v1643_v4, %v1627_v62  ;;  %v1766_v24 = vpack.c.bf16 %v1644_v30, %v1628_v27  ;;  %2652 = vmatmul.msk.bf16.gmra.mxu2 %vm618_vm0, %v2086_v14 }
 0x410   : > { %v2203_v18 = vpop.f32.mrf.mxu2  ;;  %vm1671_vm7 = vcmp.eq.f32.partialorder %v1670_v43, 8.507059e+37 }
 0x411   : > { %v2204_v54 = vadd.f32 %v4160_v31, %v2203_v18  ;;  %v1649_v60 = vadd.f32 %v4309_v0, %v1648_v20  ;;  %1969 = vmatmul.bf16.gmra.mxu3 %v1765_v1  ;;  %v2988_v18 = vld [vmem:[%s3265_s29 + $0x40] sm:$0xff] }
 0x412   : > { %v2971_v50 = vpop.eup %2970  ;;  %2058 = vmatmul.bf16.gmra.mxu1 %v1766_v24  ;;  %v1950_v45 = vpop.f32.mrf.mxu3 }
 0x413   : > { %v1662_v56 = vmul.f32 %v2971_v50, %v1216_v29  ;;  %v2274_v48 = vadd.f32 %v2986_v25, %v2204_v54  ;;  %vm1667_vm2 = vweird.f32 %v2971_v50  ;;  %v1653_v41 = vsel %vm1652_vm3, %v4309_v0, %v1649_v60  ;;  %v1219_v47 = vpop.xlane.xlu0 %1218 }
 0x414   : > { %vm1668_vm5 = vmor %vm1666_vm4, %vm1667_vm2  ;;  %v1658_v3 = vsel %vm1655_vm6, %v1657_v35, %v1653_v41  ;;  %v2040_v0 = vadd.f32 %v2039_v2, %v1950_v45  ;;  %2972 = vrcp.f32 %v1219_v47  ;;  %v1688_v30 = vand.u32 2147483648, %v1219_v47 }
 0x415   : > { %v1663_v42 = vsub.f32 1.0, %v1662_v56  ;;  %2306 = vst [vmem:[%s4184_s21 + $0x30] sm:$0xff] %v2274_v48  ;;  %v1659_v29 = vmul.f32 %v4104_v12, %v1658_v3  ;;  %v1660_v40 = vmul.f32 %v4108_v44, %v1658_v3  ;;  %vm1682_vm9 = vweird.f32 %v1219_v47 }
 0x416   : > { %v2041_v53 = vpop.f32.mrf.mxu1  ;;  %v1686_v14 = vand.u32 2147483647, %v1219_v47  ;;  %v1689_v48 = vor.u32 1.1754944e-38, %v1688_v30 }
 0x417   : > { %v1664_v51 = vmul.f32 %v2971_v50, %v1663_v42 }
 0x418   : > { %v2205_v61 = vpop.f32.mrf.mxu2  ;;  %vm1687_vm12 = vcmp.eq.f32.partialorder %v1686_v14, 8.507059e+37 }
 0x419   : > { %v1665_v58 = vadd.f32 %v2971_v50, %v1664_v51  ;;  %v2206_v28 = vadd.f32 %v4160_v31, %v2205_v61 }
 0x41a   : > { %v1952_v46 = vpop.f32.mrf.mxu3 }
 0x41b   : > { %v1669_v36 = vsel %vm1668_vm5, %v2971_v50, %v1665_v58  ;;  %v2275_v49 = vadd.f32 %v2987_v23, %v2206_v28  ;;  %v2042_v8 = vadd.f32 %v2041_v53, %v1952_v46 }
 0x41c   : > { %v1674_v26 = vsel %vm1671_vm7, %v1673_v52, %v1669_v36  ;;  %v2989_v36 = vld [vmem:[%s3265_s29 + $0x48] sm:$0xff] }
 0x41d   : > { %v1675_v6 = vmul.f32 %v4115_v38, %v1674_v26  ;;  %v1676_v15 = vmul.f32 %v4117_v19, %v1674_v26  ;;  %2307 = vst [vmem:[%s4184_s21 + $0x38] sm:$0xff] %v2275_v49  ;;  %v2087_v34 = vpack.c.bf16 %v2042_v8, %v2040_v0  ;;  %v2973_v38 = vpop.eup %2972 }
 0x41e   : > { %v1678_v19 = vmul.f32 %v2973_v38, %v1219_v47  ;;  %vm1683_vm8 = vweird.f32 %v2973_v38 }
 0x41f   : > { %v1767_v7 = vpack.c.bf16 %v1675_v6, %v1659_v29  ;;  %v1768_v21 = vpack.c.bf16 %v1676_v15, %v1660_v40  ;;  %2653 = vmatmul.msk.bf16.gmra.mxu2 %vm618_vm0, %v2087_v34  ;;  %vm4343_vm10 = vmor %vm1682_vm9, %vm1683_vm8 }
 0x420   : > { %v1679_v22 = vsub.f32 1.0, %v1678_v19 }
 0x421   : > { %1974 = vmatmul.bf16.gmra.mxu3 %v1767_v7 }
 0x422   : > { %2063 = vmatmul.bf16.gmra.mxu1 %v1768_v21  ;;  %v1680_v10 = vmul.f32 %v2973_v38, %v1679_v22  ;;  %v2990_v22 = vld [vmem:[%s3265_s29 + $0x50] sm:$0xff] }
 0x424   : > { %v1681_v44 = vadd.f32 %v2973_v38, %v1680_v10 }
 0x426   : > { %v1685_v25 = vsel %vm4343_vm10, %v2973_v38, %v1681_v44  ;;  %v2996_v38 = vld [vmem:[%s3265_s29 + $0x80] sm:$0xff] }
 0x427   : > { %v1690_v37 = vsel %vm1687_vm12, %v1689_v48, %v1685_v25 }
 0x428   : > { %v1691_v6 = vmul.f32 %v4121_v32, %v1690_v37  ;;  %v1692_v53 = vmul.f32 %v4123_v63, %v1690_v37 }
 0x45d   : > { %v1222_v11 = vpop.xlane.xlu1 %1221 }
 0x45e   : > { %2974 = vrcp.f32 %v1222_v11  ;;  %v1704_v2 = vand.u32 2147483648, %v1222_v11  ;;  %v1702_v60 = vand.u32 2147483647, %v1222_v11  ;;  %vm1698_vm13 = vweird.f32 %v1222_v11 }
 0x45f   : > { %v2044_v39 = vpop.f32.mrf.mxu1 }
 0x460   : > { %v1705_v43 = vor.u32 1.1754944e-38, %v1704_v2  ;;  %vm1703_vm15 = vcmp.eq.f32.partialorder %v1702_v60, 8.507059e+37  ;;  %v2991_v2 = vld [vmem:[%s3265_s29 + $0x58] sm:$0xff] }
 0x462   : > { %v2208_v16 = vpop.f32.mrf.mxu2 }
 0x463   : > { %v2209_v4 = vadd.f32 %v4160_v31, %v2208_v16 }
 0x464   : > { %v2975_v12 = vpop.eup %2974  ;;  %v1955_v20 = vpop.f32.mrf.mxu3 }
 0x465   : > { %v1694_v62 = vmul.f32 %v2975_v12, %v1222_v11  ;;  %v4339_v27 = vpop.xlane.xlu2 %1224  ;;  %v2276_v50 = vadd.f32 %v2988_v18, %v2209_v4  ;;  %vm1699_vm11 = vweird.f32 %v2975_v12  ;;  %v2045_v35 = vadd.f32 %v2044_v39, %v1955_v20 }
 0x466   : > { %2976 = vrcp.f32 %v4339_v27  ;;  %vm4350_vm14 = vmor %vm1698_vm13, %vm1699_vm11  ;;  %vm1714_vm2 = vweird.f32 %v4339_v27 }
 0x467   : > { %v1695_v1 = vsub.f32 1.0, %v1694_v62  ;;  %v2046_v54 = vpop.f32.mrf.mxu1  ;;  %2308 = vst [vmem:[%s4184_s21 + $0x40] sm:$0xff] %v2276_v50 }
 0x469   : > { %v1696_v56 = vmul.f32 %v2975_v12, %v1695_v1 }
 0x46a   : > { %v2210_v45 = vpop.f32.mrf.mxu2 }
 0x46b   : > { %v1697_v42 = vadd.f32 %v2975_v12, %v1696_v56  ;;  %v2211_v61 = vadd.f32 %v4160_v31, %v2210_v45 }
 0x46c   : > { %v2977_v33 = vpop.eup %2976  ;;  %v1957_v52 = vpop.f32.mrf.mxu3 }
 0x46d   : > { %v1701_v51 = vsel %vm4350_vm14, %v2975_v12, %v1697_v42  ;;  %v1710_v58 = vmul.f32 %v2977_v33, %v4339_v27  ;;  %v1228_v41 = vpop.xlane.xlu0 %1227  ;;  %v2277_v23 = vadd.f32 %v2989_v36, %v2211_v61  ;;  %v2047_v49 = vadd.f32 %v2046_v54, %v1957_v52  ;;  %v2993_v52 = vld [vmem:[%s3265_s29 + $0x68] sm:$0xff] }
 0x46e   : > { %2978 = vrcp.f32 %v1228_v41  ;;  %v1706_v3 = vsel %vm1703_vm15, %v1705_v43, %v1701_v51  ;;  %vm1715_vm1 = vweird.f32 %v2977_v33  ;;  %v1736_v10 = vand.u32 2147483648, %v1228_v41  ;;  %v2992_v43 = vld [vmem:[%s3265_s29 + $0x60] sm:$0xff] }
 0x46f   : > { %v1711_v28 = vsub.f32 1.0, %v1710_v58  ;;  %v2049_v26 = vpop.f32.mrf.mxu1  ;;  %v1707_v15 = vmul.f32 %v4192_v17, %v1706_v3  ;;  %v1708_v46 = vmul.f32 %v4202_v57, %v1706_v3  ;;  %2309 = vst [vmem:[%s4184_s21 + $0x48] sm:$0xff] %v2277_v23  ;;  %v2088_v8 = vpack.c.bf16 %v2047_v49, %v2045_v35  ;;  %vm4369_vm3 = vmor %vm1714_vm2, %vm1715_vm1 }
 0x470   : > { %v1720_v17 = vand.u32 2147483648, %v4339_v27  ;;  %v1718_v57 = vand.u32 2147483647, %v4339_v27  ;;  %v1734_v62 = vand.u32 2147483647, %v1228_v41  ;;  %vm1730_vm6 = vweird.f32 %v1228_v41 }
 0x471   : > { %v1712_v0 = vmul.f32 %v2977_v33, %v1711_v28  ;;  %v1769_v29 = vpack.c.bf16 %v1707_v15, %v1691_v6  ;;  %v1770_v40 = vpack.c.bf16 %v1708_v46, %v1692_v53  ;;  %2654 = vmatmul.msk.bf16.gmra.mxu2 %vm618_vm0, %v2088_v8  ;;  %v1737_v30 = vor.u32 1.1754944e-38, %v1736_v10  ;;  %v2994_v15 = vld [vmem:[%s3265_s29 + $0x70] sm:$0xff] }
 0x472   : > { %v2213_v32 = vpop.f32.mrf.mxu2  ;;  %v1721_v16 = vor.u32 1.1754944e-38, %v1720_v17  ;;  %vm1719_vm5 = vcmp.eq.f32.partialorder %v1718_v57, 8.507059e+37  ;;  %vm1735_vm8 = vcmp.eq.f32.partialorder %v1734_v62, 8.507059e+37 }
 0x473   : > { %v1713_v7 = vadd.f32 %v2977_v33, %v1712_v0  ;;  %1979 = vmatmul.bf16.gmra.mxu3 %v1769_v29  ;;  %2068 = vmatmul.bf16.gmra.mxu1 %v1770_v40  ;;  %v2214_v63 = vadd.f32 %v4160_v31, %v2213_v32 }
 0x474   : > { %v2979_v34 = vpop.eup %2978  ;;  %v1960_v47 = vpop.f32.mrf.mxu3 }
 0x475   : > { %v1726_v21 = vmul.f32 %v2979_v34, %v1228_v41  ;;  %v2278_v11 = vadd.f32 %v2990_v22, %v2214_v63  ;;  %v1717_v39 = vsel %vm4369_vm3, %v2977_v33, %v1713_v7  ;;  %vm1731_vm4 = vweird.f32 %v2979_v34 }
 0x476   : > { %v1722_v27 = vsel %vm1719_vm5, %v1721_v16, %v1717_v39  ;;  %vm1732_vm7 = vmor %vm1730_vm6, %vm1731_vm4  ;;  %v2050_v18 = vadd.f32 %v2049_v26, %v1960_v47  ;;  %v2997_v16 = vld [vmem:[%s3265_s29 + $0x88] sm:$0xff] }
 0x477   : > { %v1727_v19 = vsub.f32 1.0, %v1726_v21  ;;  %v2051_v12 = vpop.f32.mrf.mxu1  ;;  %2310 = vst [vmem:[%s4184_s21 + $0x50] sm:$0xff] %v2278_v11  ;;  %v1723_v24 = vmul.f32 %v4236_v9, %v1722_v27  ;;  %v1724_v56 = vmul.f32 %v4242_v55, %v1722_v27 }
 0x479   : > { %v1728_v44 = vmul.f32 %v2979_v34, %v1727_v19 }
 0x47a   : > { %v2215_v20 = vpop.f32.mrf.mxu2 }
 0x47b   : > { %v1729_v4 = vadd.f32 %v2979_v34, %v1728_v44  ;;  %v2216_v1 = vadd.f32 %v4160_v31, %v2215_v20 }
 0x47c   : > { %v1962_v50 = vpop.f32.mrf.mxu3 }
 0x47d   : > { %v1733_v14 = vsel %vm1732_vm7, %v2979_v34, %v1729_v4  ;;  %v2279_v25 = vadd.f32 %v2991_v2, %v2216_v1  ;;  %v2052_v48 = vadd.f32 %v2051_v12, %v1962_v50  ;;  %v2995_v34 = vld [vmem:[%s3265_s29 + $0x78] sm:$0xff]  ;;  %v2998_v1 = vld [vmem:[%s3265_s29 + $0x90] sm:$0xff] }
 0x47e   : > { %v1738_v54 = vsel %vm1735_vm8, %v1737_v30, %v1733_v14 }
 0x47f   : > { %v1739_v60 = vmul.f32 %v4261_v5, %v1738_v54  ;;  %v1740_v42 = vmul.f32 %v4267_v13, %v1738_v54  ;;  %v2054_v33 = vpop.f32.mrf.mxu1  ;;  %2311 = vst [vmem:[%s4184_s21 + $0x58] sm:$0xff] %v2279_v25  ;;  %v2089_v59 = vpack.c.bf16 %v2052_v48, %v2050_v18  ;;  %v2999_v48 = vld [vmem:[%s3265_s29 + $0x98] sm:$0xff] }
 0x481   : > { %v1771_v45 = vpack.c.bf16 %v1739_v60, %v1723_v24  ;;  %v1772_v37 = vpack.c.bf16 %v1740_v42, %v1724_v56  ;;  %2655 = vmatmul.msk.bf16.gmra.mxu2 %vm618_vm0, %v2089_v59 }
 0x482   : > { %v2218_v9 = vpop.f32.mrf.mxu2 }
 0x483   : > { %1984 = vmatmul.bf16.gmra.mxu3 %v1771_v45  ;;  %2073 = vmatmul.bf16.gmra.mxu1 %v1772_v37  ;;  %v2219_v55 = vadd.f32 %v4160_v31, %v2218_v9  ;;  %v3000_v9 = vld [vmem:[%s3265_s29 + $0xa0] sm:$0xff] }
 0x484   : > { %v1965_v51 = vpop.f32.mrf.mxu3 }
 0x485   : > { %v2280_v5 = vadd.f32 %v2992_v43, %v2219_v55  ;;  %v2055_v35 = vadd.f32 %v2054_v33, %v1965_v51 }
 0x487   : > { %v2056_v58 = vpop.f32.mrf.mxu1  ;;  %2312 = vst [vmem:[%s4184_s21 + $0x60] sm:$0xff] %v2280_v5 }
 0x48a   : > { %v2220_v13 = vpop.f32.mrf.mxu2 }
 0x48b   : > { %v2221_v61 = vadd.f32 %v4160_v31, %v2220_v13 }
 0x48c   : > { %v1967_v41 = vpop.f32.mrf.mxu3 }
 0x48d   : > { %v2281_v28 = vadd.f32 %v2993_v52, %v2221_v61  ;;  %v2057_v36 = vadd.f32 %v2056_v58, %v1967_v41  ;;  %v3001_v41 = vld [vmem:[%s3265_s29 + $0xa8] sm:$0xff] }
 0x48f   : > { %v2059_v23 = vpop.f32.mrf.mxu1  ;;  %2313 = vst [vmem:[%s4184_s21 + $0x68] sm:$0xff] %v2281_v28  ;;  %v2090_v49 = vpack.c.bf16 %v2057_v36, %v2055_v35 }
 0x491   : > { %2656 = vmatmul.msk.bf16.gmra.mxu2 %vm618_vm0, %v2090_v49 }
 0x492   : > { %v2223_v3 = vpop.f32.mrf.mxu2 }
 0x493   : > { %v2224_v26 = vadd.f32 %v4160_v31, %v2223_v3 }
 0x494   : > { %v1970_v6 = vpop.f32.mrf.mxu3 }
 0x495   : > { %v2282_v53 = vadd.f32 %v2994_v15, %v2224_v26  ;;  %v2060_v40 = vadd.f32 %v2059_v23, %v1970_v6  ;;  %v3002_v23 = vld [vmem:[%s3265_s29 + $0xb0] sm:$0xff]  ;;  %v3003_v6 = vld [vmem:[%s3265_s29 + $0xb8] sm:$0xff] }
 0x497   : > { %2314 = vst [vmem:[%s4184_s21 + $0x70] sm:$0xff] %v2282_v53  ;;  %v2061_v46 = vpop.f32.mrf.mxu1 }
 0x49a   : > { %v2225_v0 = vpop.f32.mrf.mxu2 }
 0x49b   : > { %v2226_v8 = vadd.f32 %v4160_v31, %v2225_v0  ;;  %v3004_v0 = vld [vmem:[%s3265_s29 + $0xc0] sm:$0xff] }
 0x49c   : > { %v1972_v29 = vpop.f32.mrf.mxu3 }
 0x49d   : > { %v2283_v7 = vadd.f32 %v2995_v34, %v2226_v8  ;;  %v2062_v32 = vadd.f32 %v2061_v46, %v1972_v29  ;;  %v3005_v34 = vld [vmem:[%s3265_s29 + $0xc8] sm:$0xff] }
 0x49f   : > { %2315 = vst [vmem:[%s4184_s21 + $0x78] sm:$0xff] %v2283_v7  ;;  %v2091_v17 = vpack.c.bf16 %v2062_v32, %v2060_v40  ;;  %v2064_v21 = vpop.f32.mrf.mxu1 }
 0x4a1   : > { %2657 = vmatmul.msk.bf16.gmra.mxu2 %vm618_vm0, %v2091_v17 }
 0x4a2   : > { %v2228_v63 = vpop.f32.mrf.mxu2 }
 0x4a3   : > { %v2229_v57 = vadd.f32 %v4160_v31, %v2228_v63 }
 0x4a4   : > { %v1975_v47 = vpop.f32.mrf.mxu3 }
 0x4a5   : > { %v2284_v19 = vadd.f32 %v2996_v38, %v2229_v57  ;;  %v2065_v12 = vadd.f32 %v2064_v21, %v1975_v47  ;;  %v3006_v21 = vld [vmem:[%s3265_s29 + $0xd0] sm:$0xff]  ;;  %v3007_v38 = vld [vmem:[%s3265_s29 + $0xd8] sm:$0xff] }
 0x4a7   : > { %2316 = vst [vmem:[%s4184_s21 + $0x80] sm:$0xff] %v2284_v19  ;;  %v2066_v39 = vpop.f32.mrf.mxu1 }
 0x4aa   : > { %v2230_v22 = vpop.f32.mrf.mxu2 }
 0x4ab   : > { %v2231_v11 = vadd.f32 %v4160_v31, %v2230_v22 }
 0x4ac   : > { %v1977_v10 = vpop.f32.mrf.mxu3 }
 0x4ad   : > { %v2285_v44 = vadd.f32 %v2997_v16, %v2231_v11  ;;  %v2067_v62 = vadd.f32 %v2066_v39, %v1977_v10  ;;  %v3008_v39 = vld [vmem:[%s3265_s29 + $0xe0] sm:$0xff] }
 0x4af   : > { %2317 = vst [vmem:[%s4184_s21 + $0x88] sm:$0xff] %v2285_v44  ;;  %v2092_v4 = vpack.c.bf16 %v2067_v62, %v2065_v12  ;;  %v3009_v44 = vld [vmem:[%s3265_s29 + $0xe8] sm:$0xff] }
 0x4b1   : > { %2658 = vmatmul.msk.bf16.gmra.mxu2 %vm618_vm0, %v2092_v4 }
 0x4f0   : > { %v2069_v27 = vpop.f32.mrf.mxu1 }
 0x4f4   : > { %v2233_v30 = vpop.f32.mrf.mxu2 }
 0x4f5   : > { %v2234_v20 = vadd.f32 %v4160_v31, %v2233_v30  ;;  %v3010_v30 = vld [vmem:[%s3265_s29 + $0xf0] sm:$0xff] }
 0x4f6   : > { %v1980_v14 = vpop.f32.mrf.mxu3 }
 0x4f7   : > { %v2286_v18 = vadd.f32 %v2998_v1, %v2234_v20  ;;  %v2070_v2 = vadd.f32 %v2069_v27, %v1980_v14 }
 0x4f8   : > { %v2071_v50 = vpop.f32.mrf.mxu1 }
 0x4f9   : > { %2318 = vst [vmem:[%s4184_s21 + $0x90] sm:$0xff] %v2286_v18  ;;  %v3011_v18 = vld [vmem:[%s3265_s29 + $0xf8] sm:$0xff] }
 0x4fc   : > { %v2235_v24 = vpop.f32.mrf.mxu2 }
 0x4fd   : > { %v2236_v54 = vadd.f32 %v4160_v31, %v2235_v24 }
 0x4fe   : > { %v1982_v56 = vpop.f32.mrf.mxu3 }
 0x4ff   : > { %v2072_v25 = vadd.f32 %v2071_v50, %v1982_v56  ;;  %v2287_v60 = vadd.f32 %v2999_v48, %v2236_v54 }
 0x500   : > { %v2074_v33 = vpop.f32.mrf.mxu1 }
 0x501   : > { %v2093_v42 = vpack.c.bf16 %v2072_v25, %v2070_v2  ;;  %2319 = vst [vmem:[%s4184_s21 + $0x98] sm:$0xff] %v2287_v60 }
 0x503   : > { %2659 = vmatmul.msk.bf16.gmra.mxu2 %vm618_vm0, %v2093_v42 }
 0x504   : > { %v2238_v59 = vpop.f32.mrf.mxu2 }
 0x505   : > { %v2239_v45 = vadd.f32 %v4160_v31, %v2238_v59 }
 0x506   : > { %v1985_v37 = vpop.f32.mrf.mxu3 }
 0x507   : > { %v2288_v55 = vadd.f32 %v3000_v9, %v2239_v45  ;;  %v2075_v13 = vadd.f32 %v2074_v33, %v1985_v37 }
 0x508   : > { %v2076_v43 = vpop.f32.mrf.mxu1 }
 0x509   : > { %2320 = vst [vmem:[%s4184_s21 + $0xa0] sm:$0xff] %v2288_v55 }
 0x50c   : > { %v2240_v51 = vpop.f32.mrf.mxu2 }
 0x50d   : > { %v2241_v5 = vadd.f32 %v4160_v31, %v2240_v51 }
 0x50e   : > { %v1987_v58 = vpop.f32.mrf.mxu3 }
 0x50f   : > { %v2077_v61 = vadd.f32 %v2076_v43, %v1987_v58  ;;  %v2289_v35 = vadd.f32 %v3001_v41, %v2241_v5 }
 0x511   : > { %v2094_v52 = vpack.c.bf16 %v2077_v61, %v2075_v13  ;;  %2321 = vst [vmem:[%s4184_s21 + $0xa8] sm:$0xff] %v2289_v35 }
 0x513   : > { %2660 = vmatmul.msk.bf16.gmra.mxu2 %vm618_vm0, %v2094_v52 }
 0x514   : > { %v2243_v28 = vpop.f32.mrf.mxu2 }
 0x515   : > { %v2244_v36 = vadd.f32 %v4160_v31, %v2243_v28 }
 0x517   : > { %v2290_v49 = vadd.f32 %v3002_v23, %v2244_v36 }
 0x519   : > { %2322 = vst [vmem:[%s4184_s21 + $0xb0] sm:$0xff] %v2290_v49 }
 0x51c   : > { %v2245_v3 = vpop.f32.mrf.mxu2 }
 0x51d   : > { %v2246_v26 = vadd.f32 %v4160_v31, %v2245_v3 }
 0x51f   : > { %v2291_v15 = vadd.f32 %v3003_v6, %v2246_v26 }
 0x521   : > { %2323 = vst [vmem:[%s4184_s21 + $0xb8] sm:$0xff] %v2291_v15 }
 0x524   : > { %v2248_v53 = vpop.f32.mrf.mxu2 }
 0x525   : > { %v2249_v46 = vadd.f32 %v4160_v31, %v2248_v53 }
 0x527   : > { %v2292_v8 = vadd.f32 %v3004_v0, %v2249_v46 }
 0x529   : > { %2324 = vst [vmem:[%s4184_s21 + $0xc0] sm:$0xff] %v2292_v8 }
 0x52c   : > { %v2250_v29 = vpop.f32.mrf.mxu2 }
 0x52d   : > { %v2251_v40 = vadd.f32 %v4160_v31, %v2250_v29 }
 0x52f   : > { %v2293_v7 = vadd.f32 %v3005_v34, %v2251_v40 }
 0x531   : > { %2325 = vst [vmem:[%s4184_s21 + $0xc8] sm:$0xff] %v2293_v7 }
 0x534   : > { %v2253_v32 = vpop.f32.mrf.mxu2 }
 0x535   : > { %v2254_v17 = vadd.f32 %v4160_v31, %v2253_v32 }
 0x537   : > { %v2294_v63 = vadd.f32 %v3006_v21, %v2254_v17 }
 0x539   : > { %2326 = vst [vmem:[%s4184_s21 + $0xd0] sm:$0xff] %v2294_v63 }
 0x53c   : > { %v2255_v57 = vpop.f32.mrf.mxu2 }
 0x53d   : > { %v2256_v47 = vadd.f32 %v4160_v31, %v2255_v57 }
 0x53f   : > { %v2295_v19 = vadd.f32 %v3007_v38, %v2256_v47 }
 0x541   : > { %2327 = vst [vmem:[%s4184_s21 + $0xd8] sm:$0xff] %v2295_v19 }
 0x586   : > { %v2258_v22 = vpop.f32.mrf.mxu2 }
 0x587   : > { %v2259_v11 = vadd.f32 %v4160_v31, %v2258_v22 }
 0x589   : > { %v2296_v10 = vadd.f32 %v3008_v39, %v2259_v11 }
 0x58b   : > { %2328 = vst [vmem:[%s4184_s21 + $0xe0] sm:$0xff] %v2296_v10 }
 0x58e   : > { %v2260_v12 = vpop.f32.mrf.mxu2 }
 0x58f   : > { %v2261_v16 = vadd.f32 %v4160_v31, %v2260_v12 }
 0x591   : > { %v2297_v62 = vadd.f32 %v3009_v44, %v2261_v16 }
 0x593   : > { %2329 = vst [vmem:[%s4184_s21 + $0xe8] sm:$0xff] %v2297_v62 }
 0x596   : > { %v2263_v4 = vpop.f32.mrf.mxu2 }
 0x597   : > { %v2264_v27 = vadd.f32 %v4160_v31, %v2263_v4 }
 0x599   : > { %v2298_v20 = vadd.f32 %v3010_v30, %v2264_v27 }
 0x59b   : > { %2330 = vst [vmem:[%s4184_s21 + $0xf0] sm:$0xff] %v2298_v20 }
 0x59e   : > { %v2265_v14 = vpop.f32.mrf.mxu2 }
 0x59f   : > { %v2266_v1 = vadd.f32 %v4160_v31, %v2265_v14 }
 0x5a1   : > { %v2299_v50 = vadd.f32 %v3011_v18, %v2266_v1 }
 0x5a3   : > { %2331 = vst [vmem:[%s4184_s21 + $0xf8] sm:$0xff] %v2299_v50 }
 0x5a4   : > { %3039 = shalt.err (!%p3036_p7)
}
 0x5a5   : > { %s3108_s29 = smov 128   ;;  %s3109_s23 = smov 8  }
 0x5a6   : > { %2713 = dma.vmem_to_hbm [thread:$0]  (%p3201_p3), %s2348_s27, 4096, %s2350_s28, %s2333_s9, %s3108_s29, %s3108_s29, %s3109_s23  }
 0x5a7 PF: > { %p2719_p9 = scmp.ge.s32.totalorder %s3106_s8, 2  ;;  %s2364_s21 = sand.u32 1, %s3078_s24  }
 0x5a8   : > { %s2365_s13 = scalar_lea.sflag [#allocation3], %s2364_s21 }
 0x5a9   : > { %p2716_p10 = pnand %p2719_p9, %p3210_p8 }
 0x5ab   : > { %p2717_p11 = pneg %p2716_p10 }
 0x5ad   : > { %3073 = dma.done.wait (%p2717_p11), %s2365_s13, 4096  }
 0x5ae   : > { %3075 = vsyncadd (%p2717_p11), %s2365_s13, 4294963200  ;;  %s20_s8 = sadd.s32 1, %s3106_s8   ;;  %s4586_s27 = sld [smem:[#allocation5_spill]] }
 0x5af   : > { %p17_p12 = scmp.ge.s32.totalorder %s20_s8, 10   ;;  %s4587_s28 = sld [smem:[#allocation6_spill]] }
 0x5b0   : > { %s4588_s29 = sld [smem:[#allocation7_spill]]  ;;  %s4590_s24 = smov %s3082_s25 }
 0x5b1   : > { %s4589_s30 = sld [smem:[#allocation8_spill]]  ;;  %s4591_s25 = smov %s3086_s26 }
 0x5b2   : > { %s4592_s26 = smov %s3219_s19  ;;  %19 = sbr.rel (!%p17_p12) target bundleno = 7 (0x7), region = 89 }
 0x5b7   :  { %2371 = vsyncpa [#allocation3], 1 }
 0x5b8   :  { %2373 = vsyncpa [#allocation3 + $0x1], 1 }

</bundles_post_ra>
